<compile_context>
chip_gen: v7x
topology: tpu7x:2x2x1
jax: 0.10.0
libtpu: 0.0.40
codegen_flags: <defaults>
</compile_context>

<pallas_src>
import jax
import jax.numpy as jnp
from jax import lax
from jax.experimental import pallas as pl
from jax.experimental.pallas import tpu as pltpu

NUM_GEN_PARAMS = 169          # (10*8 + 8) + (8*8 + 8) + (8*1 + 1) : CondInst dyn. mask head
NUM_GEN_PARAMS_PAD = 256      # pad controller Cout to a lane-dense 2-vreg extent
MASK_CHANNELS = 8             # cfg.MODEL.CONDINST.MASK_HEAD.CHANNELS
C_FEAT = 32                   # backbone-stub feature channels
MASK_THRESHOLD = 0.5          # cfg.MODEL.CONDINST.MASK_HEAD.MASK_THR
P3_STRIDE = 8
MASK_STRIDE = 2
SOI = 64.0                    # TODO(synk): per-FPN-level sizes_of_interest stub
PACK_LANES = 22               # [w1c(2)|w1f(8)|b1|w2(8)|b2|w3|b3] per hidden unit
VMEM_LIMIT = 64 * 1024 * 1024


# --------------------------------------------------------------------------- #
# 1. Fused preproc: (normalize folded) -> separable sum-pool -> 1x1 stub conv  #
#    One HBM pass over the image, row-band tiled, both grid axes parallel.     #
# --------------------------------------------------------------------------- #
def _make_preproc_kernel(THf, Wf, THm, Wm):
    def kernel(x_ref, pw8_ref, ph8_ref, pw2_ref, ph2_ref,
               wbb_ref, bbb_ref, wmb_ref, bmb_ref, p3_ref, mf_ref):
        x = x_ref[0]                                       # (3, TH, W) f32
        wbb = wbb_ref[...]                                 # (Cb, 3)
        wmb = wmb_ref[...]                                 # (Cm, 3)
        acc_b = jnp.zeros((wbb.shape[0], THf, Wf), jnp.float32)
        acc_m = jnp.zeros((wmb.shape[0], THm, Wm), jnp.float32)
        for c in range(3):                                 # unrolled over 3 channels
            xc = x[c]                                      # (TH, W)
            # 8x8 sum-pool (separable: W then H) for the backbone stub
            xw8 = jnp.dot(xc, pw8_ref[...], preferred_element_type=jnp.float32)   # (TH, Wf)
            xp8 = jnp.dot(ph8_ref[...], xw8, preferred_element_type=jnp.float32)  # (THf, Wf)
            # 2x2 sum-pool for the mask-branch stub
            xw2 = jnp.dot(xc, pw2_ref[...], preferred_element_type=jnp.float32)   # (TH, Wm)
            xp2 = jnp.dot(ph2_ref[...], xw2, preferred_element_type=jnp.float32)  # (THm, Wm)
            # 1x1 conv as VPU broadcast-FMA over the 3 input channels
            acc_b = acc_b + wbb[:, c:c + 1][:, :, None] * xp8[None, :, :]
            acc_m = acc_m + wmb[:, c:c + 1][:, :, None] * xp2[None, :, :]
        p3_ref[0] = jnp.maximum(acc_b + bbb_ref[...][:, :, None], 0.0)
        mf_ref[0] = jnp.maximum(acc_m + bmb_ref[...][:, :, None], 0.0)
    return kernel


def pallas_fused_preproc(x, pw8, ph8, pw2, ph2, wbb, bbb, wmb, bmb, *, tile_h):
    N, C, H, W = x.shape
    TH = tile_h
    THf, Wf = TH // 8, W // 8
    THm, Wm = TH // 2, W // 2
    Hf, Hm = H // 8, H // 2
    Cb, Cm = wbb.shape[0], wmb.shape[0]
    kernel = _make_preproc_kernel(THf, Wf, THm, Wm)
    return pl.pallas_call(
        kernel,
        out_shape=(
            jax.ShapeDtypeStruct((N, Cb, Hf, Wf), jnp.float32),
            jax.ShapeDtypeStruct((N, Cm, Hm, Wm), jnp.float32),
        ),
        grid=(N, H // TH),
        in_specs=[
            pl.BlockSpec((1, C, TH, W), lambda n, t: (n, 0, t, 0)),
            pl.BlockSpec((W, Wf), lambda n, t: (0, 0)),
            pl.BlockSpec((THf, TH), lambda n, t: (0, 0)),
            pl.BlockSpec((W, Wm), lambda n, t: (0, 0)),
            pl.BlockSpec((THm, TH), lambda n, t: (0, 0)),
            pl.BlockSpec((Cb, 3), lambda n, t: (0, 0)),
            pl.BlockSpec((Cb, 1), lambda n, t: (0, 0)),
            pl.BlockSpec((Cm, 3), lambda n, t: (0, 0)),
            pl.BlockSpec((Cm, 1), lambda n, t: (0, 0)),
        ],
        out_specs=(
            pl.BlockSpec((1, Cb, THf, Wf), lambda n, t: (n, 0, t, 0)),
            pl.BlockSpec((1, Cm, THm, Wm), lambda n, t: (n, 0, t, 0)),
        ),
        compiler_params=pltpu.CompilerParams(
            dimension_semantics=("parallel", "parallel"),
            vmem_limit_bytes=VMEM_LIMIT),
    )(x, pw8, ph8, pw2, ph2, wbb, bbb, wmb, bmb)


# --------------------------------------------------------------------------- #
# 2. Controller head: 3x3 conv (pad=1) with IN-KERNEL im2col.                  #
#    Taps = static lane-offset slices of an H-padded flat feature tile +       #
#    column-validity masks; 9 accumulated bf16 MXU matmuls, f32 accumulation.  #
# --------------------------------------------------------------------------- #
def _make_controller_kernel(Wf, HWf):
    def kernel(x_ref, w_ref, b_ref, o_ref):
        x = x_ref[0]                                       # (C_FEAT, Lpad) f32
        xpos = lax.broadcasted_iota(jnp.int32, (1, HWf), 1) % Wf
        mask_l = xpos >= 1                                 # source col x-1 in range
        mask_r = xpos <= Wf - 2                            # source col x+1 in range
        acc = jnp.zeros((w_ref.shape[1], HWf), jnp.float32)
        for dy in range(3):
            for dx in range(3):
                t = dy * 3 + dx
                start = dy * Wf + dx
                tap = x[:, start:start + HWf]              # (C_FEAT, HWf)
                if dx == 0:
                    tap = jnp.where(mask_l, tap, 0.0)
                elif dx == 2:
                    tap = jnp.where(mask_r, tap, 0.0)
                acc = acc + jnp.dot(w_ref[t], tap.astype(jnp.bfloat16),
                                    preferred_element_type=jnp.float32)
        o_ref[0] = acc + b_ref[...]
    return kernel


def pallas_controller_conv(p3_padded_flat, w9, b, Wf, HWf):
    # TODO(synk): for large HWf, add a halo-tiled spatial grid axis (manual DMA);
    # at P3 resolution the whole per-image feature tile fits VMEM comfortably.
    N, C, Lpad = p3_padded_flat.shape
    Cout = w9.shape[1]
    kernel = _make_controller_kernel(Wf, HWf)
    return pl.pallas_call(
        kernel,
        out_shape=jax.ShapeDtypeStruct((N, Cout, HWf), jnp.float32),
        grid=(N,),
        in_specs=[
            pl.BlockSpec((1, C, Lpad), lambda n: (n, 0, 0)),
            pl.BlockSpec((9, Cout, C), lambda n: (0, 0, 0)),
            pl.BlockSpec((Cout, 1), lambda n: (0, 0)),
        ],
        out_specs=pl.BlockSpec((1, Cout, HWf), lambda n: (n, 0, 0)),
        compiler_params=pltpu.CompilerParams(
            dimension_semantics=("parallel",),
            vmem_limit_bytes=VMEM_LIMIT),
    )(p3_padded_flat, w9, b)


# --------------------------------------------------------------------------- #
# 3. Dynamic mask head: in-kernel relative-coordinate generation, packed       #
#    per-instance params, unrolled VPU broadcast-FMA dynamic convs, sigmoid.   #
# --------------------------------------------------------------------------- #
def _make_mask_head_kernel(T, Wm, mask_stride, inv_soi, Cm, Khid):
    def kernel(feats_ref, p_ref, inst_ref, o_ref):
        feats = feats_ref[0]                               # (Cm, T)
        P = p_ref[0]                                       # (K, 8, 22)
        inst = inst_ref[0]                                 # (K, 2)

        base = pl.program_id(1) * T
        pos = lax.broadcasted_iota(jnp.int32, (1, T), 1) + base
        gx = (pos % Wm).astype(jnp.float32) * mask_stride + mask_stride * 0.5
        gy = (pos // Wm).astype(jnp.float32) * mask_stride + mask_stride * 0.5

        rel_x = (inst[:, 0:1][:, :, None] - gx[None, :, :]) * inv_soi   # (K,1,T)
        rel_y = (inst[:, 1:2][:, :, None] - gy[None, :, :]) * inv_soi   # (K,1,T)

        # layer 1: coords (contraction 2) + shared mask feats (contraction 8), VPU FMA
        h1 = P[:, :, 0:1] * rel_x + P[:, :, 1:2] * rel_y + P[:, :, 10:11]
        for f in range(Cm):
            h1 = h1 + P[:, :, 2 + f:3 + f] * feats[f:f + 1, :][None, :, :]
        h1 = jnp.maximum(h1, 0.0)                          # (K, 8, T)

        # layer 2: contraction 8, VPU FMA
        h2 = P[:, :, 11:12] * h1[:, 0:1, :]
        for i in range(1, Khid):
            h2 = h2 + P[:, :, 11 + i:12 + i] * h1[:, i:i + 1, :]
        h2 = jnp.maximum(h2 + P[:, :, 19:20], 0.0)         # (K, 8, T)

        # layer 3: contraction 8 -> 1 channel, VPU FMA
        logit = P[:, 0:1, 20:21] * h2[:, 0:1, :]
        for j in range(1, Khid):
            logit = logit + P[:, j:j + 1, 20:21] * h2[:, j:j + 1, :]
        logit = logit + P[:, 0:1, 21:22]                   # (K, 1, T)

        o_ref[0] = jax.nn.sigmoid(logit[:, 0, :])
    return kernel


def pallas_dynamic_mask_head(mask_feats_flat, packed_params, inst_xy, *,
                             Wm, mask_stride, soi, tile):
    N, Cm, HWm = mask_feats_flat.shape
    _, K, Khid, PL = packed_params.shape
    T = tile
    kernel = _make_mask_head_kernel(T, Wm, float(mask_stride), 1.0 / soi, Cm, Khid)
    return pl.pallas_call(
        kernel,
        out_shape=jax.ShapeDtypeStruct((N, K, HWm), jnp.float32),
        grid=(N, HWm // T),
        in_specs=[
            pl.BlockSpec((1, Cm, T), lambda n, t: (n, 0, t)),
            pl.BlockSpec((1, K, Khid, PL), lambda n, t: (n, 0, 0, 0)),
            pl.BlockSpec((1, K, 2), lambda n, t: (n, 0, 0)),
        ],
        out_specs=pl.BlockSpec((1, K, T), lambda n, t: (n, 0, t)),
        compiler_params=pltpu.CompilerParams(
            dimension_semantics=("parallel", "parallel"),
            vmem_limit_bytes=VMEM_LIMIT),
    )(mask_feats_flat, packed_params, inst_xy)


# ------------------------------------------------------------------------ main
if __name__ == "__main__":
    key = jax.random.PRNGKey(0)
    k_img, k_bb, k_mb, k_ctrl = jax.random.split(key, 4)

    N, H, W = 2, 128, 256
    TH = 64                                   # preproc row-band tile (multiple of 8)
    Hf, Wf = H // 8, W // 8                   # 16, 32
    HWf = Hf * Wf                             # 512
    Hm, Wm = H // 2, W // 2                   # 64, 128
    HWm = Hm * Wm                             # 8192
    THf, THm = TH // 8, TH // 2

    x = jax.random.uniform(k_img, (N, 3, H, W), jnp.float32, 0.0, 255.0)

    pixel_mean = jnp.array([103.53, 116.28, 123.675], jnp.float32)
    pixel_std = jnp.array([1.0, 1.0, 1.0], jnp.float32)
    inv_std = 1.0 / pixel_std

    # separable 1-D sum-pooling matrices (linear size; /64 and /4 folded into weights)
    pw8 = (jnp.arange(W)[:, None] // 8 == jnp.arange(Wf)[None, :]).astype(jnp.float32)
    ph8 = (jnp.arange(TH)[None, :] // 8 == jnp.arange(THf)[:, None]).astype(jnp.float32)
    pw2 = (jnp.arange(W)[:, None] // 2 == jnp.arange(Wm)[None, :]).astype(jnp.float32)
    ph2 = (jnp.arange(TH)[None, :] // 2 == jnp.arange(THm)[:, None]).astype(jnp.float32)

    # TODO(synk): build_backbone (ResNet-FPN) and the multi-level mask branch are
    # stubbed as (normalize -> avg-pool -> 1x1 conv -> relu); pixel_mean/std and
    # the pooling scale are folded into the 1x1 weights/bias (linear before ReLU).
    w_bb = 0.1 * jax.random.normal(k_bb, (C_FEAT, 3), jnp.float32)
    b_bb = jnp.zeros((C_FEAT,), jnp.float32)
    w_mb = 0.1 * jax.random.normal(k_mb, (MASK_CHANNELS, 3), jnp.float32)
    b_mb = jnp.zeros((MASK_CHANNELS,), jnp.float32)

    wbb_eff = (w_bb * inv_std[None, :]) / 64.0
    bbb_eff = (b_bb - (w_bb * inv_std[None, :]) @ pixel_mean).reshape(C_FEAT, 1)
    wmb_eff = (w_mb * inv_std[None, :]) / 4.0
    bmb_eff = (b_mb - (w_mb * inv_std[None, :]) @ pixel_mean).reshape(MASK_CHANNELS, 1)

    # 1-3. fused preproc (single HBM pass, row-band tiled)
    p3_feat, mask_feats = pallas_fused_preproc(
        x, pw8, ph8, pw2, ph2, wbb_eff, bbb_eff, wmb_eff, bmb_eff, tile_h=TH)
    # p3_feat: (N, 32, Hf, Wf)   mask_feats: (N, 8, Hm, Wm)

    # 4. controller head: 3x3 conv 32 -> 169, pad=1 (init: normal std=0.01, bias 0)
    w_ctrl = 0.01 * jax.random.normal(
        k_ctrl, (NUM_GEN_PARAMS, C_FEAT, 3, 3), jnp.float32)
    b_ctrl = jnp.zeros((NUM_GEN_PARAMS,), jnp.float32)
    w9 = jnp.transpose(w_ctrl, (2, 3, 0, 1)).reshape(9, NUM_GEN_PARAMS, C_FEAT)
    w9 = jnp.pad(w9, ((0, 0), (0, NUM_GEN_PARAMS_PAD - NUM_GEN_PARAMS), (0, 0)))
    b_pad = jnp.pad(b_ctrl, (0, NUM_GEN_PARAMS_PAD - NUM_GEN_PARAMS)).reshape(-1, 1)

    # free reshape + tiny H-only zero pad (one extra elem each end for corner taps)
    p3_flat = p3_feat.reshape(N, C_FEAT, HWf)
    p3_padded = jnp.pad(p3_flat, ((0, 0), (0, 0), (Wf + 1, Wf + 1)))
    ctrl = pallas_controller_conv(p3_padded, w9.astype(jnp.bfloat16), b_pad, Wf, HWf)
    ctrl = ctrl  # (N, 256, HWf) f32; lanes 169..255 are zero-weight padding

    # 5. proposal generator stub: first K P3 locations per image.
    # TODO(synk): FCOS proposal generator, score top-k and matrix-NMS are
    # data-dependent host-side control flow with no clean Pallas equivalent.
    K = 8
    params = jnp.transpose(ctrl[:, :NUM_GEN_PARAMS, :K], (0, 2, 1))      # (N, K, 169)

    loc_ids = jnp.arange(K)
    lr, lc = loc_ids // Wf, loc_ids % Wf
    inst_xy = jnp.stack([lc * P3_STRIDE + P3_STRIDE // 2,
                         lr * P3_STRIDE + P3_STRIDE // 2], axis=-1).astype(jnp.float32)
    inst_xy = jnp.broadcast_to(inst_xy[None], (N, K, 2))                 # (N, K, 2)

    # 6. pack dynamic params (CondInst order: weights [80,64,8], biases [8,8,1];
    #    layer-1 input-channel order = [rel_coords(2), mask_feats(8)]) into one
    #    lane-dense block per instance: per hidden unit j the lanes are
    #    [w1c(2) | w1f(8) | b1 | w2 row j (8) | b2 | w3_j | b3].
    w1 = params[..., :80].reshape(N, K, 8, 10)
    w2 = params[..., 80:144].reshape(N, K, 8, 8)
    w3 = params[..., 144:152].reshape(N, K, 8, 1)
    b1 = params[..., 152:160].reshape(N, K, 8, 1)
    b2 = params[..., 160:168].reshape(N, K, 8, 1)
    b3 = jnp.broadcast_to(params[..., 168:169][..., None], (N, K, 8, 1))
    packed = jnp.concatenate(
        [w1[..., 0:2], w1[..., 2:10], b1, w2, b2, w3, b3], axis=-1)      # (N, K, 8, 22)

    mask_feats_flat = mask_feats.reshape(N, MASK_CHANNELS, HWm)
    mask_probs = pallas_dynamic_mask_head(
        mask_feats_flat, packed, inst_xy,
        Wm=Wm, mask_stride=MASK_STRIDE, soi=SOI, tile=512)               # (N, K, HWm)
    mask_probs = mask_probs.reshape(N * K, Hm, Wm)

    # 7. postprocess: threshold (as in CondInst.postprocess).
    # TODO(synk): aligned_bilinear upsample, bilinear resize, matrix-NMS, mask
    # fusion and box-from-mask are host-side data-dependent postprocessing.
    pred_masks = (mask_probs > MASK_THRESHOLD).astype(jnp.float32)

    jax.block_until_ready((mask_probs, pred_masks))
    print("KERNEL_OK")
</pallas_src>

<mosaic_0001>
module attributes {stable_mosaic.version = 11 : i64} {
  func.func @kernel(%arg0: i32, %arg1: i32, %arg2: memref<1x3x64x256xf32, #tpu.memory_space<vmem>>, %arg3: memref<256x32xf32, #tpu.memory_space<vmem>>, %arg4: memref<8x64xf32, #tpu.memory_space<vmem>>, %arg5: memref<256x128xf32, #tpu.memory_space<vmem>>, %arg6: memref<32x64xf32, #tpu.memory_space<vmem>>, %arg7: memref<32x3xf32, #tpu.memory_space<vmem>>, %arg8: memref<32x1xf32, #tpu.memory_space<vmem>>, %arg9: memref<8x3xf32, #tpu.memory_space<vmem>>, %arg10: memref<8x1xf32, #tpu.memory_space<vmem>>, %arg11: memref<1x32x8x32xf32, #tpu.memory_space<vmem>>, %arg12: memref<1x8x32x128xf32, #tpu.memory_space<vmem>>) attributes {dimension_semantics = [#tpu.dimension_semantics<parallel>, #tpu.dimension_semantics<parallel>], iteration_bounds = array<i64: 2, 2>, scalar_prefetch = 0 : i64, scratch_operands = 0 : i64, tpu.core_type = #tpu.core_type<tc>, window_params = [{transform_indices = @transform_0, window_bounds = array<i64: 1, 3, 64, 256>}, {pipeline_mode = #tpu.pipeline_mode<synchronous>, transform_indices = @transform_1, window_bounds = array<i64: 256, 32>}, {pipeline_mode = #tpu.pipeline_mode<synchronous>, transform_indices = @transform_2, window_bounds = array<i64: 8, 64>}, {pipeline_mode = #tpu.pipeline_mode<synchronous>, transform_indices = @transform_3, window_bounds = array<i64: 256, 128>}, {pipeline_mode = #tpu.pipeline_mode<synchronous>, transform_indices = @transform_4, window_bounds = array<i64: 32, 64>}, {pipeline_mode = #tpu.pipeline_mode<synchronous>, transform_indices = @transform_5, window_bounds = array<i64: 32, 3>}, {pipeline_mode = #tpu.pipeline_mode<synchronous>, transform_indices = @transform_6, window_bounds = array<i64: 32, 1>}, {pipeline_mode = #tpu.pipeline_mode<synchronous>, transform_indices = @transform_7, window_bounds = array<i64: 8, 3>}, {pipeline_mode = #tpu.pipeline_mode<synchronous>, transform_indices = @transform_8, window_bounds = array<i64: 8, 1>}, {transform_indices = @transform_9, window_bounds = array<i64: 1, 32, 8, 32>}, {transform_indices = @transform_10, window_bounds = array<i64: 1, 8, 32, 128>}]} {
    %c0 = arith.constant 0 : index
    %c0_0 = arith.constant 0 : index
    %c0_1 = arith.constant 0 : index
    %c0_2 = arith.constant 0 : index
    %0 = vector.load %arg2[%c0, %c0_0, %c0_1, %c0_2] : memref<1x3x64x256xf32, #tpu.memory_space<vmem>>, vector<1x3x64x256xf32>
    %1 = vector.shape_cast %0 : vector<1x3x64x256xf32> to vector<3x64x256xf32>
    %c0_3 = arith.constant 0 : index
    %c0_4 = arith.constant 0 : index
    %2 = vector.load %arg7[%c0_3, %c0_4] : memref<32x3xf32, #tpu.memory_space<vmem>>, vector<32x3xf32>
    %c0_5 = arith.constant 0 : index
    %c0_6 = arith.constant 0 : index
    %3 = vector.load %arg9[%c0_5, %c0_6] : memref<8x3xf32, #tpu.memory_space<vmem>>, vector<8x3xf32>
    %cst = arith.constant 0.000000e+00 : f32
    %4 = vector.broadcast %cst : f32 to vector<32x8x32xf32>
    %cst_7 = arith.constant 0.000000e+00 : f32
    %5 = vector.broadcast %cst_7 : f32 to vector<8x32x128xf32>
    %6 = vector.extract_strided_slice %1 {offsets = [0, 0, 0], sizes = [1, 64, 256], strides = [1, 1, 1]} : vector<3x64x256xf32> to vector<1x64x256xf32>
    %7 = vector.shape_cast %6 : vector<1x64x256xf32> to vector<64x256xf32>
    %c0_8 = arith.constant 0 : index
    %c0_9 = arith.constant 0 : index
    %8 = vector.load %arg3[%c0_8, %c0_9] : memref<256x32xf32, #tpu.memory_space<vmem>>, vector<256x32xf32>
    %cst_10 = arith.constant dense<0.000000e+00> : vector<64x32xf32>
    %9 = tpu.matmul %7, %8, %cst_10 {dimension_numbers = #tpu.dot_dimension_numbers<[1], [0], [0], [1], [0, 0, 1, 1], [], []>} : vector<64x256xf32>, vector<256x32xf32>, vector<64x32xf32> -> vector<64x32xf32>
    %c0_11 = arith.constant 0 : index
    %c0_12 = arith.constant 0 : index
    %10 = vector.load %arg4[%c0_11, %c0_12] : memref<8x64xf32, #tpu.memory_space<vmem>>, vector<8x64xf32>
    %cst_13 = arith.constant dense<0.000000e+00> : vector<8x32xf32>
    %11 = tpu.matmul %10, %9, %cst_13 {dimension_numbers = #tpu.dot_dimension_numbers<[1], [0], [0], [1], [0, 0, 1, 1], [], []>} : vector<8x64xf32>, vector<64x32xf32>, vector<8x32xf32> -> vector<8x32xf32>
    %c0_14 = arith.constant 0 : index
    %c0_15 = arith.constant 0 : index
    %12 = vector.load %arg5[%c0_14, %c0_15] : memref<256x128xf32, #tpu.memory_space<vmem>>, vector<256x128xf32>
    %cst_16 = arith.constant dense<0.000000e+00> : vector<64x128xf32>
    %13 = tpu.matmul %7, %12, %cst_16 {dimension_numbers = #tpu.dot_dimension_numbers<[1], [0], [0], [1], [0, 0, 1, 1], [], []>} : vector<64x256xf32>, vector<256x128xf32>, vector<64x128xf32> -> vector<64x128xf32>
    %c0_17 = arith.constant 0 : index
    %c0_18 = arith.constant 0 : index
    %14 = vector.load %arg6[%c0_17, %c0_18] : memref<32x64xf32, #tpu.memory_space<vmem>>, vector<32x64xf32>
    %cst_19 = arith.constant dense<0.000000e+00> : vector<32x128xf32>
    %15 = tpu.matmul %14, %13, %cst_19 {dimension_numbers = #tpu.dot_dimension_numbers<[1], [0], [0], [1], [0, 0, 1, 1], [], []>} : vector<32x64xf32>, vector<64x128xf32>, vector<32x128xf32> -> vector<32x128xf32>
    %16 = vector.extract_strided_slice %2 {offsets = [0, 0], sizes = [32, 1], strides = [1, 1]} : vector<32x3xf32> to vector<32x1xf32>
    %17 = vector.shape_cast %16 : vector<32x1xf32> to vector<32x1x1xf32>
    %18 = vector.shape_cast %11 : vector<8x32xf32> to vector<1x8x32xf32>
    %19 = vector.broadcast %17 : vector<32x1x1xf32> to vector<32x8x32xf32>
    %20 = vector.broadcast %18 : vector<1x8x32xf32> to vector<32x8x32xf32>
    %21 = arith.mulf %19, %20 : vector<32x8x32xf32>
    %22 = arith.addf %4, %21 : vector<32x8x32xf32>
    %23 = vector.extract_strided_slice %3 {offsets = [0, 0], sizes = [8, 1], strides = [1, 1]} : vector<8x3xf32> to vector<8x1xf32>
    %24 = vector.shape_cast %23 : vector<8x1xf32> to vector<8x1x1xf32>
    %25 = vector.shape_cast %15 : vector<32x128xf32> to vector<1x32x128xf32>
    %26 = vector.broadcast %24 : vector<8x1x1xf32> to vector<8x32x128xf32>
    %27 = vector.broadcast %25 : vector<1x32x128xf32> to vector<8x32x128xf32>
    %28 = arith.mulf %26, %27 : vector<8x32x128xf32>
    %29 = arith.addf %5, %28 : vector<8x32x128xf32>
    %30 = vector.extract_strided_slice %1 {offsets = [1, 0, 0], sizes = [1, 64, 256], strides = [1, 1, 1]} : vector<3x64x256xf32> to vector<1x64x256xf32>
    %31 = vector.shape_cast %30 : vector<1x64x256xf32> to vector<64x256xf32>
    %c0_20 = arith.constant 0 : index
    %c0_21 = arith.constant 0 : index
    %32 = vector.load %arg3[%c0_20, %c0_21] : memref<256x32xf32, #tpu.memory_space<vmem>>, vector<256x32xf32>
    %cst_22 = arith.constant dense<0.000000e+00> : vector<64x32xf32>
    %33 = tpu.matmul %31, %32, %cst_22 {dimension_numbers = #tpu.dot_dimension_numbers<[1], [0], [0], [1], [0, 0, 1, 1], [], []>} : vector<64x256xf32>, vector<256x32xf32>, vector<64x32xf32> -> vector<64x32xf32>
    %c0_23 = arith.constant 0 : index
    %c0_24 = arith.constant 0 : index
    %34 = vector.load %arg4[%c0_23, %c0_24] : memref<8x64xf32, #tpu.memory_space<vmem>>, vector<8x64xf32>
    %cst_25 = arith.constant dense<0.000000e+00> : vector<8x32xf32>
    %35 = tpu.matmul %34, %33, %cst_25 {dimension_numbers = #tpu.dot_dimension_numbers<[1], [0], [0], [1], [0, 0, 1, 1], [], []>} : vector<8x64xf32>, vector<64x32xf32>, vector<8x32xf32> -> vector<8x32xf32>
    %c0_26 = arith.constant 0 : index
    %c0_27 = arith.constant 0 : index
    %36 = vector.load %arg5[%c0_26, %c0_27] : memref<256x128xf32, #tpu.memory_space<vmem>>, vector<256x128xf32>
    %cst_28 = arith.constant dense<0.000000e+00> : vector<64x128xf32>
    %37 = tpu.matmul %31, %36, %cst_28 {dimension_numbers = #tpu.dot_dimension_numbers<[1], [0], [0], [1], [0, 0, 1, 1], [], []>} : vector<64x256xf32>, vector<256x128xf32>, vector<64x128xf32> -> vector<64x128xf32>
    %c0_29 = arith.constant 0 : index
    %c0_30 = arith.constant 0 : index
    %38 = vector.load %arg6[%c0_29, %c0_30] : memref<32x64xf32, #tpu.memory_space<vmem>>, vector<32x64xf32>
    %cst_31 = arith.constant dense<0.000000e+00> : vector<32x128xf32>
    %39 = tpu.matmul %38, %37, %cst_31 {dimension_numbers = #tpu.dot_dimension_numbers<[1], [0], [0], [1], [0, 0, 1, 1], [], []>} : vector<32x64xf32>, vector<64x128xf32>, vector<32x128xf32> -> vector<32x128xf32>
    %40 = vector.extract_strided_slice %2 {offsets = [0, 1], sizes = [32, 1], strides = [1, 1]} : vector<32x3xf32> to vector<32x1xf32>
    %41 = vector.shape_cast %40 : vector<32x1xf32> to vector<32x1x1xf32>
    %42 = vector.shape_cast %35 : vector<8x32xf32> to vector<1x8x32xf32>
    %43 = vector.broadcast %41 : vector<32x1x1xf32> to vector<32x8x32xf32>
    %44 = vector.broadcast %42 : vector<1x8x32xf32> to vector<32x8x32xf32>
    %45 = arith.mulf %43, %44 : vector<32x8x32xf32>
    %46 = arith.addf %22, %45 : vector<32x8x32xf32>
    %47 = vector.extract_strided_slice %3 {offsets = [0, 1], sizes = [8, 1], strides = [1, 1]} : vector<8x3xf32> to vector<8x1xf32>
    %48 = vector.shape_cast %47 : vector<8x1xf32> to vector<8x1x1xf32>
    %49 = vector.shape_cast %39 : vector<32x128xf32> to vector<1x32x128xf32>
    %50 = vector.broadcast %48 : vector<8x1x1xf32> to vector<8x32x128xf32>
    %51 = vector.broadcast %49 : vector<1x32x128xf32> to vector<8x32x128xf32>
    %52 = arith.mulf %50, %51 : vector<8x32x128xf32>
    %53 = arith.addf %29, %52 : vector<8x32x128xf32>
    %54 = vector.extract_strided_slice %1 {offsets = [2, 0, 0], sizes = [1, 64, 256], strides = [1, 1, 1]} : vector<3x64x256xf32> to vector<1x64x256xf32>
    %55 = vector.shape_cast %54 : vector<1x64x256xf32> to vector<64x256xf32>
    %c0_32 = arith.constant 0 : index
    %c0_33 = arith.constant 0 : index
    %56 = vector.load %arg3[%c0_32, %c0_33] : memref<256x32xf32, #tpu.memory_space<vmem>>, vector<256x32xf32>
    %cst_34 = arith.constant dense<0.000000e+00> : vector<64x32xf32>
    %57 = tpu.matmul %55, %56, %cst_34 {dimension_numbers = #tpu.dot_dimension_numbers<[1], [0], [0], [1], [0, 0, 1, 1], [], []>} : vector<64x256xf32>, vector<256x32xf32>, vector<64x32xf32> -> vector<64x32xf32>
    %c0_35 = arith.constant 0 : index
    %c0_36 = arith.constant 0 : index
    %58 = vector.load %arg4[%c0_35, %c0_36] : memref<8x64xf32, #tpu.memory_space<vmem>>, vector<8x64xf32>
    %cst_37 = arith.constant dense<0.000000e+00> : vector<8x32xf32>
    %59 = tpu.matmul %58, %57, %cst_37 {dimension_numbers = #tpu.dot_dimension_numbers<[1], [0], [0], [1], [0, 0, 1, 1], [], []>} : vector<8x64xf32>, vector<64x32xf32>, vector<8x32xf32> -> vector<8x32xf32>
    %c0_38 = arith.constant 0 : index
    %c0_39 = arith.constant 0 : index
    %60 = vector.load %arg5[%c0_38, %c0_39] : memref<256x128xf32, #tpu.memory_space<vmem>>, vector<256x128xf32>
    %cst_40 = arith.constant dense<0.000000e+00> : vector<64x128xf32>
    %61 = tpu.matmul %55, %60, %cst_40 {dimension_numbers = #tpu.dot_dimension_numbers<[1], [0], [0], [1], [0, 0, 1, 1], [], []>} : vector<64x256xf32>, vector<256x128xf32>, vector<64x128xf32> -> vector<64x128xf32>
    %c0_41 = arith.constant 0 : index
    %c0_42 = arith.constant 0 : index
    %62 = vector.load %arg6[%c0_41, %c0_42] : memref<32x64xf32, #tpu.memory_space<vmem>>, vector<32x64xf32>
    %cst_43 = arith.constant dense<0.000000e+00> : vector<32x128xf32>
    %63 = tpu.matmul %62, %61, %cst_43 {dimension_numbers = #tpu.dot_dimension_numbers<[1], [0], [0], [1], [0, 0, 1, 1], [], []>} : vector<32x64xf32>, vector<64x128xf32>, vector<32x128xf32> -> vector<32x128xf32>
    %64 = vector.extract_strided_slice %2 {offsets = [0, 2], sizes = [32, 1], strides = [1, 1]} : vector<32x3xf32> to vector<32x1xf32>
    %65 = vector.shape_cast %64 : vector<32x1xf32> to vector<32x1x1xf32>
    %66 = vector.shape_cast %59 : vector<8x32xf32> to vector<1x8x32xf32>
    %67 = vector.broadcast %65 : vector<32x1x1xf32> to vector<32x8x32xf32>
    %68 = vector.broadcast %66 : vector<1x8x32xf32> to vector<32x8x32xf32>
    %69 = arith.mulf %67, %68 : vector<32x8x32xf32>
    %70 = arith.addf %46, %69 : vector<32x8x32xf32>
    %71 = vector.extract_strided_slice %3 {offsets = [0, 2], sizes = [8, 1], strides = [1, 1]} : vector<8x3xf32> to vector<8x1xf32>
    %72 = vector.shape_cast %71 : vector<8x1xf32> to vector<8x1x1xf32>
    %73 = vector.shape_cast %63 : vector<32x128xf32> to vector<1x32x128xf32>
    %74 = vector.broadcast %72 : vector<8x1x1xf32> to vector<8x32x128xf32>
    %75 = vector.broadcast %73 : vector<1x32x128xf32> to vector<8x32x128xf32>
    %76 = arith.mulf %74, %75 : vector<8x32x128xf32>
    %77 = arith.addf %53, %76 : vector<8x32x128xf32>
    %c0_44 = arith.constant 0 : index
    %c0_45 = arith.constant 0 : index
    %78 = vector.load %arg8[%c0_44, %c0_45] : memref<32x1xf32, #tpu.memory_space<vmem>>, vector<32x1xf32>
    %79 = vector.shape_cast %78 : vector<32x1xf32> to vector<32x1x1xf32>
    %80 = vector.broadcast %79 : vector<32x1x1xf32> to vector<32x8x32xf32>
    %81 = arith.addf %70, %80 : vector<32x8x32xf32>
    %cst_46 = arith.constant 0.000000e+00 : f32
    %82 = vector.broadcast %cst_46 : f32 to vector<32x8x32xf32>
    %83 = arith.maximumf %81, %82 : vector<32x8x32xf32>
    %c0_47 = arith.constant 0 : index
    %c0_48 = arith.constant 0 : index
    %c0_49 = arith.constant 0 : index
    %c0_50 = arith.constant 0 : index
    %84 = vector.load %arg11[%c0_47, %c0_48, %c0_49, %c0_50] : memref<1x32x8x32xf32, #tpu.memory_space<vmem>>, vector<1x32x8x32xf32>
    %85 = vector.shape_cast %84 : vector<1x32x8x32xf32> to vector<32x8x32xf32>
    %86 = vector.shape_cast %83 : vector<32x8x32xf32> to vector<1x32x8x32xf32>
    tpu.vector_store %arg11[%c0_47, %c0_48, %c0_49, %c0_50], %86 {strides = array<i32>} : memref<1x32x8x32xf32, #tpu.memory_space<vmem>>, vector<1x32x8x32xf32>,
    %c0_51 = arith.constant 0 : index
    %c0_52 = arith.constant 0 : index
    %87 = vector.load %arg10[%c0_51, %c0_52] : memref<8x1xf32, #tpu.memory_space<vmem>>, vector<8x1xf32>
    %88 = vector.shape_cast %87 : vector<8x1xf32> to vector<8x1x1xf32>
    %89 = vector.broadcast %88 : vector<8x1x1xf32> to vector<8x32x128xf32>
    %90 = arith.addf %77, %89 : vector<8x32x128xf32>
    %cst_53 = arith.constant 0.000000e+00 : f32
    %91 = vector.broadcast %cst_53 : f32 to vector<8x32x128xf32>
    %92 = arith.maximumf %90, %91 : vector<8x32x128xf32>
    %c0_54 = arith.constant 0 : index
    %c0_55 = arith.constant 0 : index
    %c0_56 = arith.constant 0 : index
    %c0_57 = arith.constant 0 : index
    %93 = vector.load %arg12[%c0_54, %c0_55, %c0_56, %c0_57] : memref<1x8x32x128xf32, #tpu.memory_space<vmem>>, vector<1x8x32x128xf32>
    %94 = vector.shape_cast %93 : vector<1x8x32x128xf32> to vector<8x32x128xf32>
    %95 = vector.shape_cast %92 : vector<8x32x128xf32> to vector<1x8x32x128xf32>
    tpu.vector_store %arg12[%c0_54, %c0_55, %c0_56, %c0_57], %95 {strides = array<i32>} : memref<1x8x32x128xf32, #tpu.memory_space<vmem>>, vector<1x8x32x128xf32>,
    return
  }
  func.func @transform_0(%arg0: i32, %arg1: i32) -> (i32, i32, i32, i32) {
    %c0_i32 = arith.constant 0 : i32
    %c0_i32_0 = arith.constant 0 : i32
    %c0_i32_1 = arith.constant 0 : i32
    return %arg0, %c0_i32, %arg1, %c0_i32_0 : i32, i32, i32, i32
  }
  func.func @transform_1(%arg0: i32, %arg1: i32) -> (i32, i32) {
    %c0_i32 = arith.constant 0 : i32
    %c0_i32_0 = arith.constant 0 : i32
    %c0_i32_1 = arith.constant 0 : i32
    return %c0_i32, %c0_i32_0 : i32, i32
  }
  func.func @transform_2(%arg0: i32, %arg1: i32) -> (i32, i32) {
    %c0_i32 = arith.constant 0 : i32
    %c0_i32_0 = arith.constant 0 : i32
    %c0_i32_1 = arith.constant 0 : i32
    return %c0_i32, %c0_i32_0 : i32, i32
  }
  func.func @transform_3(%arg0: i32, %arg1: i32) -> (i32, i32) {
    %c0_i32 = arith.constant 0 : i32
    %c0_i32_0 = arith.constant 0 : i32
    %c0_i32_1 = arith.constant 0 : i32
    return %c0_i32, %c0_i32_0 : i32, i32
  }
  func.func @transform_4(%arg0: i32, %arg1: i32) -> (i32, i32) {
    %c0_i32 = arith.constant 0 : i32
    %c0_i32_0 = arith.constant 0 : i32
    %c0_i32_1 = arith.constant 0 : i32
    return %c0_i32, %c0_i32_0 : i32, i32
  }
  func.func @transform_5(%arg0: i32, %arg1: i32) -> (i32, i32) {
    %c0_i32 = arith.constant 0 : i32
    %c0_i32_0 = arith.constant 0 : i32
    %c0_i32_1 = arith.constant 0 : i32
    return %c0_i32, %c0_i32_0 : i32, i32
  }
  func.func @transform_6(%arg0: i32, %arg1: i32) -> (i32, i32) {
    %c0_i32 = arith.constant 0 : i32
    %c0_i32_0 = arith.constant 0 : i32
    %c0_i32_1 = arith.constant 0 : i32
    return %c0_i32, %c0_i32_0 : i32, i32
  }
  func.func @transform_7(%arg0: i32, %arg1: i32) -> (i32, i32) {
    %c0_i32 = arith.constant 0 : i32
    %c0_i32_0 = arith.constant 0 : i32
    %c0_i32_1 = arith.constant 0 : i32
    return %c0_i32, %c0_i32_0 : i32, i32
  }
  func.func @transform_8(%arg0: i32, %arg1: i32) -> (i32, i32) {
    %c0_i32 = arith.constant 0 : i32
    %c0_i32_0 = arith.constant 0 : i32
    %c0_i32_1 = arith.constant 0 : i32
    return %c0_i32, %c0_i32_0 : i32, i32
  }
  func.func @transform_9(%arg0: i32, %arg1: i32) -> (i32, i32, i32, i32) {
    %c0_i32 = arith.constant 0 : i32
    %c0_i32_0 = arith.constant 0 : i32
    %c0_i32_1 = arith.constant 0 : i32
    return %arg0, %c0_i32, %arg1, %c0_i32_0 : i32, i32, i32, i32
  }
  func.func @transform_10(%arg0: i32, %arg1: i32) -> (i32, i32, i32, i32) {
    %c0_i32 = arith.constant 0 : i32
    %c0_i32_0 = arith.constant 0 : i32
    %c0_i32_1 = arith.constant 0 : i32
    return %arg0, %c0_i32, %arg1, %c0_i32_0 : i32, i32, i32, i32
  }
}

</mosaic_0001>

<bundles_post_ra>
// kernel: tpu_custom_call.1
= control target key start
LH: loop header
LB: loop body
LE: loop exit
PB: predicated region body
PF: predicated region fallthrough
CT: control target
= control target key end

     0   :  { %s7982_s0 = inlined_call_operand.hbm [shape: f32[2,3,128,256], index: 0, kind: input, shape index: {}]   ;;  %s7983_s1 = inlined_call_operand.hbm [shape: f32[256,32], index: 1, kind: input, shape index: {}]   ;;  %s7984_s2 = inlined_call_operand.hbm [shape: f32[8,64], index: 2, kind: input, shape index: {}]   ;;  %s7985_s3 = inlined_call_operand.hbm [shape: f32[256,128], index: 3, kind: input, shape index: {}]   ;;  %s7986_s4 = inlined_call_operand.hbm [shape: f32[32,64], index: 4, kind: input, shape index: {}]   ;;  %s7987_s5 = inlined_call_operand.hbm [shape: f32[32,3], index: 5, kind: input, shape index: {}]   ;;  %s7988_s6 = inlined_call_operand.hbm [shape: f32[32,1], index: 6, kind: input, shape index: {}]   ;;  %s7989_s7 = inlined_call_operand.hbm [shape: f32[8,3], index: 7, kind: input, shape index: {}]   ;;  %s7990_s8 = inlined_call_operand.hbm [shape: f32[8,1], index: 8, kind: input, shape index: {}]   ;;  %s7991_s9 = inlined_call_operand.hbm [shape: f32[2,32,16,32], index: 9, kind: output, shape index: {0}]   ;;  %s7992_s10 = inlined_call_operand.hbm [shape: f32[2,8,64,128], index: 10, kind: output, shape index: {1}]  }
   0x1   :  { %8123 = sst [smem:[#allocation157_spill]] %s7983_s1 }
   0x2   :  { %8124 = sst [smem:[#allocation158_spill]] %s7991_s9 }
   0x3   :  { %8125 = sst [smem:[#allocation159_spill]] %s7992_s10 }
   0x4   :  { %16 = vsyncpa [#allocation3], 0 }
   0x5   :  { %18 = vsyncpa [#allocation3 + $0x1], 0 }
   0x6   :  { %19 = vsyncpa [#allocation6], 0 }
   0x7   :  { %20 = vsyncpa [#allocation9], 0 }
   0x8   :  { %21 = vsyncpa [#allocation12], 0 }
   0x9   :  { %22 = vsyncpa [#allocation15], 0 }
   0xa   :  { %23 = vsyncpa [#allocation4], 0 }
   0xb   :  { %25 = vsyncpa [#allocation4 + $0x1], 0 }
   0xc   :  { %26 = vsyncpa [#allocation19], 0 }
   0xd   :  { %28 = vsyncpa [#allocation19 + $0x1], 0  ;;  %s5593_s13 = smov 0   ;;  %s5595_s14 = smov 0  }
   0xe   :  { %s5597_s15 = smov 0   ;;  %s5599_s16 = smov 0  }
   0xf   :  { %s5601_s17 = smov 0   ;;  %s5603_s18 = smov 0  }
  0x10   :  { %s5605_s19 = smov 0   ;;  %s5607_s20 = smov 0  }
  0x11 LB: > { %8126 = sst [smem:[#allocation32_spill]] %s5474_s13  ;;  %s4089_s21 = sadd.s32 4294967295, %s5502_s20   ;;  %s5502_s20 = sphi %s5607_s20, %s34_s20   ;;  %s5498_s19 = sphi %s5605_s19, %s8673_s19   ;;  %s5494_s18 = sphi %s5603_s18, %s8672_s18   ;;  %s5490_s17 = sphi %s5601_s17, %s8671_s17   ;;  %s5486_s16 = sphi %s5599_s16, %s8670_s16   ;;  %s5482_s15 = sphi %s5597_s15, %s8669_s15   ;;  %s5478_s14 = sphi %s5595_s14, %s8668_s14   ;;  %s5474_s13 = sphi %s5593_s13, %s8664_s13  }
  0x12   : > { %8127 = sst [smem:[#allocation33_spill]] %s5478_s14  ;;  %s4090_s22 = sadd.s32 4294967294, %s5502_s20  }
  0x13   : > { %8128 = sst [smem:[#allocation34_spill]] %s5486_s16  ;;  %s43_s23 = sadd.s32 1, %s5494_s18 }
  0x14   : > { %8129 = sst [smem:[#allocation35_spill]] %s5490_s17  ;;  %s46_s24 = sadd.s32 1, %s5498_s19 }
  0x15   : > { %p44_p0 = scmp.ge.s32.totalorder %s43_s23, 2  ;;  %s55_s25 = sadd.s32 1, %s5482_s15 }
  0x16   : > { %p62_p1 = scmp.ne.s32.totalorder %s5482_s15, %s5478_s14  ;;  %p63_p2 = scmp.eq.s32.totalorder %s5502_s20, 0 }
  0x17   : > { %s8675_s23 = smov (%p44_p0, %s43_s23), 0  ;;  %s8677_s24 = smov (!%p44_p0, %s46_s24), %s5498_s19 }
  0x18   : > { %8130 = sst [smem:[#allocation36_spill]] %s8675_s23  ;;  %s51_s26 = ssub.s32 %s5494_s18, %s8675_s23 }
  0x19   : > { %p5646_p3 = por %p63_p2, %p62_p1  ;;  %p48_p4 = scmp.ge.s32.totalorder %s8677_s24, 2 }
  0x1a   : > { %p68_p5 = scmp.ne.s32.totalorder %s5478_s14, %s5474_s13  ;;  %p5652_p6 = scmp.eq.s32.totalorder %s4089_s21, 0 }
  0x1b   : > { %s8131_s27 = scalar_select %p5646_p3, 1, 0 }
  0x1c   : > { %s8132_s28 = scalar_select %p5652_p6, 1, 0 }
  0x1d   : > { %p262_p7 = scmp.eq.s32.totalorder %s4089_s21, 3  ;;  %s8679_s24 = smov (%p48_p4, %s8677_s24), 0 }
  0x1e   : > { %8133 = sst [smem:[#allocation37_spill]] %s8132_s28  ;;  %p5660_p8 = por %p5652_p6, %p68_p5 }
  0x1f   : > { %8134 = sst [smem:[#allocation38_spill]] %s8679_s24  ;;  %p5664_p9 = por %p262_p7, %p62_p1 }
  0x20   : > { %s8135_s29 = scalar_select %p5660_p8, 1, 0 }
  0x21   : > { %s8137_s30 = scalar_select %p5664_p9, 1, 0 }
  0x22   : > { %8136 = sst [smem:[#allocation39_spill]] %s8135_s29  ;;  %s50_s11 = ssub.s32 %s5498_s19, %s8679_s24 }
  0x23   : > { %8138 = sst [smem:[#allocation40_spill]] %s8137_s30  ;;  %p268_p10 = scmp.eq.s32.totalorder %s4090_s22, 3 }
  0x24   : > { %s52_s12 = sor.u32 %s51_s26, %s50_s11  ;;  %p4091_p11 = scmp.ge.s32.totalorder %s5502_s20, 1 }
  0x25   : > { %p53_p12 = scmp.eq.s32.totalorder %s52_s12, 0  ;;  %p5671_p13 = por %p268_p10, %p68_p5 }
  0x26   : > { %p303_p0 = scmp.lt.s32.totalorder %s5502_s20, 5  ;;  %s5504_s10 = smov [#allocation5]  }
  0x27   : > { %s8139_s21 = scalar_select %p5671_p13, 1, 0 }
  0x28   : > { %s5677_s23 = scalar_select %p53_p12, %s5482_s15, %s55_s25  }
  0x29   : > { %8140 = sst [smem:[#allocation41_spill]] %s8139_s21  ;;  %p5679_p2 = pnand %p4091_p11, %p303_p0 }
  0x2a   : > { %8141 = sst [smem:[#allocation42_spill]] %s5677_s23  ;;  %s315_s9 = sshll.u32 %s5504_s10, 4  ;;  %s5685_s9 = int_to_ptr.vmem [resolvable:$true] %s315_s9 }
  0x2b   : > { %s8142_s13 = scalar_select %p5679_p2, 1, 0 }
  0x2c   : > { %p4994_p1 = pneg %p5679_p2  ;;  %s5505_s26 = smov [#allocation8]  }
  0x2d   : > { %s339_s25 = sshll.u32 %s5505_s26, 4  ;;  %s5506_s11 = smov [#allocation11]   ;;  %s5693_s25 = int_to_ptr.vmem [resolvable:$true] %s339_s25 }
  0x2e   : > { %p5689_p4 = pnand %p4994_p1, %p5652_p6  ;;  %s5695_s12 = sshll.u32 %s5506_s11, 4  ;;  %s366_s12 = int_to_ptr.vmem [resolvable:$true] %s5695_s12 }
  0x2f   : > { %s8144_s1 = sld [smem:[#allocation157_spill]] }
  0x30   : > { %p5705_p7 = pneg %p5689_p4 }
  0x35   : > { %s5160_s10 = scalar_lea.hbm %s8144_s1, 4096 }
  0x36   : > { %p5161_p5 = scmp.ne.s32.totalorder %s8144_s1, %s5160_s10  ;;  %p5167_p12 = scmp.lt.u32.totalorder %s5160_s10, %s8144_s1 }
  0x38   : > { %p5163_p10 = pnand %p5705_p7, %p5161_p5 }
  0x3a   : > { %p5164_p11 = pneg %p5163_p10 }
  0x3c   : > { %p5169_p0 = pnand %p5167_p12, %p5164_p11 }
  0x3e   : > { %5172 = shalt.err (!%p5169_p0)
}
  0x3f   : > { %s5173_s23 = scalar_lea.vmem %s5685_s9, 4096  ;;  %p5181_p6 = scmp.lt.s32.totalorder %s5685_s9, %s5685_s9 }
  0x40   : > { %p5174_p1 = scmp.ne.s32.totalorder %s5685_s9, %s5173_s23  ;;  %p5182_p8 = scmp.lt.s32.totalorder %s5173_s23, %s5173_s23 }
  0x42   : > { %p5176_p13 = pnand %p5174_p1, %p5705_p7  ;;  %p5183_p5 = por %p5182_p8, %p5181_p6 }
  0x44   : > { %p5177_p9 = pneg %p5176_p13 }
  0x46   : > { %p5184_p10 = pnand %p5183_p5, %p5177_p9 }
  0x48   : > { %5187 = shalt.err (!%p5184_p10)
}
  0x49   : > { %s5507_s24 = smov 128   ;;  %s5508_s30 = smov 8  }
  0x4a   : > { %4997 = dma.hbm_to_vmem [thread:$0]  (!%p5689_p4), %s8144_s1, 4096, %s5685_s9, [#allocation6], %s5507_s24, %s5507_s24, %s5508_s30  }
  0x4b   : > { %s5188_s23 = scalar_lea.hbm %s7985_s3, 4096 }
  0x4c   : > { %p5189_p6 = scmp.ne.s32.totalorder %s7985_s3, %s5188_s23  ;;  %p5195_p13 = scmp.lt.u32.totalorder %s5188_s23, %s7985_s3 }
  0x4e   : > { %p5191_p8 = pnand %p5189_p6, %p5705_p7 }
  0x50   : > { %p5192_p9 = pneg %p5191_p8 }
  0x52   : > { %p5197_p11 = pnand %p5195_p13, %p5192_p9 }
  0x54   : > { %5200 = shalt.err (!%p5197_p11)
}
  0x55   : > { %s5201_s9 = scalar_lea.vmem %s5693_s25, 4096  ;;  %p5209_p5 = scmp.lt.s32.totalorder %s5693_s25, %s5693_s25 }
  0x56   : > { %p5202_p12 = scmp.ne.s32.totalorder %s5693_s25, %s5201_s9  ;;  %p5210_p10 = scmp.lt.s32.totalorder %s5201_s9, %s5201_s9 }
  0x58   : > { %p5204_p0 = pnand %p5202_p12, %p5705_p7  ;;  %p5211_p6 = por %p5210_p10, %p5209_p5 }
  0x5a   : > { %p5205_p1 = pneg %p5204_p0 }
  0x5c   : > { %p5212_p8 = pnand %p5211_p6, %p5205_p1 }
  0x5e   : > { %5215 = shalt.err (!%p5212_p8)
}
  0x5f   : > { %5003 = dma.hbm_to_vmem [thread:$0]  (!%p5689_p4), %s7985_s3, 4096, %s5693_s25, [#allocation9], %s5507_s24, %s5507_s24, %s5508_s30  }
  0x60   : > { %s5216_s21 = scalar_lea.hbm %s7987_s5, 512 }
  0x61   : > { %p5217_p9 = scmp.ne.s32.totalorder %s7987_s5, %s5216_s21  ;;  %p5223_p12 = scmp.lt.u32.totalorder %s5216_s21, %s7987_s5 }
  0x63   : > { %p5219_p13 = pnand %p5217_p9, %p5705_p7 }
  0x65   : > { %p5220_p11 = pneg %p5219_p13 }
  0x67   : > { %p5225_p0 = pnand %p5223_p12, %p5220_p11 }
  0x69   : > { %5228 = shalt.err (!%p5225_p0)
}
  0x6a   : > { %s5229_s9 = scalar_lea.vmem %s366_s12, 512  ;;  %p5237_p6 = scmp.lt.s32.totalorder %s366_s12, %s366_s12 }
  0x6b   : > { %p5230_p1 = scmp.ne.s32.totalorder %s366_s12, %s5229_s9  ;;  %p5238_p8 = scmp.lt.s32.totalorder %s5229_s9, %s5229_s9 }
  0x6d   : > { %p5232_p5 = pnand %p5230_p1, %p5705_p7  ;;  %p5239_p2 = por %p5238_p8, %p5237_p6 }
  0x6f   : > { %p5233_p10 = pneg %p5232_p5 }
  0x71   : > { %p5240_p3 = pnand %p5239_p2, %p5233_p10 }
  0x73   : > { %5243 = shalt.err (!%p5240_p3)
}
  0x74   : > { %5009 = dma.hbm_to_vmem [thread:$0]  (!%p5689_p4), %s7987_s5, 512, %s366_s12, [#allocation12], %s5507_s24, %s5507_s24, %s5508_s30  }
  0x75   : > { %s5509_s17 = smov [#allocation14]   ;;  %s5510_s29 = smov [#allocation7]  }
  0x76   : > { %s392_s28 = sshll.u32 %s5509_s17, 4  ;;  %s329_s21 = sshll.u32 %s5510_s29, 4  ;;  %s393_s28 = int_to_ptr.vmem [resolvable:$true] %s392_s28  ;;  %s330_s21 = int_to_ptr.vmem [resolvable:$true] %s329_s21 }
  0x77   : > { %s5244_s11 = scalar_lea.hbm %s7989_s7, 128 }
  0x78   : > { %p5245_p3 = scmp.ne.s32.totalorder %s7989_s7, %s5244_s11  ;;  %p5251_p13 = scmp.lt.u32.totalorder %s5244_s11, %s7989_s7 }
  0x7a   : > { %p5247_p2 = pnand %p5245_p3, %p5705_p7 }
  0x7c   : > { %p5248_p9 = pneg %p5247_p2 }
  0x7e   : > { %p5253_p11 = pnand %p5251_p13, %p5248_p9 }
  0x80   : > { %5256 = shalt.err (!%p5253_p11)
}
  0x81   : > { %s5257_s12 = scalar_lea.vmem %s393_s28, 128  ;;  %p5265_p5 = scmp.lt.s32.totalorder %s393_s28, %s393_s28 }
  0x82   : > { %p5258_p12 = scmp.ne.s32.totalorder %s393_s28, %s5257_s12  ;;  %p5266_p10 = scmp.lt.s32.totalorder %s5257_s12, %s5257_s12 }
  0x84   : > { %p5260_p0 = pnand %p5258_p12, %p5705_p7  ;;  %p5267_p6 = por %p5266_p10, %p5265_p5 }
  0x86   : > { %p5261_p1 = pneg %p5260_p0 }
  0x88   : > { %p5268_p8 = pnand %p5267_p6, %p5261_p1 }
  0x8a   : > { %5271 = shalt.err (!%p5268_p8)
}
  0x8b   : > { %5015 = dma.hbm_to_vmem [thread:$0]  (!%p5689_p4), %s7989_s7, 128, %s393_s28, [#allocation15]  }
  0x8c   : > { %s5272_s10 = scalar_lea.hbm %s7984_s2, 128 }
  0x8d   : > { %p5273_p3 = scmp.ne.s32.totalorder %s7984_s2, %s5272_s10  ;;  %p5279_p13 = scmp.lt.u32.totalorder %s5272_s10, %s7984_s2 }
  0x8f   : > { %p5275_p2 = pnand %p5273_p3, %p5705_p7 }
  0x91   : > { %p5276_p9 = pneg %p5275_p2 }
  0x93   : > { %p5281_p11 = pnand %p5279_p13, %p5276_p9 }
  0x95   : > { %5284 = shalt.err (!%p5281_p11)
}
  0x96   : > { %s5285_s25 = scalar_lea.vmem %s330_s21, 128  ;;  %p5293_p5 = scmp.lt.s32.totalorder %s330_s21, %s330_s21 }
  0x97   : > { %p5286_p12 = scmp.ne.s32.totalorder %s330_s21, %s5285_s25  ;;  %p5294_p10 = scmp.lt.s32.totalorder %s5285_s25, %s5285_s25 }
  0x99   : > { %p5288_p0 = pnand %p5286_p12, %p5705_p7  ;;  %p5295_p6 = por %p5294_p10, %p5293_p5 }
  0x9b   : > { %p5289_p1 = pneg %p5288_p0 }
  0x9d   : > { %p5296_p8 = pnand %p5295_p6, %p5289_p1 }
  0x9f   : > { %5299 = shalt.err (!%p5296_p8)
}
  0xa0   : > { %5000 = dma.hbm_to_vmem [thread:$0]  (!%p5689_p4), %s7984_s2, 128, %s330_s21, [#allocation6]  }
  0xa1   : > { %s5511_s14 = smov [#allocation10]   ;;  %s5512_s1 = smov [#allocation13]  }
  0xa2   : > { %s352_s17 = sshll.u32 %s5511_s14, 4  ;;  %s378_s29 = sshll.u32 %s5512_s1, 4  ;;  %s353_s17 = int_to_ptr.vmem [resolvable:$true] %s352_s17  ;;  %s379_s29 = int_to_ptr.vmem [resolvable:$true] %s378_s29 }
  0xa3   : > { %s5300_s11 = scalar_lea.hbm %s7986_s4, 512 }
  0xa4   : > { %p5301_p3 = scmp.ne.s32.totalorder %s7986_s4, %s5300_s11  ;;  %p5307_p13 = scmp.lt.u32.totalorder %s5300_s11, %s7986_s4 }
  0xa6   : > { %p5303_p2 = pnand %p5301_p3, %p5705_p7 }
  0xa8   : > { %p5304_p9 = pneg %p5303_p2 }
  0xaa   : > { %p5309_p11 = pnand %p5307_p13, %p5304_p9 }
  0xac   : > { %5312 = shalt.err (!%p5309_p11)
}
  0xad   : > { %s5313_s21 = scalar_lea.vmem %s353_s17, 512  ;;  %p5321_p5 = scmp.lt.s32.totalorder %s353_s17, %s353_s17 }
  0xae   : > { %p5314_p12 = scmp.ne.s32.totalorder %s353_s17, %s5313_s21  ;;  %p5322_p10 = scmp.lt.s32.totalorder %s5313_s21, %s5313_s21 }
  0xb0   : > { %p5316_p0 = pnand %p5314_p12, %p5705_p7  ;;  %p5323_p6 = por %p5322_p10, %p5321_p5 }
  0xb2   : > { %p5317_p1 = pneg %p5316_p0 }
  0xb4   : > { %p5324_p8 = pnand %p5323_p6, %p5317_p1 }
  0xb6   : > { %5327 = shalt.err (!%p5324_p8)
}
  0xb7   : > { %5006 = dma.hbm_to_vmem [thread:$0]  (!%p5689_p4), %s7986_s4, 512, %s353_s17, [#allocation9], %s5507_s24, %s5507_s24, %s5508_s30  }
  0xb8   : > { %s5328_s26 = scalar_lea.hbm %s7988_s6, 512 }
  0xb9   : > { %p5329_p3 = scmp.ne.s32.totalorder %s7988_s6, %s5328_s26  ;;  %p5335_p13 = scmp.lt.u32.totalorder %s5328_s26, %s7988_s6 }
  0xbb   : > { %p5331_p2 = pnand %p5329_p3, %p5705_p7 }
  0xbd   : > { %p5332_p9 = pneg %p5331_p2 }
  0xbf   : > { %p5337_p11 = pnand %p5335_p13, %p5332_p9 }
  0xc1   : > { %5340 = shalt.err (!%p5337_p11)
}
  0xc2   : > { %s5341_s28 = scalar_lea.vmem %s379_s29, 512  ;;  %p5349_p5 = scmp.lt.s32.totalorder %s379_s29, %s379_s29 }
  0xc3   : > { %p5342_p12 = scmp.ne.s32.totalorder %s379_s29, %s5341_s28  ;;  %p5350_p10 = scmp.lt.s32.totalorder %s5341_s28, %s5341_s28 }
  0xc5   : > { %p5344_p0 = pnand %p5342_p12, %p5705_p7  ;;  %p5351_p6 = por %p5350_p10, %p5349_p5 }
  0xc7   : > { %p5345_p1 = pneg %p5344_p0 }
  0xc9   : > { %p5352_p8 = pnand %p5351_p6, %p5345_p1 }
  0xcb   : > { %5355 = shalt.err (!%p5352_p8)
}
  0xcc   : > { %5012 = dma.hbm_to_vmem [thread:$0]  (!%p5689_p4), %s7988_s6, 512, %s379_s29, [#allocation12], %s5507_s24, %s5507_s24, %s5508_s30  }
  0xcd   : > { %s5513_s12 = smov [#allocation16]   ;;  %s5356_s26 = scalar_lea.hbm %s7990_s8, 128 }
  0xce   : > { %s403_s14 = sshll.u32 %s5513_s12, 4  ;;  %p5357_p3 = scmp.ne.s32.totalorder %s7990_s8, %s5356_s26  ;;  %s404_s14 = int_to_ptr.vmem [resolvable:$true] %s403_s14 }
  0xcf   : > { %p5363_p13 = scmp.lt.u32.totalorder %s5356_s26, %s7990_s8 }
  0xd0   : > { %p5359_p2 = pnand %p5357_p3, %p5705_p7 }
  0xd2   : > { %p5360_p9 = pneg %p5359_p2 }
  0xd4   : > { %p5365_p11 = pnand %p5363_p13, %p5360_p9 }
  0xd6   : > { %5368 = shalt.err (!%p5365_p11)
}
  0xd7   : > { %s5369_s24 = scalar_lea.vmem %s404_s14, 128  ;;  %p5377_p5 = scmp.lt.s32.totalorder %s404_s14, %s404_s14 }
  0xd8   : > { %p5370_p12 = scmp.ne.s32.totalorder %s404_s14, %s5369_s24  ;;  %p5378_p10 = scmp.lt.s32.totalorder %s5369_s24, %s5369_s24 }
  0xda   : > { %p5372_p0 = pnand %p5370_p12, %p5705_p7  ;;  %p5379_p6 = por %p5378_p10, %p5377_p5 }
  0xdc   : > { %p5373_p1 = pneg %p5372_p0 }
  0xde   : > { %p5380_p8 = pnand %p5379_p6, %p5373_p1 }
  0xe0   : > { %5383 = shalt.err (!%p5380_p8)
}
  0xe1   : > { %5018 = dma.hbm_to_vmem [thread:$0]  (!%p5689_p4), %s7990_s8, 128, %s404_s14, [#allocation15]  }
  0xe2   : > { %p4100_p3 = scmp.ge.s32.totalorder %s5502_s20, 4 }
  0xe4   : > { %410 = sbr.rel (%p4100_p3) target bundleno = 252 (0xfc), region = 48 }
  0xeb   : > { %s414_s16 = sand.u32 1, %s5482_s15   ;;  %s4141_s17 = sshll.u32 %s5494_s18, 4 }
  0xec   : > { %s4940_s28 = smul.u32 384, %s414_s16  ;;  %s5514_s21 = smov 4096  }
  0xed   : > { %s4941_s22 = smul.u32 96, %s5498_s19  ;;  %p8146_p7 = scmp.ne.s32.totalorder %s8131_s27, 0 }
  0xee   : > { %s418_s14 = scalar_lea.vmem [#allocation2], %s4940_s28  ;;  %s5515_s26 = smov 2048  }
  0xef   : > { %4960 = sst [smem:[#allocation21]] (%p8146_p7), %s5514_s21  ;;  %s425_s12 = sadd.s32 %s4941_s22, %s4141_s17 }
  0xf0   : > { %s440_s1 = sshll.u32 %s418_s14, 4  ;;  %4961 = sst [smem:[#allocation21 + $0x1]] (%p8146_p7), %s5515_s26  ;;  %s441_s1 = int_to_ptr.vmem [resolvable:$true] %s440_s1 }
  0xf1   : > { %s4959_s10 = scalar_select %p8146_p7, [#allocation0], [#allocation24] }
  0xf2   : > { %s5516_s23 = smov 8   ;;  %s4103_s9 = sshll.u32 %s425_s12, 7 }
  0xf3   : > { %s432_s11 = sld [smem:[%s4959_s10]]   ;;  %s5517_s25 = smov 256  }
  0xf4   : > { %4962 = sst [smem:[#allocation21 + $0x2]] (%p8146_p7), %s5516_s23  ;;  %s5518_s24 = smov 16  }
  0xf5   : > { %4963 = sst [smem:[#allocation21 + $0x3]] (%p8146_p7), %s5517_s25  ;;  %s427_s28 = scalar_lea.hbm %s7982_s0, %s4103_s9 }
  0xf6   : > { %4964 = sst [smem:[#allocation21 + $0x4]] (%p8146_p7), %s5517_s25  ;;  %s415_s21 = scalar_lea.sflag [#allocation3], %s414_s16 }
  0xf7   : > { %4965 = sst [smem:[#allocation21 + $0x5]] (%p8146_p7), %s5518_s24  ;;  %s5519_s14 = smov [#allocation20]  }
  0xf9   : > { %s4104_s17 = sshll.u32 %s432_s11, 26 }
  0xfa   : > { %s4105_s22 = sadd.s32 134217728, %s4104_s17 }
  0xfb   : > { %4966 = dma.general (%p8146_p7), %s427_s28, 6144, %s441_s1, %s415_s21, %s5519_s14, [#allocation21], %s4105_s22, 0  }
  0xfc PF: > { %p8147_p4 = scmp.ne.s32.totalorder %s8142_s13, 0 }
  0xfe   : > { %465 = sbr.rel (%p8147_p4) target bundleno = 1737 (0x6c9), region = 56 }
 0x105   : > { %s8148_s12 = sld [smem:[#allocation33_spill]] }
 0x106   : > { %s8149_s10 = sld [smem:[#allocation39_spill]] }
 0x10b   : > { %s5899_s26 = sand.u32 1, %s8148_s12  }
 0x10c   : > { %s4942_s23 = smul.u32 384, %s5899_s26  ;;  %s468_s25 = scalar_lea.sflag [#allocation3], %s5899_s26 }
 0x10d   : > { %p8150_p2 = scmp.ne.s32.totalorder %s8149_s10, 0 }
 0x10e   : > { %s5903_s24 = scalar_lea.vmem [#allocation2], %s4942_s23 }
 0x10f   : > { %5445 = dma.done.wait (%p8150_p2), %s468_s25, 6144  }
 0x110   : > { %5447 = vsyncadd (%p8150_p2), %s468_s25, 4294961152  ;;  %s8151_s27 = sld [smem:[#allocation37_spill]] }
 0x116   : > { %p8152_p9 = scmp.ne.s32.totalorder %s8151_s27, 0 }
 0x118   : > { %5449 = dma.done.wait (%p8152_p9), [#allocation6], 4224  }
 0x119   : > { %5451 = vsyncadd (%p8152_p9), [#allocation6], 4294963072 }
 0x11a   : > { %5453 = dma.done.wait (%p8152_p9), [#allocation9], 4608  }
 0x11b   : > { %5455 = vsyncadd (%p8152_p9), [#allocation9], 4294962688 }
 0x11c   : > { %5457 = dma.done.wait (%p8152_p9), [#allocation12], 1024  }
 0x11d   : > { %5459 = vsyncadd (%p8152_p9), [#allocation12], 4294966272 }
 0x11e   : > { %5461 = dma.done.wait (%p8152_p9), [#allocation15], 256  }
 0x11f   : > { %5463 = vsyncadd (%p8152_p9), [#allocation15], 4294967040  ;;  %v8013_v0 = vmov 1   ;;  %v616_v1 = vld [vmem:[#allocation5 + $0x80] sm:$0xff]  ;;  %v617_v2 = vld [vmem:[#allocation5 + $0x88] sm:$0xff]  ;;  %v1058_v20 = vlaneseq  ;;  %vm5524_vm0 = vmmov 0  }
 0x120   : > { %5141 = vset.pattern.permute.xlu0 %v8013_v0  ;;  %v600_v3 = vld [vmem:[#allocation5] sm:$0xff]  ;;  %v5926_v4 = vpack.c.bf16 %v617_v2, %v616_v1  ;;  %v601_v5 = vld [vmem:[#allocation5 + $0x8] sm:$0xff]  ;;  %v618_v6 = vld [vmem:[#allocation5 + $0x90] sm:$0xff]  ;;  %v5521_v18 = vmov 1966171168   ;;  %vm738_vm1 = vcmask 523264  }
 0x121   : > { %v619_v7 = vld [vmem:[#allocation5 + $0x98] sm:$0xff]  ;;  %v5928_v8 = vpack.c.bf16 %v601_v5, %v600_v3  ;;  %v602_v10 = vld [vmem:[#allocation5 + $0x10] sm:$0xff]  ;;  %v620_v12 = vld [vmem:[#allocation5 + $0xa0] sm:$0xff]  ;;  %v1056_v19 = vunpack.c.l.s4 %v5521_v18  ;;  %v1059_v28 = vshrl.u32 %v1058_v20, 7  ;;  %vm3578_vm2 = vcmask 261120   ;;  %s4115_s13 = sshll.u32 %s5899_s26, 8 }
 0x122   : > { %v5930_v9 = vpack.c.bf16 %v619_v7, %v618_v6  ;;  %v603_v11 = vld [vmem:[#allocation5 + $0x18] sm:$0xff]  ;;  %4665 = vmatprep.subr.bf16.mxu0 %v5926_v4  ;;  %v621_v13 = vld [vmem:[#allocation5 + $0xa8] sm:$0xff]  ;;  %v604_v16 = vld [vmem:[#allocation5 + $0x20] sm:$0xff]  ;;  %s7643_s16 = scalar_lea.vmem [#allocation17], %s4115_s13  ;;  %s8614_s1 = sld [smem:[#allocation35_spill]] }
 0x123   : > { %4667 = vmatpush3.bf16.msra.mxu0 %v5928_v8  ;;  %v5934_v14 = vpack.c.bf16 %v603_v11, %v602_v10  ;;  %v5937_v15 = vpack.c.bf16 %v621_v13, %v620_v12  ;;  %v605_v17 = vld [vmem:[#allocation5 + $0x28] sm:$0xff]  ;;  %v622_v21 = vld [vmem:[#allocation5 + $0xb0] sm:$0xff]  ;;  %v623_v22 = vld [vmem:[#allocation5 + $0xb8] sm:$0xff]  ;;  %v1057_v27 = vunpack.c.0.s8 %v1056_v19  ;;  %v5964_v45 = vsub.s32 0, %v1059_v28  ;;  %s8615_s11 = sld [smem:[#allocation34_spill]]  ;;  %s8616_s9 = sld [smem:[#allocation40_spill]] }
 0x124   : > { %4669 = vmatprep.subr.bf16.mxu0 %v5930_v9  ;;  %v5940_v23 = vpack.c.bf16 %v605_v17, %v604_v16  ;;  %v5943_v24 = vpack.c.bf16 %v623_v22, %v622_v21  ;;  %v606_v25 = vld [vmem:[#allocation5 + $0x30] sm:$0xff]  ;;  %v607_v26 = vld [vmem:[#allocation5 + $0x38] sm:$0xff]  ;;  %v624_v29 = vld [vmem:[#allocation5 + $0xc0] sm:$0xff]  ;;  %s3842_s29 = sshll.u32 %s7643_s16, 4  ;;  %s8617_s14 = sld [smem:[#allocation158_spill]]  ;;  %s7733_s29 = int_to_ptr.vmem [resolvable:$true] %s3842_s29 }
 0x125   : > { %v625_v30 = vld [vmem:[#allocation5 + $0xc8] sm:$0xff]  ;;  %v5950_v32 = vpack.c.bf16 %v607_v26, %v606_v25  ;;  %v608_v34 = vld [vmem:[#allocation5 + $0x40] sm:$0xff]  ;;  %v5955_v36 = vsub.s32 %v1057_v27, %v1059_v28  ;;  %v626_v37 = vld [vmem:[#allocation5 + $0xd0] sm:$0xff]  ;;  %8157 = vst [vmem:[#allocation47_spill] sm:$0xff] %v5964_v45  ;;  %s3823_s23 = scalar_lea.sflag [#allocation4], %s5899_s26  ;;  %s5384_s25 = scalar_lea.vmem %s7733_s29, 4096 }
 0x126   : > { %v5946_v31 = vld [vmem:[%s5903_s24 + $0x8] sm:$0xff]  ;;  %v5953_v33 = vpack.c.bf16 %v625_v30, %v624_v29  ;;  %v627_v38 = vld [vmem:[#allocation5 + $0xd8] sm:$0xff]  ;;  %v610_v42 = vld [vmem:[#allocation5 + $0x50] sm:$0xff]  ;;  %p5385_p13 = scmp.ne.s32.totalorder %s7733_s29, %s5384_s25 }
 0x127   : > { %4671 = vmatpush3.bf16.msra.mxu0 %v5934_v14  ;;  %696 = vmatprep.mubr.f32.mxu0 %v5946_v31  ;;  %v609_v35 = vld [vmem:[#allocation5 + $0x48] sm:$0xff]  ;;  %8154 = vst [vmem:[#allocation44_spill] sm:$0xff] %v5955_v36  ;;  %v5961_v41 = vpack.c.bf16 %v627_v38, %v626_v37  ;;  %v611_v43 = vld [vmem:[#allocation5 + $0x58] sm:$0xff]  ;;  %v628_v47 = vld [vmem:[#allocation5 + $0xe0] sm:$0xff] }
 0x128   : > { %4673 = vmatprep.subr.bf16.mxu0 %v5937_v15  ;;  %8153 = vst [vmem:[#allocation43_spill] sm:$0xff] %v5953_v33  ;;  %v5958_v39 = vpack.c.bf16 %v609_v35, %v608_v34  ;;  %v595_v40 = vld [vmem:[#allocation11] sm:$0xff]  ;;  %v5973_v52 = vpack.c.bf16 %v611_v43, %v610_v42  ;;  %v596_v53 = vld [vmem:[#allocation11 + $0x8] sm:$0xff]  ;;  %v612_v55 = vld [vmem:[#allocation5 + $0x60] sm:$0xff]  ;;  %s4134_s30 = sshll.u32 %s8614_s1, 6 }
 0x129   : > { %8156 = vst [vmem:[#allocation46_spill] sm:$0xff] %v5961_v41  ;;  %v1061_v44 = vrot.slane %v595_v40, %v5955_v36  ;;  %v1054_v46 = vcombine.high %v595_v40, %v595_v40  ;;  %v629_v48 = vld [vmem:[#allocation5 + $0xe8] sm:$0xff]  ;;  %v630_v60 = vld [vmem:[#allocation5 + $0xf0] sm:$0xff]  ;;  %v631_v61 = vld [vmem:[#allocation5 + $0xf8] sm:$0xff]  ;;  %v5992_v1 = vrot.slane %v596_v53, %v5955_v36  ;;  %v1103_v13 = vcombine.high %v596_v53, %v596_v53  ;;  %s3839_s28 = sadd.s32 %s8615_s11, %s4134_s30  ;;  %p8619_p11 = scmp.ne.s32.totalorder %s8616_s9, 0 }
 0x12a   : > { %8155 = vst [vmem:[#allocation45_spill] sm:$0xff] %v5958_v39  ;;  %8158 = vst [vmem:[#allocation48_spill] sm:$0xff] %v5973_v52  ;;  %v5976_v54 = vpack.c.bf16 %v629_v48, %v628_v47  ;;  %v613_v56 = vld [vmem:[#allocation5 + $0x68] sm:$0xff]  ;;  %v5998_v3 = vpack.c.bf16 %v631_v61, %v630_v60  ;;  %v614_v5 = vld [vmem:[#allocation5 + $0x70] sm:$0xff]  ;;  %s4135_s17 = sshll.u32 %s3839_s28, 7  ;;  %s8618_s12 = smov %s8617_s14 }
 0x12b   : > { %4675 = vmatpush3.bf16.msra.mxu0 %v5940_v23  ;;  %v5967_v49 = vrot.slane %v1061_v44, %v5955_v36  ;;  %v1069_v50 = vcombine.high %v1061_v44, %v1061_v44  ;;  %v5970_v51 = vrot.slane %v1054_v46, %v5955_v36  ;;  %v5995_v2 = vpack.c.bf16 %v613_v56, %v612_v55  ;;  %v615_v6 = vld [vmem:[#allocation5 + $0x78] sm:$0xff]  ;;  %v6023_v20 = vld [vmem:[%s5903_s24] sm:$0xff]  ;;  %v6037_v27 = vld [vmem:[%s5903_s24 + $0x10] sm:$0xff]  ;;  %s7738_s10 = scalar_lea.hbm %s8617_s14, %s4135_s17  ;;  %p5386_p12 = pnand %p5385_p13, %p8619_p11 }
 0x12c   : > { %4677 = vmatprep.subr.bf16.mxu0 %v5943_v24  ;;  %8159 = vst [vmem:[#allocation49_spill] sm:$0xff] %v5976_v54  ;;  %8161 = vst [vmem:[#allocation51_spill] sm:$0xff] %v5998_v3  ;;  %v1118_v12 = vcombine.high %v5992_v1, %v5992_v1  ;;  %v6010_v16 = vpack.c.bf16 %v615_v6, %v614_v5  ;;  %v6019_v19 = vrot.slane %v1103_v13, %v5955_v36  ;;  %v6026_v21 = vld [vmem:[%s5903_s24 + $0x18] sm:$0xff]  ;;  %v6040_v29 = vld [vmem:[%s5903_s24 + $0x28] sm:$0xff] }
 0x12d   : > { %v5980_v57 = vrot.slane %v5967_v49, %v5964_v45  ;;  %v5983_v58 = vrot.slane %v1069_v50, %v5955_v36  ;;  %v1070_v59 = vcombine.high %v5970_v51, %v5970_v51  ;;  %8160 = vst [vmem:[#allocation50_spill] sm:$0xff] %v5995_v2  ;;  %v597_v28 = vld [vmem:[#allocation11 + $0x10] sm:$0xff]  ;;  %v6053_v37 = vld [vmem:[%s5903_s24 + $0x20] sm:$0xff]  ;;  %v6067_v46 = vld [vmem:[%s5903_s24 + $0x30] sm:$0xff]  ;;  %p5387_p0 = pneg %p5386_p12 }
 0x12e   : > { %8162 = vst [vmem:[#allocation52_spill] sm:$0xff] %v6010_v16  ;;  %v1140_v18 = vrot.slane %v1118_v12, %v5955_v36  ;;  %v1119_v26 = vcombine.high %v6019_v19, %v6019_v19  ;;  %v6049_v35 = vrot.slane %v597_v28, %v5955_v36  ;;  %v6056_v38 = vld [vmem:[%s5903_s24 + $0x38] sm:$0xff]  ;;  %v1152_v40 = vcombine.high %v597_v28, %v597_v28  ;;  %v6070_v47 = vld [vmem:[%s5903_s24 + $0x48] sm:$0xff]  ;;  %v6083_v55 = vld [vmem:[%s5903_s24 + $0x40] sm:$0xff] }
 0x12f   : > { %4679 = vmatpush3.bf16.msra.mxu0 %v5950_v32  ;;  %2114 = vperm.xlu0 %5141, %v5980_v57   ;;  %v1101_v62 = vcombine.high %v5983_v58, %v5983_v58  ;;  %v1098_v63 = vrot.slane %v1070_v59, %v5955_v36  ;;  %8163 = vst [vmem:[#allocation53_spill] sm:$0xff] %v6070_v47  ;;  %8164 = vst [vmem:[#allocation54_spill] sm:$0xff] %v6083_v55  ;;  %v6086_v56 = vld [vmem:[%s5903_s24 + $0x58] sm:$0xff]  ;;  %v6100_v5 = vld [vmem:[%s5903_s24 + $0x68] sm:$0xff] }
 0x130   : > { %4681 = vmatprep.subr.bf16.mxu0 %v5953_v33  ;;  %v6031_v22 = vrot.slane %v1140_v18, %v5964_v45  ;;  %v1150_v25 = vcombine.high %v1140_v18, %v1140_v18  ;;  %v1147_v34 = vrot.slane %v1119_v26, %v5955_v36  ;;  %v1167_v44 = vcombine.high %v6049_v35, %v6049_v35  ;;  %v6113_v13 = vld [vmem:[%s5903_s24 + $0x60] sm:$0xff]  ;;  %v6116_v18 = vld [vmem:[%s5903_s24 + $0x78] sm:$0xff] }
 0x131   : > { %v6001_v7 = vrot.slane %v1101_v62, %v5964_v45  ;;  %v6005_v10 = vrot.slane %v1098_v63, %v5964_v45  ;;  %v1102_v11 = vcombine.high %v1098_v63, %v1098_v63  ;;  %v6079_v53 = vrot.slane %v1152_v40, %v5955_v36  ;;  %8165 = vst [vmem:[#allocation55_spill] sm:$0xff] %v6086_v56  ;;  %v6097_v62 = vld [vmem:[%s5903_s24 + $0x50] sm:$0xff]  ;;  %v598_v63 = vld [vmem:[#allocation11 + $0x18] sm:$0xff] }
 0x132   : > { %v6045_v30 = vrot.slane %v1150_v25, %v5964_v45  ;;  %v6061_v42 = vrot.slane %v1147_v34, %v5964_v45  ;;  %v1151_v43 = vcombine.high %v1147_v34, %v1147_v34  ;;  %v1189_v50 = vrot.slane %v1167_v44, %v5955_v36  ;;  %8166 = vst [vmem:[#allocation56_spill] sm:$0xff] %v6097_v62  ;;  %v6127_v40 = vld [vmem:[%s5903_s24 + $0x70] sm:$0xff] }
 0x133   : > { %4683 = vmatpush3.bf16.msra.mxu0 %v5958_v39  ;;  %2126 = vperm.xlu0 %5141, %v6001_v7   ;;  %v6015_v17 = vrot.slane %v1102_v11, %v5964_v45  ;;  %v1168_v61 = vcombine.high %v6079_v53, %v6079_v53  ;;  %8167 = vst [vmem:[#allocation57_spill] sm:$0xff] %v6100_v5  ;;  %8168 = vst [vmem:[#allocation58_spill] sm:$0xff] %v6113_v13 }
 0x134   : > { %4685 = vmatprep.subr.bf16.mxu0 %v5961_v41  ;;  %v6075_v48 = vrot.slane %v1151_v43, %v5964_v45  ;;  %v6091_v59 = vrot.slane %v1189_v50, %v5964_v45  ;;  %v1199_v60 = vcombine.high %v1189_v50, %v1189_v50  ;;  %v6109_v12 = vrot.slane %v598_v63, %v5955_v36 }
 0x135   : > { %v1196_v11 = vrot.slane %v1168_v61, %v5955_v36  ;;  %8169 = vst [vmem:[#allocation59_spill] sm:$0xff] %v6116_v18  ;;  %v1201_v25 = vcombine.high %v598_v63, %v598_v63  ;;  %8170 = vst [vmem:[#allocation60_spill] sm:$0xff] %v6127_v40 }
 0x136   : > { %v6105_v6 = vrot.slane %v1199_v60, %v5964_v45  ;;  %v1216_v34 = vcombine.high %v6109_v12, %v6109_v12 }
 0x137   : > { %4687 = vmatpush3.bf16.msra.mxu0 %v5973_v52  ;;  %2134 = vperm.xlu0 %5141, %v6005_v10   ;;  %v6121_v26 = vrot.slane %v1196_v11, %v5964_v45  ;;  %v1200_v28 = vcombine.high %v1196_v11, %v1196_v11  ;;  %v6136_v50 = vrot.slane %v1201_v25, %v5955_v36  ;;  %v599_v11 = vld [vmem:[#allocation14] sm:$0xff] }
 0x138   : > { %4689 = vmatprep.subr.bf16.mxu0 %v5976_v54  ;;  %v1238_v44 = vrot.slane %v1216_v34, %v5955_v36  ;;  %v6150_v25 = vrot.slane %v599_v11, %v5955_v36 }
 0x139   : > { %v6132_v43 = vrot.slane %v1200_v28, %v5964_v45  ;;  %v1217_v63 = vcombine.high %v6136_v50, %v6136_v50 }
 0x13a   : > { %v6140_v60 = vrot.slane %v1238_v44, %v5964_v45  ;;  %v1248_v61 = vcombine.high %v1238_v44, %v1238_v44 }
 0x13b   : > { %4691 = vmatpush3.bf16.msra.mxu0 %v5995_v2  ;;  %2142 = vperm.xlu0 %5141, %v6015_v17   ;;  %v1245_v34 = vrot.slane %v1217_v63, %v5955_v36 }
 0x13c   : > { %4693 = vmatprep.subr.bf16.mxu0 %v5998_v3  ;;  %v6146_v28 = vrot.slane %v1248_v61, %v5964_v45 }
 0x13d   : > { %v6154_v0 = vrot.slane %v1245_v34, %v5964_v45  ;;  %v1249_v44 = vcombine.high %v1245_v34, %v1245_v34 }
 0x13e   : > { %8171 = vst [vmem:[#allocation61_spill] sm:$0xff] %v6146_v28 }
 0x13f   : > { %4695 = vmatpush3.bf16.msra.mxu0 %v6010_v16  ;;  %2150 = vperm.xlu0 %5141, %v6031_v22   ;;  %8172 = vst [vmem:[#allocation62_spill] sm:$0xff] %v6154_v0  ;;  %v1586_v16 = vcombine.high %v6150_v25, %v6150_v25  ;;  %v6160_v61 = vrot.slane %v1249_v44, %v5964_v45 }
 0x141   : > { %8173 = vst [vmem:[#allocation63_spill] sm:$0xff] %v6160_v61  ;;  %v1608_v63 = vrot.slane %v1586_v16, %v5955_v36 }
 0x142   : > { %697 = vmatmul.mubr.f32.vlgmr.msra.gmra.mrb[0].mxu0 %v6023_v20 }
 0x143   : > { %701 = vmatprep.mubr.f32.mxu0 %v6026_v21  ;;  %2158 = vperm.xlu0 %5141, %v6045_v30   ;;  %v1618_v34 = vcombine.high %v1608_v63, %v1608_v63 }
 0x146   : > { %702 = vmatmul.mubr.f32.gmra.mrb[2].mxu0 %v6037_v27 }
 0x147   : > { %706 = vmatprep.mubr.f32.mxu0 %v6040_v29  ;;  %2166 = vperm.xlu0 %5141, %v6061_v42  }
 0x14a   : > { %707 = vmatmul.mubr.f32.gmra.mrb[4].mxu0 %v6053_v37 }
 0x14b   : > { %711 = vmatprep.mubr.f32.mxu0 %v6056_v38  ;;  %2174 = vperm.xlu0 %5141, %v6075_v48  }
 0x14e   : > { %712 = vmatmul.mubr.f32.gmra.mrb[6].mxu0 %v6067_v46 }
 0x14f   : > { %716 = vmatprep.mubr.f32.mxu0 %v6070_v47  ;;  %2182 = vperm.xlu0 %5141, %v6091_v59   ;;  %v8043_v47 = vmov 0  }
 0x150   : > { %5140 = vset.pattern.permute.xlu1 %v8043_v47 }
 0x152   : > { %717 = vmatmul.mubr.f32.gmra.mrb[8].mxu0 %v6083_v55 }
 0x153   : > { %721 = vmatprep.mubr.f32.mxu0 %v6086_v56  ;;  %2190 = vperm.xlu0 %5141, %v6105_v6  }
 0x156   : > { %722 = vmatmul.mubr.f32.gmra.mrb[10].mxu0 %v6097_v62 }
 0x157   : > { %726 = vmatprep.mubr.f32.mxu0 %v6100_v5  ;;  %2198 = vperm.xlu0 %5141, %v6121_v26  }
 0x15a   : > { %727 = vmatmul.mubr.f32.gmra.mrb[12].mxu0 %v6113_v13  ;;  %v6188_v13 = vrot.slane %v5983_v58, %v5964_v45  ;;  %v1126_v58 = vrot.slane %v5992_v1, %v5955_v36 }
 0x15b   : > { %731 = vmatprep.mubr.f32.mxu0 %v6116_v18  ;;  %2206 = vperm.xlu0 %5141, %v6132_v43   ;;  %v6168_v18 = vrot.slane %v1608_v63, %v5964_v45 }
 0x15d   : > { %8174 = vst [vmem:[#allocation64_spill] sm:$0xff] %v6168_v18 }
 0x15e   : > { %732 = vmatmul.mubr.f32.gmra.mrb[14].mxu0 %v6127_v40  ;;  %v1571_v40 = vcombine.high %v599_v11, %v599_v11  ;;  %v6174_v11 = vrot.slane %v1618_v34, %v5964_v45  ;;  %v8025_v34 = vmov 2  }
 0x15f   : > { %2214 = vperm.xlu0 %5141, %v6140_v60  }
 0x160   : > { %v6164_v3 = vrot.slane %v1571_v40, %v5955_v36  ;;  %8175 = vst [vmem:[#allocation65_spill] sm:$0xff] %v6174_v11 }
 0x162   : > { %v1587_v2 = vcombine.high %v6164_v3, %v6164_v3 }
 0x163   : > { %2222 = vperm.xlu0 %5141, %v6146_v28  }
 0x164   : > { %v1615_v44 = vrot.slane %v1587_v2, %v5955_v36  ;;  %v1084_v2 = vrot.slane %v5970_v51, %v5955_v36  ;;  %v6205_v51 = vrot.slane %v1126_v58, %v5964_v45 }
 0x166   : > { %v6179_v16 = vrot.slane %v1615_v44, %v5964_v45  ;;  %v1619_v40 = vcombine.high %v1615_v44, %v1615_v44  ;;  %v6195_v44 = vrot.slane %v1084_v2, %v5964_v45  ;;  %v1100_v54 = vcombine.high %v1084_v2, %v1084_v2 }
 0x167   : > { %2230 = vperm.xlu0 %5141, %v6154_v0   ;;  %v1133_v2 = vrot.slane %v6019_v19, %v5955_v36 }
 0x168   : > { %8176 = vst [vmem:[#allocation66_spill] sm:$0xff] %v6179_v16  ;;  %v6183_v63 = vrot.slane %v1619_v40, %v5964_v45  ;;  %v6199_v40 = vrot.slane %v1100_v54, %v5964_v45 }
 0x169   : > { %v6215_v54 = vrot.slane %v1133_v2, %v5964_v45  ;;  %v1149_v1 = vcombine.high %v1133_v2, %v1133_v2 }
 0x16a   : > { %8177 = vst [vmem:[#allocation67_spill] sm:$0xff] %v6183_v63 }
 0x16b   : > { %2238 = vperm.xlu0 %5141, %v6160_v61   ;;  %v6219_v52 = vrot.slane %v1149_v1, %v5964_v45  ;;  %v1182_v1 = vrot.slane %v6079_v53, %v5955_v36 }
 0x16f   : > { %2310 = vperm.xlu0 %5141, %v6168_v18  }
 0x173   : > { %2318 = vperm.xlu0 %5141, %v6174_v11  }
 0x177   : > { %2326 = vperm.xlu0 %5141, %v6179_v16  }
 0x17b   : > { %2334 = vperm.xlu0 %5141, %v6183_v63  }
 0x17f   : > { %5144 = vset.pattern.permute.xlu0 %v8025_v34  ;;  %v1148_v34 = vcombine.high %v1126_v58, %v1126_v58  ;;  %v8030_v58 = vmov 0.0|0.0  }
 0x180   : > { %2771 = vperm.xlu0 %5144, %v6188_v13   ;;  %4696 = vmatprep.subr.bf16.mxu1 %v8030_v58  ;;  %v6236_v58 = vrot.slane %v1182_v1, %v5964_v45 }
 0x181   : > { %v6209_v5 = vrot.slane %v1148_v34, %v5964_v45  ;;  %v1175_v34 = vrot.slane %v6049_v35, %v5955_v36  ;;  %v1198_v35 = vcombine.high %v1182_v1, %v1182_v1  ;;  %v1231_v1 = vrot.slane %v6136_v50, %v5955_v36 }
 0x183   : > { %v6226_v19 = vrot.slane %v1175_v34, %v5964_v45  ;;  %v1197_v62 = vcombine.high %v1175_v34, %v1175_v34  ;;  %v6240_v41 = vrot.slane %v1198_v35, %v5964_v45  ;;  %v1224_v34 = vrot.slane %v6109_v12, %v5955_v36 }
 0x184   : > { %2783 = vperm.xlu0 %5144, %v6195_v44   ;;  %v8038_v35 = vmov 0.0   ;;  %v6258_v12 = vrot.slane %v1231_v1, %v5964_v45  ;;  %v1247_v39 = vcombine.high %v1231_v1, %v1231_v1  ;;  %v1601_v1 = vrot.slane %v6164_v3, %v5955_v36 }
 0x185   : > { %v6230_v2 = vrot.slane %v1197_v62, %v5964_v45  ;;  %v6246_v62 = vrot.slane %v1224_v34, %v5964_v45  ;;  %v1246_v53 = vcombine.high %v1224_v34, %v1224_v34  ;;  %4557 = vmatprep.mubr.msk.f32.mxu1 %vm5524_vm0, %v8038_v35 }
 0x186   : > { %v6262_v34 = vrot.slane %v1247_v39, %v5964_v45  ;;  %v6278_v39 = vrot.slane %v1601_v1, %v5964_v45 }
 0x187   : > { %v6250_v56 = vrot.slane %v1246_v53, %v5964_v45  ;;  %v1594_v53 = vrot.slane %v6150_v25, %v5955_v36  ;;  %v1617_v25 = vcombine.high %v1601_v1, %v1601_v1 }
 0x188   : > { %2791 = vperm.xlu0 %5144, %v6199_v40  }
 0x189   : > { %v6268_v50 = vrot.slane %v1594_v53, %v5964_v45  ;;  %v1616_v55 = vcombine.high %v1594_v53, %v1594_v53  ;;  %v6282_v33 = vrot.slane %v1617_v25, %v5964_v45 }
 0x18b   : > { %v6272_v35 = vrot.slane %v1616_v55, %v5964_v45  ;;  %v1099_v55 = vcombine.high %v5967_v49, %v5967_v49 }
 0x18c   : > { %2799 = vperm.xlu0 %5144, %v6205_v51  }
 0x18d   : > { %v6291_v3 = vrot.slane %v1099_v55, %v5964_v45 }
 0x18f   : > { %1387 = vperm.xlu1 %5140, %v6291_v3  }
 0x190   : > { %2807 = vperm.xlu0 %5144, %v6209_v5  }
 0x193   : > { %1415 = vperm.xlu1 %5140, %v6031_v22  }
 0x194   : > { %2815 = vperm.xlu0 %5144, %v6215_v54  }
 0x197   : > { %1391 = vperm.xlu1 %5140, %v6001_v7  }
 0x198   : > { %2823 = vperm.xlu0 %5144, %v6219_v52  }
 0x19b   : > { %1399 = vperm.xlu1 %5140, %v6005_v10  }
 0x19c   : > { %2831 = vperm.xlu0 %5144, %v6226_v19  }
 0x19f   : > { %1423 = vperm.xlu1 %5140, %v6045_v30  }
 0x1a0   : > { %2839 = vperm.xlu0 %5144, %v6230_v2  }
 0x1a3   : > { %1407 = vperm.xlu1 %5140, %v6015_v17  }
 0x1a4   : > { %2847 = vperm.xlu0 %5144, %v6236_v58  }
 0x1a7   : > { %1431 = vperm.xlu1 %5140, %v6061_v42  }
 0x1a8   : > { %2855 = vperm.xlu0 %5144, %v6240_v41  }
 0x1ab   : > { %1439 = vperm.xlu1 %5140, %v6075_v48  }
 0x1ac   : > { %2863 = vperm.xlu0 %5144, %v6246_v62  }
 0x1ae   : > { %v6284_v53 = vpop.permute.xlu0 %2114 }
 0x1af   : > { %8178 = vst [vmem:[#allocation68_spill] sm:$0xff] %v6284_v53  ;;  %1447 = vperm.xlu1 %5140, %v6091_v59  }
 0x1b0   : > { %2871 = vperm.xlu0 %5144, %v6250_v56  }
 0x1b2   : > { %v6295_v1 = vpop.permute.xlu0 %2126 }
 0x1b3   : > { %8179 = vst [vmem:[#allocation69_spill] sm:$0xff] %v6295_v1  ;;  %1455 = vperm.xlu1 %5140, %v6105_v6  }
 0x1b4   : > { %2879 = vperm.xlu0 %5144, %v6258_v12  }
 0x1b6   : > { %v6300_v25 = vpop.permute.xlu0 %2134 }
 0x1b7   : > { %8180 = vst [vmem:[#allocation70_spill] sm:$0xff] %v6300_v25  ;;  %1463 = vperm.xlu1 %5140, %v6121_v26  }
 0x1b8   : > { %2887 = vperm.xlu0 %5144, %v6262_v34  }
 0x1ba   : > { %v6305_v49 = vpop.permute.xlu0 %2142 }
 0x1bb   : > { %8181 = vst [vmem:[#allocation71_spill] sm:$0xff] %v6305_v49  ;;  %1471 = vperm.xlu1 %5140, %v6132_v43  }
 0x1bc   : > { %2959 = vperm.xlu0 %5144, %v6268_v50  }
 0x1be   : > { %v6310_v55 = vpop.permute.xlu0 %2150 }
 0x1bf   : > { %8182 = vst [vmem:[#allocation72_spill] sm:$0xff] %v6310_v55  ;;  %1479 = vperm.xlu1 %5140, %v6140_v60  }
 0x1c0   : > { %2967 = vperm.xlu0 %5144, %v6272_v35  }
 0x1c3   : > { %1487 = vperm.xlu1 %5140, %v6146_v28  }
 0x1c4   : > { %2975 = vperm.xlu0 %5144, %v6278_v39  }
 0x1c7   : > { %1495 = vperm.xlu1 %5140, %v6154_v0  }
 0x1c8   : > { %2983 = vperm.xlu0 %5144, %v6282_v33  }
 0x1cb   : > { %1503 = vperm.xlu1 %5140, %v6160_v61  }
 0x1cc   : > { %5145 = vset.pattern.permute.xlu0 %v8043_v47  ;;  %v6315_v47 = vpop.permute.xlu0 %2158 }
 0x1cd   : > { %1379 = vperm.xlu0 %5145, %v5980_v57   ;;  %8183 = vst [vmem:[#allocation73_spill] sm:$0xff] %v6315_v47 }
 0x1cf   : > { %1657 = vperm.xlu1 %5140, %v6168_v18  }
 0x1d0   : > { %v6320_v45 = vpop.permute.xlu0 %2166 }
 0x1d1   : > { %1383 = vperm.xlu0 %5145, %v6188_v13   ;;  %8184 = vst [vmem:[#allocation74_spill] sm:$0xff] %v6320_v45 }
 0x1d3   : > { %1665 = vperm.xlu1 %5140, %v6174_v11  }
 0x1d4   : > { %v6325_v55 = vpop.permute.xlu0 %2174 }
 0x1d5   : > { %1395 = vperm.xlu0 %5145, %v6195_v44   ;;  %8185 = vst [vmem:[#allocation75_spill] sm:$0xff] %v6325_v55 }
 0x1d7   : > { %1673 = vperm.xlu1 %5140, %v6179_v16   ;;  %v8194_v16 = vmov 1  }
 0x1d8   : > { %v6330_v47 = vpop.permute.xlu0 %2182 }
 0x1d9   : > { %1403 = vperm.xlu0 %5145, %v6199_v40   ;;  %8186 = vst [vmem:[#allocation76_spill] sm:$0xff] %v6330_v47 }
 0x1db   : > { %1681 = vperm.xlu1 %5140, %v6183_v63  }
 0x1dc   : > { %v6335_v45 = vpop.permute.xlu0 %2190 }
 0x1dd   : > { %1411 = vperm.xlu0 %5145, %v6205_v51   ;;  %8187 = vst [vmem:[#allocation77_spill] sm:$0xff] %v6335_v45 }
 0x1df   : > { %5142 = vset.pattern.permute.xlu1 %v8194_v16 }
 0x1e0   : > { %v6340_v55 = vpop.permute.xlu0 %2198  ;;  %2118 = vperm.xlu1 %5142, %v6188_v13  }
 0x1e1   : > { %1419 = vperm.xlu0 %5145, %v6209_v5   ;;  %8188 = vst [vmem:[#allocation78_spill] sm:$0xff] %v6340_v55 }
 0x1e4   : > { %v6345_v47 = vpop.permute.xlu0 %2206  ;;  %2122 = vperm.xlu1 %5142, %v6291_v3  }
 0x1e5   : > { %1427 = vperm.xlu0 %5145, %v6215_v54   ;;  %8189 = vst [vmem:[#allocation79_spill] sm:$0xff] %v6345_v47 }
 0x1e8   : > { %v6350_v25 = vpop.permute.xlu0 %2214  ;;  %2130 = vperm.xlu1 %5142, %v6195_v44   ;;  %v813_v44 = vld [vmem:[#allocation8 + $0x8] sm:$0xff] }
 0x1e9   : > { %1435 = vperm.xlu0 %5145, %v6219_v52   ;;  %8190 = vst [vmem:[#allocation80_spill] sm:$0xff] %v6350_v25 }
 0x1ec   : > { %v6355_v47 = vpop.permute.xlu0 %2222  ;;  %2138 = vperm.xlu1 %5142, %v6199_v40  }
 0x1ed   : > { %1443 = vperm.xlu0 %5145, %v6226_v19   ;;  %8191 = vst [vmem:[#allocation81_spill] sm:$0xff] %v6355_v47 }
 0x1f0   : > { %2146 = vperm.xlu1 %5142, %v6205_v51  }
 0x1f1   : > { %1451 = vperm.xlu0 %5145, %v6230_v2  }
 0x1f4   : > { %2154 = vperm.xlu1 %5142, %v6209_v5   ;;  %v834_v5 = vld [vmem:[#allocation8 + $0xb0] sm:$0xff] }
 0x1f5   : > { %1459 = vperm.xlu0 %5145, %v6236_v58  }
 0x1f8   : > { %2162 = vperm.xlu1 %5142, %v6215_v54  }
 0x1f9   : > { %1467 = vperm.xlu0 %5145, %v6240_v41  }
 0x1fc   : > { %2170 = vperm.xlu1 %5142, %v6219_v52  }
 0x1fd   : > { %1475 = vperm.xlu0 %5145, %v6246_v62  }
 0x200   : > { %2178 = vperm.xlu1 %5142, %v6226_v19  }
 0x201   : > { %1483 = vperm.xlu0 %5145, %v6250_v56  }
 0x204   : > { %2186 = vperm.xlu1 %5142, %v6230_v2  }
 0x205   : > { %1491 = vperm.xlu0 %5145, %v6258_v12  }
 0x208   : > { %2194 = vperm.xlu1 %5142, %v6236_v58  }
 0x209   : > { %1499 = vperm.xlu0 %5145, %v6262_v34  }
 0x20c   : > { %2202 = vperm.xlu1 %5142, %v6240_v41  }
 0x20d   : > { %1653 = vperm.xlu0 %5145, %v6268_v50  }
 0x210   : > { %2210 = vperm.xlu1 %5142, %v6246_v62   ;;  %v8228_v62 = vld [vmem:[#allocation46_spill] sm:$0xff] }
 0x211   : > { %1661 = vperm.xlu0 %5145, %v6272_v35  }
 0x214   : > { %2218 = vperm.xlu1 %5142, %v6250_v56   ;;  %v8227_v56 = vld [vmem:[#allocation55_spill] sm:$0xff] }
 0x215   : > { %v4174_v45 = vpop.f32.mrb[0].mxu0  ;;  %1669 = vperm.xlu0 %5145, %v6278_v39  }
 0x216   : > { %v4175_v49 = vpop.f32.mrb[1].mxu0 }
 0x217   : > { %v4176_v1 = vadd.f32 %v4175_v49, %v4174_v45  ;;  %v8192_v45 = vmov 0.0|0.0  }
 0x218   : > { %2226 = vperm.xlu1 %5142, %v6258_v12   ;;  %v8230_v12 = vld [vmem:[#allocation48_spill] sm:$0xff] }
 0x219   : > { %v4177_v55 = vpop.f32.mrb[2].mxu0  ;;  %1677 = vperm.xlu0 %5145, %v6282_v33  }
 0x21a   : > { %v4178_v53 = vpop.f32.mrb[3].mxu0 }
 0x21b   : > { %v4179_v36 = vadd.f32 %v4178_v53, %v4177_v55  ;;  %v6361_v53 = vpop.permute.xlu0 %2230 }
 0x21c   : > { %8193 = vst [vmem:[#allocation82_spill] sm:$0xff] %v6361_v53  ;;  %2234 = vperm.xlu1 %5142, %v6262_v34   ;;  %v8231_v34 = vld [vmem:[#allocation57_spill] sm:$0xff] }
 0x21d   : > { %v4180_v18 = vpop.f32.mrb[4].mxu0  ;;  %v4697_v61 = vpack.c.bf16 %v4179_v36, %v4176_v1 }
 0x21e   : > { %v4181_v0 = vpop.f32.mrb[5].mxu0 }
 0x21f   : > { %v4182_v28 = vadd.f32 %v4181_v0, %v4180_v18  ;;  %4698 = vmatpush3.bf16.msra.mxu1 %v4697_v61  ;;  %v6366_v18 = vpop.permute.xlu0 %2238 }
 0x220   : > { %4699 = vmatprep.subr.bf16.mxu1 %v8192_v45  ;;  %8195 = vst [vmem:[#allocation83_spill] sm:$0xff] %v6366_v18  ;;  %2306 = vperm.xlu1 %5142, %v6268_v50  }
 0x221   : > { %v4183_v49 = vpop.f32.mrb[6].mxu0 }
 0x222   : > { %v4184_v25 = vpop.f32.mrb[7].mxu0 }
 0x223   : > { %v4185_v55 = vadd.f32 %v4184_v25, %v4183_v49  ;;  %v6370_v13 = vpop.permute.xlu0 %2310 }
 0x224   : > { %8196 = vst [vmem:[#allocation84_spill] sm:$0xff] %v6370_v13  ;;  %2314 = vperm.xlu1 %5142, %v6272_v35   ;;  %v8232_v35 = vld [vmem:[#allocation49_spill] sm:$0xff] }
 0x225   : > { %v4700_v47 = vpack.c.bf16 %v4185_v55, %v4182_v28  ;;  %v4186_v36 = vpop.f32.mrb[8].mxu0  ;;  %v828_v55 = vld [vmem:[#allocation8 + $0x80] sm:$0xff] }
 0x226   : > { %v4187_v1 = vpop.f32.mrb[9].mxu0 }
 0x227   : > { %v4188_v0 = vadd.f32 %v4187_v1, %v4186_v36  ;;  %4701 = vmatpush3.bf16.msra.mxu1 %v4700_v47  ;;  %v829_v36 = vld [vmem:[#allocation8 + $0x88] sm:$0xff] }
 0x228   : > { %4702 = vmatprep.subr.bf16.mxu1 %v8192_v45  ;;  %v6374_v53 = vpack.c.bf16 %v829_v36, %v828_v55  ;;  %v815_v55 = vld [vmem:[#allocation8 + $0x18] sm:$0xff]  ;;  %v832_v36 = vld [vmem:[#allocation8 + $0xa0] sm:$0xff]  ;;  %2322 = vperm.xlu1 %5142, %v6278_v39   ;;  %v8236_v39 = vld [vmem:[#allocation59_spill] sm:$0xff] }
 0x229   : > { %v4189_v61 = vpop.f32.mrb[10].mxu0 }
 0x22a   : > { %v4190_v63 = vpop.f32.mrb[11].mxu0  ;;  %8197 = vst [vmem:[#allocation85_spill] sm:$0xff] %v6374_v53 }
 0x22b   : > { %v4191_v11 = vadd.f32 %v4190_v63, %v4189_v61  ;;  %v812_v63 = vld [vmem:[#allocation8] sm:$0xff]  ;;  %v830_v61 = vld [vmem:[#allocation8 + $0x90] sm:$0xff] }
 0x22c   : > { %v6381_v40 = vpack.c.bf16 %v813_v44, %v812_v63  ;;  %v816_v63 = vld [vmem:[#allocation8 + $0x20] sm:$0xff]  ;;  %v817_v44 = vld [vmem:[#allocation8 + $0x28] sm:$0xff]  ;;  %2330 = vperm.xlu1 %5142, %v6282_v33  }
 0x22d   : > { %v4703_v25 = vpack.c.bf16 %v4191_v11, %v4188_v0  ;;  %v4192_v16 = vpop.f32.mrb[12].mxu0  ;;  %v6376_v11 = vpop.permute.xlu0 %2318 }
 0x22e   : > { %v4193_v49 = vpop.f32.mrb[13].mxu0  ;;  %8198 = vst [vmem:[#allocation86_spill] sm:$0xff] %v6376_v11  ;;  %8199 = vst [vmem:[#allocation87_spill] sm:$0xff] %v6381_v40 }
 0x22f   : > { %v4194_v28 = vadd.f32 %v4193_v49, %v4192_v16  ;;  %4704 = vmatpush3.bf16.msra.mxu1 %v4703_v25  ;;  %v831_v25 = vld [vmem:[#allocation8 + $0x98] sm:$0xff] }
 0x230   : > { %4705 = vmatprep.subr.bf16.mxu1 %v8192_v45  ;;  %v6379_v16 = vld [vmem:[#allocation7] sm:$0xff]  ;;  %v6384_v49 = vpack.c.bf16 %v831_v25, %v830_v61  ;;  %v6400_v61 = vpack.c.bf16 %v817_v44, %v816_v63  ;;  %v820_v44 = vld [vmem:[#allocation8 + $0x40] sm:$0xff] }
 0x231   : > { %v4195_v47 = vpop.f32.mrb[14].mxu0  ;;  %v6389_v51 = vpop.permute.xlu0 %2326 }
 0x232   : > { %v4196_v1 = vpop.f32.mrb[15].mxu0  ;;  %8200 = vst [vmem:[#allocation88_spill] sm:$0xff] %v6384_v49  ;;  %8201 = vst [vmem:[#allocation89_spill] sm:$0xff] %v6389_v51  ;;  %v821_v51 = vld [vmem:[#allocation8 + $0x48] sm:$0xff] }
 0x233   : > { %v4197_v18 = vadd.f32 %v4196_v1, %v4195_v47  ;;  %v814_v47 = vld [vmem:[#allocation8 + $0x10] sm:$0xff]  ;;  %v833_v1 = vld [vmem:[#allocation8 + $0xa8] sm:$0xff]  ;;  %8204 = vst [vmem:[#allocation92_spill] sm:$0xff] %v6400_v61  ;;  %v6418_v52 = vpack.c.bf16 %v821_v51, %v820_v44  ;;  %v824_v51 = vld [vmem:[#allocation8 + $0x60] sm:$0xff] }
 0x234   : > { %v825_v44 = vld [vmem:[#allocation8 + $0x68] sm:$0xff] }
 0x235   : > { %v4706_v0 = vpack.c.bf16 %v4197_v18, %v4194_v28  ;;  %v6392_v18 = vpack.c.bf16 %v815_v55, %v814_v47  ;;  %v6396_v28 = vpack.c.bf16 %v833_v1, %v832_v36  ;;  %v818_v47 = vld [vmem:[#allocation8 + $0x30] sm:$0xff]  ;;  %v6405_v55 = vpop.permute.xlu0 %2334  ;;  %v836_v36 = vld [vmem:[#allocation8 + $0xc0] sm:$0xff]  ;;  %v837_v1 = vld [vmem:[#allocation8 + $0xc8] sm:$0xff]  ;;  %8210 = vst [vmem:[#allocation98_spill] sm:$0xff] %v6418_v52  ;;  %v6434_v2 = vpack.c.bf16 %v825_v44, %v824_v51 }
 0x236   : > { %8206 = vst [vmem:[#allocation94_spill] sm:$0xff] %v6405_v55  ;;  %v6412_v63 = vpack.c.bf16 %v837_v1, %v836_v36  ;;  %v823_v55 = vld [vmem:[#allocation8 + $0x58] sm:$0xff]  ;;  %v840_v36 = vld [vmem:[#allocation8 + $0xe0] sm:$0xff]  ;;  %v841_v1 = vld [vmem:[#allocation8 + $0xe8] sm:$0xff] }
 0x237   : > { %4707 = vmatpush3.bf16.msra.mxu1 %v4706_v0  ;;  %8202 = vst [vmem:[#allocation90_spill] sm:$0xff] %v6392_v18  ;;  %8203 = vst [vmem:[#allocation91_spill] sm:$0xff] %v6396_v28  ;;  %v835_v0 = vld [vmem:[#allocation8 + $0xb8] sm:$0xff]  ;;  %v8235_v51 = vld [vmem:[#allocation50_spill] sm:$0xff] }
 0x238   : > { %4709 = vmatprep.subr.bf16.mxu1 %v6374_v53  ;;  %v6403_v25 = vpack.c.bf16 %v835_v0, %v834_v5  ;;  %8208 = vst [vmem:[#allocation96_spill] sm:$0xff] %v6412_v63  ;;  %v838_v5 = vld [vmem:[#allocation8 + $0xd0] sm:$0xff]  ;;  %v839_v0 = vld [vmem:[#allocation8 + $0xd8] sm:$0xff]  ;;  %8215 = vst [vmem:[#allocation103_spill] sm:$0xff] %v6434_v2 }
 0x239   : > { %v6415_v11 = vpop.permute.xlu0 %2771  ;;  %v8237_v44 = vld [vmem:[#allocation51_spill] sm:$0xff] }
 0x23a   : > { %4558 = vmatmul.mubr.msk.f32.vlgmr.msra.gmra.mrb[0].mxu1 %vm738_vm1, %v6379_v16  ;;  %8205 = vst [vmem:[#allocation93_spill] sm:$0xff] %v6403_v25  ;;  %8209 = vst [vmem:[#allocation97_spill] sm:$0xff] %v6415_v11  ;;  %v6428_v11 = vpack.c.bf16 %v841_v1, %v840_v36 }
 0x23b   : > { %4711 = vmatpush3.bf16.msra.mxu1 %v6381_v40  ;;  %908 = vmatprep.mubr.f32.mxu1 %v5946_v31  ;;  %v819_v31 = vld [vmem:[#allocation8 + $0x38] sm:$0xff] }
 0x23c   : > { %4713 = vmatprep.subr.bf16.mxu1 %v6384_v49  ;;  %v6409_v54 = vpack.c.bf16 %v819_v31, %v818_v47  ;;  %v6421_v47 = vpack.c.bf16 %v839_v0, %v838_v5  ;;  %v822_v31 = vld [vmem:[#allocation8 + $0x50] sm:$0xff]  ;;  %8213 = vst [vmem:[#allocation101_spill] sm:$0xff] %v6428_v11  ;;  %v843_v0 = vld [vmem:[#allocation8 + $0xf8] sm:$0xff] }
 0x23d   : > { %v6425_v19 = vpack.c.bf16 %v823_v55, %v822_v31  ;;  %v6430_v13 = vpop.permute.xlu0 %2783  ;;  %v842_v5 = vld [vmem:[#allocation8 + $0xf0] sm:$0xff] }
 0x23e   : > { %8207 = vst [vmem:[#allocation95_spill] sm:$0xff] %v6409_v54  ;;  %8211 = vst [vmem:[#allocation99_spill] sm:$0xff] %v6421_v47  ;;  %v6437_v55 = vpack.c.bf16 %v843_v0, %v842_v5  ;;  %v826_v31 = vld [vmem:[#allocation8 + $0x70] sm:$0xff]  ;;  %v6495_v5 = vld [vmem:[%s5903_s24 + $0x88] sm:$0xff]  ;;  %v8238_v0 = vmov 2  }
 0x23f   : > { %4715 = vmatpush3.bf16.msra.mxu1 %v6392_v18  ;;  %8212 = vst [vmem:[#allocation100_spill] sm:$0xff] %v6425_v19  ;;  %8214 = vst [vmem:[#allocation102_spill] sm:$0xff] %v6430_v13  ;;  %5143 = vset.pattern.permute.xlu1 %v8238_v0  ;;  %v6538_v0 = vpop.permute.xlu1 %1387 }
 0x240   : > { %4717 = vmatprep.subr.bf16.mxu1 %v6396_v28  ;;  %8216 = vst [vmem:[#allocation104_spill] sm:$0xff] %v6437_v55  ;;  %2767 = vperm.xlu1 %5143, %v5980_v57   ;;  %v6514_v57 = vld [vmem:[%s5903_s24 + $0x90] sm:$0xff]  ;;  %8244 = vst [vmem:[#allocation46_spill] sm:$0xff] %v6538_v0 }
 0x241   : > { %v6440_v36 = vpop.permute.xlu0 %2791 }
 0x242   : > { %8217 = vst [vmem:[#allocation105_spill] sm:$0xff] %v6440_v36 }
 0x243   : > { %4719 = vmatpush3.bf16.msra.mxu1 %v6400_v61 }
 0x244   : > { %4721 = vmatprep.subr.bf16.mxu1 %v6403_v25  ;;  %2775 = vperm.xlu1 %5143, %v6291_v3   ;;  %v6525_v3 = vld [vmem:[%s5903_s24 + $0xa0] sm:$0xff] }
 0x245   : > { %v6449_v58 = vpop.permute.xlu0 %2799 }
 0x246   : > { %8219 = vst [vmem:[#allocation107_spill] sm:$0xff] %v6449_v58 }
 0x247   : > { %4723 = vmatpush3.bf16.msra.mxu1 %v6409_v54 }
 0x248   : > { %4725 = vmatprep.subr.bf16.mxu1 %v6412_v63  ;;  %2779 = vperm.xlu1 %5143, %v6001_v7   ;;  %v6536_v7 = vld [vmem:[%s5903_s24 + $0xb0] sm:$0xff] }
 0x249   : > { %v6458_v41 = vpop.permute.xlu0 %2807 }
 0x24a   : > { %8220 = vst [vmem:[#allocation108_spill] sm:$0xff] %v6458_v41  ;;  %v6582_v41 = vld [vmem:[%s5903_s24 + $0xf0] sm:$0xff] }
 0x24b   : > { %4727 = vmatpush3.bf16.msra.mxu1 %v6418_v52  ;;  %8250 = vst [vmem:[#allocation50_spill] sm:$0xff] %v6582_v41 }
 0x24c   : > { %4729 = vmatprep.subr.bf16.mxu1 %v6421_v47  ;;  %v827_v47 = vld [vmem:[#allocation8 + $0x78] sm:$0xff]  ;;  %2787 = vperm.xlu1 %5143, %v6005_v10  }
 0x24d   : > { %v6443_v1 = vpack.c.bf16 %v827_v47, %v826_v31  ;;  %v8234_v47 = vld [vmem:[#allocation58_spill] sm:$0xff]  ;;  %v8239_v31 = vld [vmem:[#allocation60_spill] sm:$0xff] }
 0x24e   : > { %v6547_v10 = vld [vmem:[%s5903_s24 + $0xc0] sm:$0xff] }
 0x24f   : > { %4731 = vmatpush3.bf16.msra.mxu1 %v6425_v19  ;;  %8218 = vst [vmem:[#allocation106_spill] sm:$0xff] %v6443_v1 }
 0x250   : > { %4733 = vmatprep.subr.bf16.mxu1 %v6428_v11  ;;  %2795 = vperm.xlu1 %5143, %v6015_v17   ;;  %v6560_v17 = vld [vmem:[%s5903_s24 + $0xd0] sm:$0xff] }
 0x253   : > { %4735 = vmatpush3.bf16.msra.mxu1 %v6434_v2 }
 0x254   : > { %4737 = vmatprep.subr.bf16.mxu1 %v6437_v55  ;;  %2803 = vperm.xlu1 %5143, %v6031_v22   ;;  %v6576_v22 = vld [vmem:[%s5903_s24 + $0xf8] sm:$0xff] }
 0x255   : > { %8249 = vst [vmem:[#allocation58_spill] sm:$0xff] %v6576_v22 }
 0x257   : > { %4739 = vmatpush3.bf16.msra.mxu1 %v6443_v1 }
 0x258   : > { %4757 = vmatprep.subr.bf16.mxu1 %v5926_v4  ;;  %2811 = vperm.xlu1 %5143, %v6045_v30  }
 0x25a   : > { %909 = vmatmul.mubr.f32.vlgmr.msra.gmra.mrb[2].mxu1 %v6023_v20  ;;  %v6468_v20 = vpop.permute.xlu0 %2815 }
 0x25b   : > { %4759 = vmatpush3.bf16.msra.mxu1 %v5928_v8  ;;  %913 = vmatprep.mubr.f32.mxu1 %v6026_v21  ;;  %8221 = vst [vmem:[#allocation109_spill] sm:$0xff] %v6468_v20  ;;  %v8222_v21 = vld [vmem:[#allocation53_spill] sm:$0xff] }
 0x25c   : > { %4761 = vmatprep.subr.bf16.mxu1 %v5930_v9  ;;  %2819 = vperm.xlu1 %5143, %v6061_v42  }
 0x25e   : > { %914 = vmatmul.mubr.f32.gmra.mrb[4].mxu1 %v6037_v27  ;;  %v8223_v27 = vld [vmem:[#allocation43_spill] sm:$0xff] }
 0x25f   : > { %4763 = vmatpush3.bf16.msra.mxu1 %v5934_v14  ;;  %918 = vmatprep.mubr.f32.mxu1 %v6040_v29  ;;  %v8224_v29 = vld [vmem:[#allocation54_spill] sm:$0xff] }
 0x260   : > { %4765 = vmatprep.subr.bf16.mxu1 %v5937_v15  ;;  %2827 = vperm.xlu1 %5143, %v6075_v48  }
 0x262   : > { %919 = vmatmul.mubr.f32.gmra.mrb[6].mxu1 %v6053_v37  ;;  %v6477_v37 = vpop.permute.xlu0 %2823 }
 0x263   : > { %4767 = vmatpush3.bf16.msra.mxu1 %v5940_v23  ;;  %923 = vmatprep.mubr.f32.mxu1 %v6056_v38  ;;  %8225 = vst [vmem:[#allocation53_spill] sm:$0xff] %v6477_v37  ;;  %v8226_v38 = vld [vmem:[#allocation45_spill] sm:$0xff] }
 0x264   : > { %4769 = vmatprep.subr.bf16.mxu1 %v5943_v24  ;;  %2835 = vperm.xlu1 %5143, %v6091_v59  }
 0x266   : > { %924 = vmatmul.mubr.f32.gmra.mrb[8].mxu1 %v6067_v46  ;;  %v8229_v46 = vld [vmem:[#allocation56_spill] sm:$0xff]  ;;  %v6487_v50 = vpop.permute.xlu0 %2831 }
 0x267   : > { %4771 = vmatpush3.bf16.msra.mxu1 %v5950_v32  ;;  %928 = vmatprep.mubr.f32.mxu1 %v8222_v21  ;;  %8233 = vst [vmem:[#allocation43_spill] sm:$0xff] %v6487_v50  ;;  %v8241_v21 = vld [vmem:[#allocation52_spill] sm:$0xff]  ;;  %v6563_v50 = vld [vmem:[%s5903_s24 + $0xe8] sm:$0xff] }
 0x268   : > { %4773 = vmatprep.subr.bf16.mxu1 %v8223_v27 }
 0x26a   : > { %929 = vmatmul.mubr.f32.gmra.mrb[10].mxu1 %v8224_v29  ;;  %v6500_v33 = vpop.permute.xlu0 %2839  ;;  %v6505_v29 = vld [vmem:[%s5903_s24 + $0x80] sm:$0xff] }
 0x26b   : > { %4775 = vmatpush3.bf16.msra.mxu1 %v8226_v38  ;;  %933 = vmatprep.mubr.f32.mxu1 %v8227_v56  ;;  %8240 = vst [vmem:[#allocation54_spill] sm:$0xff] %v6500_v33  ;;  %v6508_v56 = vld [vmem:[%s5903_s24 + $0x98] sm:$0xff]  ;;  %v6554_v33 = vpop.permute.xlu1 %1415 }
 0x26c   : > { %4777 = vmatprep.subr.bf16.mxu1 %v8228_v62  ;;  %8246 = vst [vmem:[#allocation48_spill] sm:$0xff] %v6554_v33  ;;  %2843 = vperm.xlu1 %5143, %v6105_v6   ;;  %v8262_v6 = vld [vmem:[#allocation62_spill] sm:$0xff] }
 0x26e   : > { %934 = vmatmul.mubr.f32.gmra.mrb[12].mxu1 %v8229_v46  ;;  %v6517_v46 = vld [vmem:[%s5903_s24 + $0xa8] sm:$0xff] }
 0x26f   : > { %4779 = vmatpush3.bf16.msra.mxu1 %v8230_v12  ;;  %938 = vmatprep.mubr.f32.mxu1 %v8231_v34  ;;  %v6519_v34 = vpop.permute.xlu0 %2847  ;;  %v6573_v20 = vpop.permute.xlu1 %1391 }
 0x270   : > { %4781 = vmatprep.subr.bf16.mxu1 %v8232_v35  ;;  %8242 = vst [vmem:[#allocation45_spill] sm:$0xff] %v6519_v34  ;;  %8248 = vst [vmem:[#allocation49_spill] sm:$0xff] %v6573_v20  ;;  %2851 = vperm.xlu1 %5143, %v6121_v26   ;;  %v8265_v26 = vld [vmem:[#allocation63_spill] sm:$0xff] }
 0x272   : > { %939 = vmatmul.mubr.f32.gmra.mrb[14].mxu1 %v8234_v47  ;;  %v6528_v47 = vld [vmem:[%s5903_s24 + $0xb8] sm:$0xff] }
 0x273   : > { %4783 = vmatpush3.bf16.msra.mxu1 %v8235_v51  ;;  %943 = vmatprep.mubr.f32.mxu1 %v8236_v39  ;;  %v6532_v39 = vpop.permute.xlu0 %2855  ;;  %v6586_v58 = vpop.permute.xlu1 %1399 }
 0x274   : > { %4785 = vmatprep.subr.bf16.mxu1 %v8237_v44  ;;  %8243 = vst [vmem:[#allocation55_spill] sm:$0xff] %v6532_v39  ;;  %v6550_v39 = vld [vmem:[%s5903_s24 + $0xd8] sm:$0xff]  ;;  %8252 = vst [vmem:[#allocation60_spill] sm:$0xff] %v6586_v58  ;;  %2859 = vperm.xlu1 %5143, %v6132_v43  }
 0x276   : > { %944 = vmatmul.mubr.f32.gmra.mrb[16].mxu1 %v8239_v31  ;;  %v6541_v31 = vld [vmem:[%s5903_s24 + $0xc8] sm:$0xff] }
 0x277   : > { %4787 = vmatpush3.bf16.msra.mxu1 %v8241_v21  ;;  %1812 = vmatprep.mubr.f32.mxu1 %v6495_v5  ;;  %v6552_v34 = vpop.permute.xlu0 %2863  ;;  %v6593_v36 = vpop.permute.xlu1 %1423 }
 0x278   : > { %8245 = vst [vmem:[#allocation56_spill] sm:$0xff] %v6552_v34  ;;  %v6571_v34 = vld [vmem:[%s5903_s24 + $0xe0] sm:$0xff]  ;;  %8254 = vst [vmem:[#allocation111_spill] sm:$0xff] %v6593_v36  ;;  %2867 = vperm.xlu1 %5143, %v6140_v60   ;;  %v8261_v36 = vld [vmem:[#allocation61_spill] sm:$0xff] }
 0x279   : > { %v8269_v60 = vld [vmem:[#allocation65_spill] sm:$0xff] }
 0x27a   : > { %1813 = vmatmul.mubr.f32.vlgmr.msra.gmra.mrb[18].mxu1 %v6505_v29 }
 0x27b   : > { %1817 = vmatprep.mubr.f32.mxu1 %v6508_v56  ;;  %v6567_v37 = vpop.permute.xlu0 %2871  ;;  %v6598_v13 = vpop.permute.xlu1 %1407 }
 0x27c   : > { %8247 = vst [vmem:[#allocation57_spill] sm:$0xff] %v6567_v37  ;;  %8256 = vst [vmem:[#allocation113_spill] sm:$0xff] %v6598_v13  ;;  %2875 = vperm.xlu1 %5143, %v8261_v36   ;;  %v8272_v36 = vld [vmem:[#allocation66_spill] sm:$0xff] }
 0x27e   : > { %1818 = vmatmul.mubr.f32.gmra.mrb[20].mxu1 %v6514_v57 }
 0x27f   : > { %1822 = vmatprep.mubr.f32.mxu1 %v6517_v46  ;;  %v6584_v30 = vpop.permute.xlu0 %2879  ;;  %v6604_v48 = vpop.permute.xlu1 %1431 }
 0x280   : > { %8251 = vst [vmem:[#allocation59_spill] sm:$0xff] %v6584_v30  ;;  %8258 = vst [vmem:[#allocation115_spill] sm:$0xff] %v6604_v48  ;;  %2883 = vperm.xlu1 %5143, %v8262_v6   ;;  %v8268_v48 = vld [vmem:[#allocation64_spill] sm:$0xff] }
 0x282   : > { %1823 = vmatmul.mubr.f32.gmra.mrb[22].mxu1 %v6525_v3 }
 0x283   : > { %1827 = vmatprep.mubr.f32.mxu1 %v6528_v47  ;;  %v6591_v37 = vpop.permute.xlu0 %2887 }
 0x284   : > { %8253 = vst [vmem:[#allocation110_spill] sm:$0xff] %v6591_v37  ;;  %v6609_v37 = vpop.permute.xlu1 %1439  ;;  %2891 = vperm.xlu1 %5143, %v8265_v26   ;;  %v8276_v26 = vmov 0  }
 0x285   : > { %8260 = vst [vmem:[#allocation117_spill] sm:$0xff] %v6609_v37 }
 0x286   : > { %1828 = vmatmul.mubr.f32.gmra.mrb[24].mxu1 %v6536_v7 }
 0x287   : > { %1832 = vmatprep.mubr.f32.mxu1 %v6541_v31  ;;  %v6596_v42 = vpop.permute.xlu0 %2959 }
 0x288   : > { %8255 = vst [vmem:[#allocation112_spill] sm:$0xff] %v6596_v42  ;;  %v6615_v33 = vpop.permute.xlu1 %1447  ;;  %2963 = vperm.xlu1 %5143, %v8268_v48   ;;  %v6639_v48 = vld [vmem:[#allocation10] sm:$0xff] }
 0x289   : > { %8264 = vst [vmem:[#allocation62_spill] sm:$0xff] %v6615_v33  ;;  %v8275_v33 = vld [vmem:[#allocation67_spill] sm:$0xff]  ;;  %8279 = vst [vmem:[#allocation121_spill] sm:$0xff] %v6639_v48  ;;  %4576 = vmatprep.mubr.msk.f32.mxu0 %vm738_vm1, %v6639_v48 }
 0x28a   : > { %1833 = vmatmul.mubr.f32.gmra.mrb[26].mxu1 %v6547_v10 }
 0x28b   : > { %1837 = vmatprep.mubr.f32.mxu1 %v6550_v39  ;;  %v6602_v30 = vpop.permute.xlu0 %2967 }
 0x28c   : > { %8257 = vst [vmem:[#allocation114_spill] sm:$0xff] %v6602_v30  ;;  %v6620_v30 = vpop.permute.xlu1 %1455  ;;  %2971 = vperm.xlu1 %5143, %v8269_v60  }
 0x28d   : > { %8267 = vst [vmem:[#allocation118_spill] sm:$0xff] %v6620_v30 }
 0x28e   : > { %1838 = vmatmul.mubr.f32.gmra.mrb[28].mxu1 %v6560_v17 }
 0x28f   : > { %1842 = vmatprep.mubr.f32.mxu1 %v6563_v50  ;;  %v6607_v59 = vpop.permute.xlu0 %2975 }
 0x290   : > { %8259 = vst [vmem:[#allocation116_spill] sm:$0xff] %v6607_v59  ;;  %v6626_v37 = vpop.permute.xlu1 %1463  ;;  %2979 = vperm.xlu1 %5143, %v8272_v36  }
 0x291   : > { %8271 = vst [vmem:[#allocation65_spill] sm:$0xff] %v6626_v37 }
 0x292   : > { %1843 = vmatmul.mubr.f32.gmra.mrb[30].mxu1 %v6571_v34 }
 0x293   : > { %1847 = vmatprep.mubr.f32.mxu1 %v6576_v22  ;;  %v6613_v42 = vpop.permute.xlu0 %2983 }
 0x294   : > { %8263 = vst [vmem:[#allocation61_spill] sm:$0xff] %v6613_v42  ;;  %v6631_v42 = vpop.permute.xlu1 %1471  ;;  %2987 = vperm.xlu1 %5143, %v8275_v33  }
 0x295   : > { %8274 = vst [vmem:[#allocation119_spill] sm:$0xff] %v6631_v42 }
 0x296   : > { %1848 = vmatmul.mubr.f32.gmra.mrb[32].mxu1 %v6582_v41 }
 0x297   : > { %v6618_v43 = vpop.permute.xlu0 %1379  ;;  %4617 = vmatprep.mubr.msk.f32.mxu1 %vm738_vm1, %v6639_v48 }
 0x298   : > { %8266 = vst [vmem:[#allocation63_spill] sm:$0xff] %v6618_v43  ;;  %5146 = vset.pattern.permute.xlu1 %v8276_v26 }
 0x29b   : > { %v6624_v59 = vpop.permute.xlu0 %1383 }
 0x29c   : > { %8270 = vst [vmem:[#allocation64_spill] sm:$0xff] %v6624_v59 }
 0x29f   : > { %v6629_v6 = vpop.permute.xlu0 %1395 }
 0x2a0   : > { %8273 = vst [vmem:[#allocation66_spill] sm:$0xff] %v6629_v6 }
 0x2a3   : > { %v6635_v13 = vpop.permute.xlu0 %1403 }
 0x2a4   : > { %8277 = vst [vmem:[#allocation67_spill] sm:$0xff] %v6635_v13 }
 0x2a7   : > { %v6637_v30 = vpop.permute.xlu0 %1411 }
 0x2a8   : > { %8278 = vst [vmem:[#allocation120_spill] sm:$0xff] %v6637_v30 }
 0x2ab   : > { %v6641_v60 = vpop.permute.xlu0 %1419 }
 0x2ac   : > { %8280 = vst [vmem:[#allocation122_spill] sm:$0xff] %v6641_v60 }
 0x2af   : > { %v6647_v36 = vpop.permute.xlu0 %1427 }
 0x2b0   : > { %8281 = vst [vmem:[#allocation123_spill] sm:$0xff] %v6647_v36 }
 0x2b3   : > { %v6649_v42 = vpop.permute.xlu0 %1435 }
 0x2b4   : > { %8282 = vst [vmem:[#allocation124_spill] sm:$0xff] %v6649_v42 }
 0x2b7   : > { %v6651_v33 = vpop.permute.xlu0 %1443 }
 0x2b8   : > { %8283 = vst [vmem:[#allocation125_spill] sm:$0xff] %v6651_v33 }
 0x2bb   : > { %v6653_v26 = vpop.permute.xlu0 %1451 }
 0x2bc   : > { %8284 = vst [vmem:[#allocation126_spill] sm:$0xff] %v6653_v26 }
 0x2bf   : > { %v6655_v37 = vpop.permute.xlu0 %1459 }
 0x2c0   : > { %8285 = vst [vmem:[#allocation127_spill] sm:$0xff] %v6655_v37 }
 0x2c3   : > { %v6657_v30 = vpop.permute.xlu0 %1467 }
 0x2c4   : > { %8286 = vst [vmem:[#allocation128_spill] sm:$0xff] %v6657_v30 }
 0x2c7   : > { %v6659_v13 = vpop.permute.xlu0 %1475 }
 0x2c8   : > { %8287 = vst [vmem:[#allocation129_spill] sm:$0xff] %v6659_v13 }
 0x2cb   : > { %v6661_v60 = vpop.permute.xlu0 %1483 }
 0x2cc   : > { %8288 = vst [vmem:[#allocation130_spill] sm:$0xff] %v6661_v60 }
 0x2cf   : > { %v6663_v58 = vpop.permute.xlu0 %1491 }
 0x2d0   : > { %8289 = vst [vmem:[#allocation131_spill] sm:$0xff] %v6663_v58 }
 0x2d3   : > { %v1500_v36 = vpop.permute.xlu0 %1499 }
 0x30d   : > { %v6665_v6 = vpop.f32.mrb[0].mxu1 }
 0x30e   : > { %8290 = vst [vmem:[#allocation132_spill] sm:$0xff] %v6665_v6  ;;  %v4559_v20 = vpop.f32.mrb[1].mxu1  ;;  %v6668_v42 = vmul.f32 %v1500_v36, %v6665_v6 }
 0x310   : > { %8291 = vst [vmem:[#allocation133_spill] sm:$0xff] %v6668_v42 }
 0x32d   : > { %v4239_v33 = vpop.f32.mrb[2].mxu1 }
 0x32e   : > { %v4240_v0 = vpop.f32.mrb[3].mxu1 }
 0x32f   : > { %v4241_v26 = vadd.f32 %v4240_v0, %v4239_v33 }
 0x331   : > { %v4242_v59 = vpop.f32.mrb[4].mxu1 }
 0x332   : > { %v4243_v37 = vpop.f32.mrb[5].mxu1 }
 0x333   : > { %v4244_v43 = vadd.f32 %v4243_v37, %v4242_v59 }
 0x335   : > { %v4740_v30 = vpack.c.bf16 %v4244_v43, %v4241_v26  ;;  %v4245_v48 = vpop.f32.mrb[6].mxu1 }
 0x336   : > { %v4246_v13 = vpop.f32.mrb[7].mxu1 }
 0x337   : > { %v4247_v21 = vadd.f32 %v4246_v13, %v4245_v48  ;;  %4741 = vmatprep.subr.bf16.mxu0 %v4740_v30 }
 0x338   : > { %4743 = vmatpush3.bf16.msra.mxu0 %v4740_v30 }
 0x339   : > { %v4248_v58 = vpop.f32.mrb[8].mxu1 }
 0x33a   : > { %v4249_v60 = vpop.f32.mrb[9].mxu1 }
 0x33b   : > { %v4250_v41 = vadd.f32 %v4249_v60, %v4248_v58 }
 0x33d   : > { %v4744_v20 = vpack.c.bf16 %v4250_v41, %v4247_v21  ;;  %v4251_v44 = vpop.f32.mrb[10].mxu1 }
 0x33e   : > { %v4252_v22 = vpop.f32.mrb[11].mxu1 }
 0x33f   : > { %v4253_v36 = vadd.f32 %v4252_v22, %v4251_v44  ;;  %4745 = vmatprep.subr.bf16.mxu0 %v4744_v20  ;;  %v6670_v44 = vld [vmem:[#allocation10 + $0x8] sm:$0xff] }
 0x340   : > { %4747 = vmatpush3.bf16.msra.mxu0 %v4744_v20  ;;  %8292 = vst [vmem:[#allocation134_spill] sm:$0xff] %v6670_v44 }
 0x341   : > { %v4254_v42 = vpop.f32.mrb[12].mxu1 }
 0x342   : > { %v4255_v0 = vpop.f32.mrb[13].mxu1 }
 0x343   : > { %v4256_v33 = vadd.f32 %v4255_v0, %v4254_v42  ;;  %v6673_v42 = vld [vmem:[#allocation10 + $0x10] sm:$0xff]  ;;  %v6679_v0 = vld [vmem:[#allocation10 + $0x18] sm:$0xff] }
 0x344   : > { %8293 = vst [vmem:[#allocation135_spill] sm:$0xff] %v6673_v42  ;;  %8294 = vst [vmem:[#allocation136_spill] sm:$0xff] %v6679_v0 }
 0x345   : > { %v4748_v6 = vpack.c.bf16 %v4256_v33, %v4253_v36  ;;  %v4257_v37 = vpop.f32.mrb[14].mxu1 }
 0x346   : > { %v4258_v59 = vpop.f32.mrb[15].mxu1 }
 0x347   : > { %v4259_v43 = vadd.f32 %v4258_v59, %v4257_v37  ;;  %4749 = vmatprep.subr.bf16.mxu0 %v4748_v6 }
 0x348   : > { %4751 = vmatpush3.bf16.msra.mxu0 %v4748_v6 }
 0x349   : > { %v4260_v13 = vpop.f32.mrb[16].mxu1 }
 0x34a   : > { %v4261_v30 = vpop.f32.mrb[17].mxu1 }
 0x34b   : > { %v4262_v48 = vadd.f32 %v4261_v30, %v4260_v13 }
 0x34d   : > { %v4752_v26 = vpack.c.bf16 %v4262_v48, %v4259_v43  ;;  %v4307_v58 = vpop.f32.mrb[18].mxu1  ;;  %v8295_v43 = vmov 0.0  }
 0x34e   : > { %v4308_v41 = vpop.f32.mrb[19].mxu1 }
 0x34f   : > { %v4309_v21 = vadd.f32 %v4308_v41, %v4307_v58  ;;  %4753 = vmatprep.subr.bf16.mxu0 %v4752_v26 }
 0x350   : > { %4755 = vmatpush3.bf16.msra.mxu0 %v4752_v26 }
 0x351   : > { %v4310_v22 = vpop.f32.mrb[20].mxu1  ;;  %4788 = vmatprep.subr.bf16.mxu0 %v8192_v45 }
 0x352   : > { %v4311_v60 = vpop.f32.mrb[21].mxu1 }
 0x353   : > { %v4312_v20 = vadd.f32 %v4311_v60, %v4310_v22  ;;  %4577 = vmatmul.mubr.msk.f32.vlgmr.msra.gmra.mrb[16].mxu0 %vm738_vm1, %v6670_v44 }
 0x354   : > { %4579 = vmatprep.mubr.msk.f32.mxu0 %vm738_vm1, %v6673_v42  ;;  %v8366_v42 = vld [vmem:[#allocation71_spill] sm:$0xff] }
 0x355   : > { %v4789_v6 = vpack.c.bf16 %v4312_v20, %v4309_v21  ;;  %v4313_v36 = vpop.f32.mrb[22].mxu1 }
 0x356   : > { %v4314_v33 = vpop.f32.mrb[23].mxu1 }
 0x357   : > { %v4315_v37 = vadd.f32 %v4314_v33, %v4313_v36  ;;  %4790 = vmatpush3.bf16.msra.mxu0 %v4789_v6 }
 0x358   : > { %4791 = vmatprep.subr.bf16.mxu0 %v8192_v45  ;;  %4580 = vmatmul.mubr.msk.f32.gmra.mrb[18].mxu0 %vm738_vm1, %v6679_v0 }
 0x359   : > { %v4316_v59 = vpop.f32.mrb[24].mxu1  ;;  %4598 = vmatprep.mubr.msk.f32.mxu0 %vm5524_vm0, %v8295_v43 }
 0x35a   : > { %v4317_v13 = vpop.f32.mrb[25].mxu1 }
 0x35b   : > { %v4318_v30 = vadd.f32 %v4317_v13, %v4316_v59 }
 0x35d   : > { %v4792_v48 = vpack.c.bf16 %v4318_v30, %v4315_v37  ;;  %v4319_v26 = vpop.f32.mrb[26].mxu1 }
 0x35e   : > { %v4320_v58 = vpop.f32.mrb[27].mxu1 }
 0x35f   : > { %v4321_v41 = vadd.f32 %v4320_v58, %v4319_v26  ;;  %4793 = vmatpush3.bf16.msra.mxu0 %v4792_v48 }
 0x360   : > { %4794 = vmatprep.subr.bf16.mxu0 %v8192_v45 }
 0x361   : > { %v4322_v21 = vpop.f32.mrb[28].mxu1 }
 0x362   : > { %v4323_v22 = vpop.f32.mrb[29].mxu1 }
 0x363   : > { %v4324_v60 = vadd.f32 %v4323_v22, %v4322_v21 }
 0x365   : > { %v4795_v20 = vpack.c.bf16 %v4324_v60, %v4321_v41  ;;  %v4325_v6 = vpop.f32.mrb[30].mxu1 }
 0x366   : > { %v4326_v36 = vpop.f32.mrb[31].mxu1 }
 0x367   : > { %v4327_v33 = vadd.f32 %v4326_v36, %v4325_v6  ;;  %4796 = vmatpush3.bf16.msra.mxu0 %v4795_v20 }
 0x368   : > { %4797 = vmatprep.subr.bf16.mxu0 %v8192_v45 }
 0x369   : > { %v4328_v43 = vpop.f32.mrb[32].mxu1 }
 0x36a   : > { %v4329_v0 = vpop.f32.mrb[33].mxu1 }
 0x36b   : > { %v4330_v59 = vadd.f32 %v4329_v0, %v4328_v43 }
 0x36d   : > { %v4798_v37 = vpack.c.bf16 %v4330_v59, %v4327_v33 }
 0x36f   : > { %4799 = vmatpush3.bf16.msra.mxu0 %v4798_v37 }
 0x370   : > { %4801 = vmatprep.subr.bf16.mxu0 %v6374_v53 }
 0x372   : > { %4599 = vmatmul.mubr.msk.f32.vlgmr.msra.gmra.mrb[20].mxu0 %vm738_vm1, %v6379_v16  ;;  %v8296_v16 = vld [vmem:[#allocation99_spill] sm:$0xff] }
 0x373   : > { %4803 = vmatpush3.bf16.msra.mxu0 %v6381_v40  ;;  %1987 = vmatprep.mubr.f32.mxu0 %v6495_v5  ;;  %v6783_v5 = vld [vmem:[%s5903_s24 + $0x150] sm:$0xff] }
 0x374   : > { %4805 = vmatprep.subr.bf16.mxu0 %v6384_v49  ;;  %8312 = vst [vmem:[#allocation144_spill] sm:$0xff] %v6783_v5 }
 0x377   : > { %4807 = vmatpush3.bf16.msra.mxu0 %v6392_v18 }
 0x378   : > { %4809 = vmatprep.subr.bf16.mxu0 %v6396_v28 }
 0x37b   : > { %4811 = vmatpush3.bf16.msra.mxu0 %v6400_v61 }
 0x37c   : > { %4813 = vmatprep.subr.bf16.mxu0 %v6403_v25 }
 0x37f   : > { %4815 = vmatpush3.bf16.msra.mxu0 %v6409_v54 }
 0x380   : > { %4817 = vmatprep.subr.bf16.mxu0 %v6412_v63 }
 0x383   : > { %4819 = vmatpush3.bf16.msra.mxu0 %v6418_v52  ;;  %v8358_v52 = vld [vmem:[#allocation131_spill] sm:$0xff] }
 0x384   : > { %4821 = vmatprep.subr.bf16.mxu0 %v8296_v16 }
 0x387   : > { %4823 = vmatpush3.bf16.msra.mxu0 %v6425_v19 }
 0x388   : > { %4825 = vmatprep.subr.bf16.mxu0 %v6428_v11  ;;  %v6918_v11 = vld [vmem:[#allocation13] sm:$0xff] }
 0x38b   : > { %4827 = vmatpush3.bf16.msra.mxu0 %v6434_v2  ;;  %v8351_v2 = vld [vmem:[#allocation119_spill] sm:$0xff] }
 0x38c   : > { %4829 = vmatprep.subr.bf16.mxu0 %v6437_v55  ;;  %v8350_v55 = vld [vmem:[#allocation128_spill] sm:$0xff] }
 0x38f   : > { %4831 = vmatpush3.bf16.msra.mxu0 %v6443_v1  ;;  %v8349_v1 = vld [vmem:[#allocation65_spill] sm:$0xff] }
 0x390   : > { %4849 = vmatprep.subr.bf16.mxu0 %v5926_v4  ;;  %v8297_v4 = vld [vmem:[#allocation58_spill] sm:$0xff] }
 0x392   : > { %1988 = vmatmul.mubr.f32.vlgmr.msra.gmra.mrb[22].mxu0 %v6505_v29  ;;  %v6786_v29 = vld [vmem:[%s5903_s24 + $0x168] sm:$0xff] }
 0x393   : > { %4851 = vmatpush3.bf16.msra.mxu0 %v5928_v8  ;;  %1992 = vmatprep.mubr.f32.mxu0 %v6508_v56  ;;  %v8298_v8 = vld [vmem:[#allocation51_spill] sm:$0xff]  ;;  %8313 = vst [vmem:[#allocation145_spill] sm:$0xff] %v6786_v29  ;;  %v6791_v56 = vld [vmem:[%s5903_s24 + $0x160] sm:$0xff] }
 0x394   : > { %4853 = vmatprep.subr.bf16.mxu0 %v5930_v9  ;;  %v6737_v9 = vld [vmem:[%s5903_s24 + $0x108] sm:$0xff]  ;;  %8314 = vst [vmem:[#allocation146_spill] sm:$0xff] %v6791_v56 }
 0x395   : > { %8299 = vst [vmem:[#allocation58_spill] sm:$0xff] %v6737_v9 }
 0x396   : > { %1993 = vmatmul.mubr.f32.gmra.mrb[24].mxu0 %v6514_v57  ;;  %v6794_v57 = vld [vmem:[%s5903_s24 + $0x178] sm:$0xff] }
 0x397   : > { %4855 = vmatpush3.bf16.msra.mxu0 %v5934_v14  ;;  %1997 = vmatprep.mubr.f32.mxu0 %v6517_v46  ;;  %v8300_v14 = vld [vmem:[#allocation50_spill] sm:$0xff]  ;;  %8315 = vst [vmem:[#allocation147_spill] sm:$0xff] %v6794_v57  ;;  %v1480_v46 = vpop.permute.xlu1 %1479 }
 0x398   : > { %4857 = vmatprep.subr.bf16.mxu0 %v5937_v15  ;;  %v8301_v15 = vld [vmem:[#allocation52_spill] sm:$0xff] }
 0x39a   : > { %1998 = vmatmul.mubr.f32.gmra.mrb[26].mxu0 %v6525_v3  ;;  %v8317_v3 = vld [vmem:[#allocation121_spill] sm:$0xff] }
 0x39b   : > { %4859 = vmatpush3.bf16.msra.mxu0 %v5940_v23  ;;  %2002 = vmatprep.mubr.f32.mxu0 %v6528_v47  ;;  %v6743_v23 = vld [vmem:[%s5903_s24 + $0x100] sm:$0xff]  ;;  %v1488_v47 = vpop.permute.xlu1 %1487 }
 0x39c   : > { %4861 = vmatprep.subr.bf16.mxu0 %v5943_v24  ;;  %8302 = vst [vmem:[#allocation51_spill] sm:$0xff] %v6743_v23  ;;  %v6746_v24 = vld [vmem:[%s5903_s24 + $0x118] sm:$0xff] }
 0x39d   : > { %8303 = vst [vmem:[#allocation50_spill] sm:$0xff] %v6746_v24 }
 0x39e   : > { %2003 = vmatmul.mubr.f32.gmra.mrb[28].mxu0 %v6536_v7 }
 0x39f   : > { %4863 = vmatpush3.bf16.msra.mxu0 %v5950_v32  ;;  %2007 = vmatprep.mubr.f32.mxu0 %v6541_v31  ;;  %v6751_v32 = vld [vmem:[%s5903_s24 + $0x110] sm:$0xff] }
 0x3a0   : > { %4865 = vmatprep.subr.bf16.mxu0 %v8223_v27  ;;  %8304 = vst [vmem:[#allocation52_spill] sm:$0xff] %v6751_v32  ;;  %v6754_v27 = vld [vmem:[%s5903_s24 + $0x128] sm:$0xff] }
 0x3a1   : > { %8305 = vst [vmem:[#allocation137_spill] sm:$0xff] %v6754_v27 }
 0x3a2   : > { %2008 = vmatmul.mubr.f32.gmra.mrb[30].mxu0 %v6547_v10 }
 0x3a3   : > { %4867 = vmatpush3.bf16.msra.mxu0 %v8226_v38  ;;  %2012 = vmatprep.mubr.f32.mxu0 %v6550_v39  ;;  %v6759_v38 = vld [vmem:[%s5903_s24 + $0x120] sm:$0xff]  ;;  %v1496_v39 = vpop.permute.xlu1 %1495 }
 0x3a4   : > { %4869 = vmatprep.subr.bf16.mxu0 %v8228_v62  ;;  %8306 = vst [vmem:[#allocation138_spill] sm:$0xff] %v6759_v38  ;;  %v6762_v62 = vld [vmem:[%s5903_s24 + $0x138] sm:$0xff] }
 0x3a5   : > { %8307 = vst [vmem:[#allocation139_spill] sm:$0xff] %v6762_v62 }
 0x3a6   : > { %2013 = vmatmul.mubr.f32.gmra.mrb[32].mxu0 %v6560_v17 }
 0x3a7   : > { %4871 = vmatpush3.bf16.msra.mxu0 %v8230_v12  ;;  %2017 = vmatprep.mubr.f32.mxu0 %v6563_v50  ;;  %v6767_v12 = vld [vmem:[%s5903_s24 + $0x130] sm:$0xff]  ;;  %v6775_v50 = vld [vmem:[%s5903_s24 + $0x140] sm:$0xff]  ;;  %v6804_v7 = vpop.permute.xlu1 %1503 }
 0x3a8   : > { %4873 = vmatprep.subr.bf16.mxu0 %v8232_v35  ;;  %8308 = vst [vmem:[#allocation140_spill] sm:$0xff] %v6767_v12  ;;  %v6770_v35 = vld [vmem:[%s5903_s24 + $0x148] sm:$0xff]  ;;  %8310 = vst [vmem:[#allocation142_spill] sm:$0xff] %v6775_v50 }
 0x3a9   : > { %8309 = vst [vmem:[#allocation141_spill] sm:$0xff] %v6770_v35  ;;  %8318 = vst [vmem:[#allocation121_spill] sm:$0xff] %v6804_v7  ;;  %v8369_v7 = vld [vmem:[#allocation74_spill] sm:$0xff] }
 0x3aa   : > { %2018 = vmatmul.mubr.f32.gmra.mrb[34].mxu0 %v6571_v34  ;;  %v6799_v34 = vld [vmem:[%s5903_s24 + $0x170] sm:$0xff] }
 0x3ab   : > { %4875 = vmatpush3.bf16.msra.mxu0 %v8235_v51  ;;  %2022 = vmatprep.mubr.f32.mxu0 %v8297_v4  ;;  %v6778_v51 = vld [vmem:[%s5903_s24 + $0x158] sm:$0xff]  ;;  %8316 = vst [vmem:[#allocation148_spill] sm:$0xff] %v6799_v34  ;;  %v6806_v31 = vpop.permute.xlu1 %1657  ;;  %v8327_v4 = vld [vmem:[#allocation132_spill] sm:$0xff]  ;;  %s5527_s24 = smov [#allocation17]  }
 0x3ac   : > { %4877 = vmatprep.subr.bf16.mxu0 %v8298_v8  ;;  %8311 = vst [vmem:[#allocation143_spill] sm:$0xff] %v6778_v51  ;;  %8319 = vst [vmem:[#allocation149_spill] sm:$0xff] %v6806_v31  ;;  %v8328_v8 = vld [vmem:[#allocation63_spill] sm:$0xff]  ;;  %v8333_v31 = vld [vmem:[#allocation60_spill] sm:$0xff]  ;;  %v6939_v63 = vmul.f32 %v1496_v39, %v8327_v4  ;;  %s5388_s27 = sshll.u32 %s5527_s24, 4  ;;  %s5389_s27 = int_to_ptr.vmem [resolvable:$false] %s5388_s27 }
 0x3ad   : > { %8352 = vst [vmem:[#allocation63_spill] sm:$0xff] %v6918_v11  ;;  %v8364_v39 = vld [vmem:[#allocation69_spill] sm:$0xff]  ;;  %p5391_p1 = scmp.lt.s32.totalorder %s7733_s29, %s5389_s27 }
 0x3ae   : > { %2023 = vmatmul.mubr.f32.gmra.mrb[36].mxu0 %v8300_v14  ;;  %v6824_v14 = vmul.f32 %v8328_v8, %v8327_v4  ;;  %v6844_v8 = vmul.f32 %v8333_v31, %v8327_v4  ;;  %8360 = vst [vmem:[#allocation60_spill] sm:$0xff] %v6939_v63  ;;  %v8374_v63 = vld [vmem:[#allocation79_spill] sm:$0xff] }
 0x3af   : > { %4879 = vmatpush3.bf16.msra.mxu0 %v8301_v15  ;;  %2465 = vmatprep.mubr.f32.mxu0 %v6737_v9  ;;  %v6808_v10 = vpop.permute.xlu1 %1665  ;;  %v8329_v15 = vld [vmem:[#allocation64_spill] sm:$0xff] }
 0x3b0   : > { %8320 = vst [vmem:[#allocation150_spill] sm:$0xff] %v6808_v10 }
 0x3b2   : > { %2466 = vmatmul.mubr.f32.vlgmr.msra.gmra.mrb[38].mxu0 %v6743_v23  ;;  %v8348_v23 = vld [vmem:[#allocation127_spill] sm:$0xff] }
 0x3b3   : > { %2470 = vmatprep.mubr.f32.mxu0 %v6746_v24  ;;  %v6810_v17 = vpop.permute.xlu1 %1673  ;;  %v8347_v24 = vld [vmem:[#allocation118_spill] sm:$0xff] }
 0x3b4   : > { %8321 = vst [vmem:[#allocation151_spill] sm:$0xff] %v6810_v17 }
 0x3b6   : > { %2471 = vmatmul.mubr.f32.gmra.mrb[40].mxu0 %v6751_v32  ;;  %v8346_v32 = vld [vmem:[#allocation126_spill] sm:$0xff] }
 0x3b7   : > { %2475 = vmatprep.mubr.f32.mxu0 %v6754_v27  ;;  %v6812_v0 = vpop.permute.xlu1 %1681  ;;  %v8345_v27 = vld [vmem:[#allocation62_spill] sm:$0xff] }
 0x3b8   : > { %8322 = vst [vmem:[#allocation152_spill] sm:$0xff] %v6812_v0  ;;  %v8330_v0 = vld [vmem:[#allocation46_spill] sm:$0xff] }
 0x3b9   : > { %v6832_v17 = vmul.f32 %v8330_v0, %v8327_v4 }
 0x3ba   : > { %2476 = vmatmul.mubr.f32.gmra.mrb[42].mxu0 %v6759_v38 }
 0x3bb   : > { %2480 = vmatprep.mubr.f32.mxu0 %v6762_v62  ;;  %v2119_v43 = vpop.permute.xlu1 %2118 }
 0x3be   : > { %2481 = vmatmul.mubr.f32.gmra.mrb[44].mxu0 %v6767_v12 }
 0x3bf   : > { %2485 = vmatprep.mubr.f32.mxu0 %v6770_v35  ;;  %v2123_v13 = vpop.permute.xlu1 %2122 }
 0x3c2   : > { %2486 = vmatmul.mubr.f32.gmra.mrb[46].mxu0 %v6775_v50 }
 0x3c3   : > { %2490 = vmatprep.mubr.f32.mxu0 %v6778_v51  ;;  %v2131_v30 = vpop.permute.xlu1 %2130 }
 0x3c6   : > { %2491 = vmatmul.mubr.f32.gmra.mrb[48].mxu0 %v6783_v5  ;;  %v8339_v5 = vld [vmem:[#allocation111_spill] sm:$0xff] }
 0x3c7   : > { %2495 = vmatprep.mubr.f32.mxu0 %v6786_v29  ;;  %v2139_v48 = vpop.permute.xlu1 %2138  ;;  %v8338_v29 = vld [vmem:[#allocation122_spill] sm:$0xff] }
 0x3c8   : > { %v6864_v31 = vmul.f32 %v8338_v29, %v8327_v4  ;;  %v8343_v29 = vld [vmem:[#allocation117_spill] sm:$0xff] }
 0x3c9   : > { %v6884_v62 = vmul.f32 %v8343_v29, %v8327_v4  ;;  %v6904_v29 = vmul.f32 %v8348_v23, %v8327_v4  ;;  %v6925_v23 = vmul.f32 %v1480_v46, %v8327_v4  ;;  %v8365_v46 = vld [vmem:[#allocation70_spill] sm:$0xff] }
 0x3ca   : > { %2496 = vmatmul.mubr.f32.gmra.mrb[50].mxu0 %v6791_v56  ;;  %v8337_v56 = vld [vmem:[#allocation48_spill] sm:$0xff] }
 0x3cb   : > { %2500 = vmatprep.mubr.f32.mxu0 %v6794_v57  ;;  %v2147_v26 = vpop.permute.xlu1 %2146  ;;  %v8336_v57 = vld [vmem:[#allocation120_spill] sm:$0xff]  ;;  %8354 = vst [vmem:[#allocation64_spill] sm:$0xff] %v6925_v23 }
 0x3ce   : > { %2501 = vmatmul.mubr.f32.gmra.mrb[52].mxu0 %v6799_v34  ;;  %v8335_v34 = vld [vmem:[#allocation113_spill] sm:$0xff] }
 0x3cf   : > { %4658 = vmatprep.mubr.msk.f32.mxu0 %vm738_vm1, %v8317_v3  ;;  %v2155_v58 = vpop.permute.xlu1 %2154  ;;  %v6828_v3 = vmul.f32 %v8329_v15, %v8327_v4  ;;  %v6852_v0 = vmul.f32 %v8335_v34, %v8327_v4  ;;  %v8340_v34 = vld [vmem:[#allocation123_spill] sm:$0xff] }
 0x3d0   : > { %v6872_v50 = vmul.f32 %v8340_v34, %v8327_v4  ;;  %v6892_v34 = vmul.f32 %v8345_v27, %v8327_v4  ;;  %v6912_v27 = vmul.f32 %v8350_v55, %v8327_v4  ;;  %v6932_v55 = vmul.f32 %v1488_v47, %v8327_v4  ;;  %v8363_v47 = vld [vmem:[#allocation68_spill] sm:$0xff] }
 0x3d3   : > { %v2163_v41 = vpop.permute.xlu1 %2162 }
 0x3d7   : > { %v2171_v21 = vpop.permute.xlu1 %2170 }
 0x3db   : > { %v2179_v20 = vpop.permute.xlu1 %2178 }
 0x3df   : > { %v2187_v33 = vpop.permute.xlu1 %2186 }
 0x3e3   : > { %v2195_v59 = vpop.permute.xlu1 %2194 }
 0x3e7   : > { %v2203_v37 = vpop.permute.xlu1 %2202 }
 0x3eb   : > { %v2211_v51 = vpop.permute.xlu1 %2210 }
 0x426   : > { %v6814_v22 = vpop.f32.mrb[16].mxu0 }
 0x427   : > { %8323 = vst [vmem:[#allocation153_spill] sm:$0xff] %v6814_v22  ;;  %v6816_v60 = vpop.f32.mrb[17].mxu0  ;;  %v8334_v22 = vld [vmem:[#allocation67_spill] sm:$0xff] }
 0x428   : > { %8324 = vst [vmem:[#allocation154_spill] sm:$0xff] %v6816_v60  ;;  %v8331_v60 = vld [vmem:[#allocation49_spill] sm:$0xff]  ;;  %v6848_v15 = vmul.f32 %v8334_v22, %v8327_v4  ;;  %v6868_v22 = vmul.f32 %v8339_v5, %v8327_v4 }
 0x429   : > { %v8344_v5 = vld [vmem:[#allocation125_spill] sm:$0xff]  ;;  %8357 = vst [vmem:[#allocation49_spill] sm:$0xff] %v6932_v55 }
 0x42a   : > { %v6888_v38 = vmul.f32 %v8344_v5, %v8327_v4  ;;  %v6908_v5 = vmul.f32 %v8349_v1, %v8327_v4  ;;  %v8355_v1 = vld [vmem:[#allocation130_spill] sm:$0xff] }
 0x42b   : > { %v6818_v6 = vpop.f32.mrb[18].mxu0  ;;  %v6929_v16 = vmul.f32 %v8355_v1, %v8327_v4  ;;  %v2219_v1 = vpop.permute.xlu1 %2218 }
 0x42c   : > { %8325 = vst [vmem:[#allocation155_spill] sm:$0xff] %v6818_v6  ;;  %v6820_v36 = vpop.f32.mrb[19].mxu0  ;;  %v6836_v6 = vmul.f32 %v8331_v60, %v8327_v4  ;;  %v6856_v60 = vmul.f32 %v8336_v57, %v8327_v4  ;;  %v8341_v57 = vld [vmem:[#allocation115_spill] sm:$0xff] }
 0x42d   : > { %8326 = vst [vmem:[#allocation156_spill] sm:$0xff] %v6820_v36  ;;  %v8332_v36 = vld [vmem:[#allocation66_spill] sm:$0xff]  ;;  %v6876_v35 = vmul.f32 %v8341_v57, %v8327_v4  ;;  %v6896_v57 = vmul.f32 %v8346_v32, %v8327_v4  ;;  %v6916_v32 = vmul.f32 %v8351_v2, %v8327_v4  ;;  %8356 = vst [vmem:[#allocation46_spill] sm:$0xff] %v6929_v16 }
 0x42e   : > { %v6840_v10 = vmul.f32 %v8332_v36, %v8327_v4  ;;  %v6860_v36 = vmul.f32 %v8337_v56, %v8327_v4  ;;  %v8342_v56 = vld [vmem:[#allocation124_spill] sm:$0xff]  ;;  %v6936_v2 = vmul.f32 %v8358_v52, %v8327_v4 }
 0x42f   : > { %v6880_v12 = vmul.f32 %v8342_v56, %v8327_v4  ;;  %v6900_v56 = vmul.f32 %v8347_v24, %v8327_v4  ;;  %v8353_v24 = vld [vmem:[#allocation129_spill] sm:$0xff] }
 0x430   : > { %v6922_v19 = vmul.f32 %v8353_v24, %v8327_v4  ;;  %8359 = vst [vmem:[#allocation66_spill] sm:$0xff] %v6936_v2  ;;  %v8361_v24 = vld [vmem:[#allocation44_spill] sm:$0xff]  ;;  %v8370_v4 = vld [vmem:[#allocation75_spill] sm:$0xff]  ;;  %v2227_v2 = vpop.permute.xlu1 %2226 }
 0x431   : > { %v6947_v25 = vrot.slane %v6918_v11, %v8361_v24  ;;  %v8371_v11 = vld [vmem:[#allocation76_spill] sm:$0xff]  ;;  %v8373_v24 = vld [vmem:[#allocation78_spill] sm:$0xff] }
 0x433   : > { %8362 = vst [vmem:[#allocation67_spill] sm:$0xff] %v6947_v25  ;;  %v8372_v25 = vld [vmem:[#allocation77_spill] sm:$0xff] }
 0x445   : > { %v6941_v54 = vpop.f32.mrb[20].mxu0 }
 0x446   : > { %v2241_v61 = vmul.f32 %v8363_v47, %v6941_v54  ;;  %v2242_v28 = vmul.f32 %v2119_v43, %v6941_v54  ;;  %v2243_v52 = vmul.f32 %v2123_v13, %v6941_v54  ;;  %v2244_v18 = vmul.f32 %v8364_v39, %v6941_v54  ;;  %v4600_v49 = vpop.f32.mrb[21].mxu0  ;;  %v8367_v43 = vld [vmem:[#allocation72_spill] sm:$0xff]  ;;  %v8368_v39 = vld [vmem:[#allocation73_spill] sm:$0xff] }
 0x447   : > { %v2245_v9 = vmul.f32 %v2131_v30, %v6941_v54  ;;  %v2246_v40 = vmul.f32 %v8365_v46, %v6941_v54  ;;  %v2247_v53 = vmul.f32 %v2139_v48, %v6941_v54  ;;  %v2248_v44 = vmul.f32 %v8366_v42, %v6941_v54 }
 0x448   : > { %v2249_v47 = vmul.f32 %v2147_v26, %v6941_v54  ;;  %v2250_v45 = vmul.f32 %v8367_v43, %v6941_v54  ;;  %v2251_v13 = vmul.f32 %v2155_v58, %v6941_v54  ;;  %v2252_v49 = vmul.f32 %v8368_v39, %v6941_v54 }
 0x449   : > { %v2253_v30 = vmul.f32 %v2163_v41, %v6941_v54  ;;  %v2254_v46 = vmul.f32 %v8369_v7, %v6941_v54  ;;  %v2255_v48 = vmul.f32 %v2171_v21, %v6941_v54  ;;  %v2256_v42 = vmul.f32 %v8370_v4, %v6941_v54 }
 0x44a   : > { %v2257_v26 = vmul.f32 %v2179_v20, %v6941_v54  ;;  %v2258_v43 = vmul.f32 %v8371_v11, %v6941_v54  ;;  %v2259_v58 = vmul.f32 %v2187_v33, %v6941_v54  ;;  %v2260_v39 = vmul.f32 %v8372_v25, %v6941_v54  ;;  %v8375_v11 = vld [vmem:[#allocation80_spill] sm:$0xff]  ;;  %v8376_v25 = vld [vmem:[#allocation81_spill] sm:$0xff] }
 0x44b   : > { %v2261_v41 = vmul.f32 %v2195_v59, %v6941_v54  ;;  %v2262_v7 = vmul.f32 %v8373_v24, %v6941_v54  ;;  %v2263_v21 = vmul.f32 %v2203_v37, %v6941_v54  ;;  %v2264_v4 = vmul.f32 %v8374_v63, %v6941_v54  ;;  %v8377_v24 = vld [vmem:[#allocation82_spill] sm:$0xff] }
 0x44c   : > { %v2265_v20 = vmul.f32 %v2211_v51, %v6941_v54  ;;  %v2266_v55 = vmul.f32 %v8375_v11, %v6941_v54  ;;  %v2267_v33 = vmul.f32 %v2219_v1, %v6941_v54  ;;  %v2268_v16 = vmul.f32 %v8376_v25, %v6941_v54 }
 0x44d   : > { %v2269_v59 = vmul.f32 %v2227_v2, %v6941_v54  ;;  %v2270_v23 = vmul.f32 %v8377_v24, %v6941_v54  ;;  %v6995_v37 = vadd.f32 %v2241_v61, %v6824_v14  ;;  %v6998_v63 = vadd.f32 %v2242_v28, %v6828_v3 }
 0x44e   : > { %v7001_v51 = vadd.f32 %v2243_v52, %v6832_v17  ;;  %v7004_v11 = vadd.f32 %v2244_v18, %v6836_v6  ;;  %v7007_v1 = vadd.f32 %v2245_v9, %v6840_v10  ;;  %v7010_v2 = vadd.f32 %v2246_v40, %v6844_v8 }
 0x44f   : > { %8378 = vst [vmem:[#allocation113_spill] sm:$0xff] %v6995_v37  ;;  %8379 = vst [vmem:[#allocation120_spill] sm:$0xff] %v6998_v63  ;;  %v7013_v25 = vadd.f32 %v2247_v53, %v6848_v15  ;;  %v7016_v61 = vadd.f32 %v2248_v44, %v6852_v0  ;;  %v7019_v28 = vadd.f32 %v2249_v47, %v6856_v60  ;;  %v8403_v15 = vld [vmem:[#allocation64_spill] sm:$0xff]  ;;  %v8405_v60 = vld [vmem:[#allocation46_spill] sm:$0xff] }
 0x450   : > { %8380 = vst [vmem:[#allocation48_spill] sm:$0xff] %v7001_v51  ;;  %8381 = vst [vmem:[#allocation122_spill] sm:$0xff] %v7004_v11  ;;  %v7022_v17 = vadd.f32 %v2250_v45, %v6860_v36  ;;  %v7025_v18 = vadd.f32 %v2251_v13, %v6864_v31  ;;  %v7028_v9 = vadd.f32 %v2252_v49, %v6868_v22  ;;  %v8407_v31 = vld [vmem:[#allocation49_spill] sm:$0xff]  ;;  %v8417_v13 = vld [vmem:[#allocation132_spill] sm:$0xff] }
 0x451   : > { %8382 = vst [vmem:[#allocation111_spill] sm:$0xff] %v7007_v1  ;;  %8383 = vst [vmem:[#allocation123_spill] sm:$0xff] %v7010_v2  ;;  %v7031_v40 = vadd.f32 %v2253_v30, %v6872_v50  ;;  %v7034_v53 = vadd.f32 %v2254_v46, %v6876_v35  ;;  %v7037_v44 = vadd.f32 %v2255_v48, %v6880_v12  ;;  %v3055_v30 = vld [vmem:[#allocation13 + $0x8] sm:$0xff]  ;;  %v8419_v46 = vld [vmem:[#allocation83_spill] sm:$0xff] }
 0x452   : > { %8384 = vst [vmem:[#allocation115_spill] sm:$0xff] %v7013_v25  ;;  %8385 = vst [vmem:[#allocation124_spill] sm:$0xff] %v7016_v61  ;;  %v7040_v10 = vadd.f32 %v2256_v42, %v6884_v62  ;;  %v7043_v45 = vadd.f32 %v2257_v26, %v6888_v38  ;;  %v7046_v6 = vadd.f32 %v2258_v43, %v6892_v34  ;;  %v2235_v62 = vpop.permute.xlu1 %2234  ;;  %v8409_v34 = vld [vmem:[#allocation66_spill] sm:$0xff]  ;;  %v8420_v42 = vld [vmem:[#allocation47_spill] sm:$0xff] }
 0x453   : > { %8386 = vst [vmem:[#allocation117_spill] sm:$0xff] %v7019_v28  ;;  %8387 = vst [vmem:[#allocation125_spill] sm:$0xff] %v7022_v17  ;;  %v7049_v14 = vadd.f32 %v2259_v58, %v6896_v57  ;;  %v7052_v50 = vadd.f32 %v2260_v39, %v6900_v56  ;;  %v7055_v35 = vadd.f32 %v2261_v41, %v6904_v29  ;;  %v8411_v56 = vld [vmem:[#allocation60_spill] sm:$0xff] }
 0x454   : > { %8388 = vst [vmem:[#allocation62_spill] sm:$0xff] %v7025_v18  ;;  %8389 = vst [vmem:[#allocation126_spill] sm:$0xff] %v7028_v9  ;;  %v7058_v12 = vadd.f32 %v2262_v7, %v6908_v5  ;;  %v7061_v3 = vadd.f32 %v2263_v21, %v6912_v27  ;;  %v7064_v38 = vadd.f32 %v2264_v4, %v6916_v32  ;;  %v8413_v5 = vld [vmem:[#allocation44_spill] sm:$0xff]  ;;  %v8414_v27 = vld [vmem:[#allocation67_spill] sm:$0xff] }
 0x455   : > { %8390 = vst [vmem:[#allocation118_spill] sm:$0xff] %v7031_v40  ;;  %8391 = vst [vmem:[#allocation127_spill] sm:$0xff] %v7034_v53  ;;  %v7067_v8 = vadd.f32 %v2265_v20, %v6922_v19  ;;  %v7070_v0 = vadd.f32 %v2266_v55, %v8403_v15  ;;  %v7073_v36 = vadd.f32 %v2267_v33, %v8405_v60  ;;  %v8415_v55 = vld [vmem:[#allocation63_spill] sm:$0xff]  ;;  %v8496_v17 = vld [vmem:[#allocation156_spill] sm:$0xff] }
 0x456   : > { %8392 = vst [vmem:[#allocation65_spill] sm:$0xff] %v7037_v44  ;;  %8393 = vst [vmem:[#allocation128_spill] sm:$0xff] %v7040_v10  ;;  %v7076_v22 = vadd.f32 %v2268_v16, %v8407_v31  ;;  %v7079_v57 = vadd.f32 %v2269_v59, %v8409_v34  ;;  %v7082_v29 = vadd.f32 %v2270_v23, %v8411_v56  ;;  %v8418_v16 = vld [vmem:[#allocation121_spill] sm:$0xff]  ;;  %v8498_v11 = vld [vmem:[#allocation84_spill] sm:$0xff] }
 0x457   : > { %8394 = vst [vmem:[#allocation119_spill] sm:$0xff] %v7043_v45  ;;  %8395 = vst [vmem:[#allocation129_spill] sm:$0xff] %v7046_v6  ;;  %v3085_v32 = vrot.slane %v8414_v27, %v8413_v5  ;;  %v3077_v19 = vcombine.high %v8414_v27, %v8414_v27  ;;  %v8416_v52 = vcombine.high %v8415_v55, %v8415_v55  ;;  %v8422_v31 = vld [vmem:[#allocation133_spill] sm:$0xff] }
 0x458   : > { %8396 = vst [vmem:[#allocation130_spill] sm:$0xff] %v7049_v14  ;;  %8397 = vst [vmem:[#allocation131_spill] sm:$0xff] %v7052_v50  ;;  %v1537_v49 = vmul.f32 %v8418_v16, %v8417_v13  ;;  %v2272_v48 = vmul.f32 %v8419_v46, %v6941_v54  ;;  %v2271_v23 = vmul.f32 %v2235_v62, %v6941_v54  ;;  %v8494_v14 = vld [vmem:[#allocation155_spill] sm:$0xff] }
 0x459   : > { %8398 = vst [vmem:[#allocation68_spill] sm:$0xff] %v7055_v35  ;;  %8399 = vst [vmem:[#allocation69_spill] sm:$0xff] %v7058_v12  ;;  %v3076_v47 = vrot.slane %v8416_v52, %v8413_v5  ;;  %v3261_v26 = vrot.slane %v3085_v32, %v8420_v42  ;;  %v3099_v43 = vrot.slane %v3077_v19, %v8413_v5 }
 0x45a   : > { %8400 = vst [vmem:[#allocation70_spill] sm:$0xff] %v7061_v3  ;;  %8401 = vst [vmem:[#allocation71_spill] sm:$0xff] %v7064_v38  ;;  %v3107_v58 = vcombine.high %v3085_v32, %v3085_v32  ;;  %v7099_v41 = vadd.f32 %v2272_v48, %v1537_v49  ;;  %v3118_v20 = vrot.slane %v3055_v30, %v8413_v5  ;;  %v3056_v48 = vld [vmem:[#allocation13 + $0x10] sm:$0xff] }
 0x45b   : > { %8402 = vst [vmem:[#allocation72_spill] sm:$0xff] %v7067_v8  ;;  %8404 = vst [vmem:[#allocation73_spill] sm:$0xff] %v7070_v0  ;;  %v3078_v39 = vcombine.high %v3076_v47, %v3076_v47  ;;  %3387 = vperm.xlu0 %5145, %v3261_v26   ;;  %v3265_v7 = vrot.slane %v3099_v43, %v8420_v42  ;;  %v3109_v21 = vcombine.high %v3099_v43, %v3099_v43  ;;  %v8493_v8 = vld [vmem:[#allocation154_spill] sm:$0xff] }
 0x45c   : > { %8406 = vst [vmem:[#allocation74_spill] sm:$0xff] %v7073_v36  ;;  %8408 = vst [vmem:[#allocation75_spill] sm:$0xff] %v7076_v22  ;;  %v3269_v54 = vrot.slane %v3107_v58, %v8420_v42  ;;  %v3092_v59 = vrot.slane %v3076_v47, %v8413_v5  ;;  %v3111_v24 = vcombine.high %v3055_v30, %v3055_v30 }
 0x45d   : > { %8410 = vst [vmem:[#allocation76_spill] sm:$0xff] %v7079_v57  ;;  %8412 = vst [vmem:[#allocation77_spill] sm:$0xff] %v7082_v29  ;;  %v3106_v4 = vrot.slane %v3078_v39, %v8413_v5  ;;  %3391 = vperm.xlu1 %5146, %v3265_v7   ;;  %v3273_v33 = vrot.slane %v3109_v21, %v8420_v42  ;;  %v3126_v60 = vcombine.high %v3118_v20, %v3118_v20 }
 0x45e   : > { %8421 = vst [vmem:[#allocation78_spill] sm:$0xff] %v7099_v41  ;;  %v7109_v34 = vadd.f32 %v2271_v23, %v8422_v31  ;;  %v3277_v56 = vrot.slane %v3092_v59, %v8420_v42  ;;  %v3108_v27 = vcombine.high %v3092_v59, %v3092_v59  ;;  %v3125_v32 = vrot.slane %v3111_v24, %v8413_v5 }
 0x45f   : > { %3399 = vperm.xlu0 %5145, %v3273_v33   ;;  %v3281_v62 = vrot.slane %v3106_v4, %v8420_v42  ;;  %v3110_v15 = vcombine.high %v3106_v4, %v3106_v4  ;;  %v3148_v55 = vrot.slane %v3126_v60, %v8413_v5  ;;  %v3134_v47 = vrot.slane %v3118_v20, %v8413_v5 }
 0x460   : > { %8423 = vst [vmem:[#allocation79_spill] sm:$0xff] %v7109_v34  ;;  %v3285_v52 = vrot.slane %v3108_v27, %v8420_v42  ;;  %v3127_v13 = vcombine.high %v3125_v32, %v3125_v32  ;;  %v3167_v21 = vrot.slane %v3056_v48, %v8413_v5  ;;  %v3160_v31 = vcombine.high %v3056_v48, %v3056_v48 }
 0x461   : > { %3395 = vperm.xlu1 %5146, %v3269_v54   ;;  %v3289_v19 = vrot.slane %v3110_v15, %v8420_v42  ;;  %v3297_v49 = vrot.slane %v3148_v55, %v8420_v42  ;;  %v3158_v30 = vcombine.high %v3148_v55, %v3148_v55  ;;  %v3293_v26 = vrot.slane %v3134_v47, %v8420_v42 }
 0x462   : > { %v3156_v43 = vcombine.high %v3134_v47, %v3134_v47  ;;  %v3155_v58 = vrot.slane %v3127_v13, %v8413_v5  ;;  %v3141_v54 = vrot.slane %v3125_v32, %v8413_v5  ;;  %v3175_v60 = vcombine.high %v3167_v21, %v3167_v21 }
 0x463   : > { %3407 = vperm.xlu0 %5145, %v3281_v62   ;;  %v3305_v7 = vrot.slane %v3158_v30, %v8420_v42  ;;  %v3174_v13 = vrot.slane %v3160_v31, %v8413_v5 }
 0x464   : > { %v3301_v33 = vrot.slane %v3156_v43, %v8420_v42  ;;  %v3313_v59 = vrot.slane %v3155_v58, %v8420_v42  ;;  %v3159_v15 = vcombine.high %v3155_v58, %v3155_v58  ;;  %v3157_v55 = vcombine.high %v3141_v54, %v3141_v54 }
 0x465   : > { %3403 = vperm.xlu1 %5146, %v3277_v56   ;;  %v4372_v16 = vpop.f32.mrb[22].mxu0  ;;  %v3197_v47 = vrot.slane %v3175_v60, %v8413_v5  ;;  %v3176_v58 = vcombine.high %v3174_v13, %v3174_v13  ;;  %v3190_v31 = vrot.slane %v3174_v13, %v8413_v5 }
 0x466   : > { %v4373_v46 = vpop.f32.mrb[23].mxu0  ;;  %v3321_v32 = vrot.slane %v3159_v15, %v8420_v42  ;;  %v3317_v30 = vrot.slane %v3157_v55, %v8420_v42 }
 0x467   : > { %3415 = vperm.xlu0 %5145, %v3289_v19   ;;  %v4374_v23 = vadd.f32 %v4373_v46, %v4372_v16  ;;  %v3309_v19 = vrot.slane %v3141_v54, %v8420_v42  ;;  %v3183_v46 = vrot.slane %v3167_v21, %v8413_v5  ;;  %v3207_v43 = vcombine.high %v3197_v47, %v3197_v47 }
 0x469   : > { %3411 = vperm.xlu1 %5146, %v3285_v52   ;;  %v4375_v39 = vpop.f32.mrb[24].mxu0  ;;  %v3337_v21 = vrot.slane %v3207_v43, %v8420_v42 }
 0x46a   : > { %v4376_v4 = vpop.f32.mrb[25].mxu0 }
 0x46b   : > { %3423 = vperm.xlu0 %5145, %v3297_v49   ;;  %v4377_v20 = vadd.f32 %v4376_v4, %v4375_v39 }
 0x46d   : > { %3419 = vperm.xlu1 %5146, %v3293_v26   ;;  %v4832_v24 = vpack.c.bf16 %v4377_v20, %v4374_v23  ;;  %v4378_v62 = vpop.f32.mrb[26].mxu0  ;;  %v3329_v26 = vrot.slane %v3197_v47, %v8420_v42  ;;  %v3325_v20 = vrot.slane %v3183_v46, %v8420_v42 }
 0x46e   : > { %v4379_v56 = vpop.f32.mrb[27].mxu0 }
 0x46f   : > { %3431 = vperm.xlu0 %5145, %v3305_v7   ;;  %v4380_v27 = vadd.f32 %v4379_v56, %v4378_v62  ;;  %4833 = vmatprep.subr.bf16.mxu1 %v4832_v24  ;;  %v3057_v7 = vld [vmem:[#allocation13 + $0x18] sm:$0xff] }
 0x470   : > { %4835 = vmatpush3.bf16.msra.mxu1 %v4832_v24  ;;  %v3216_v24 = vrot.slane %v3057_v7, %v8413_v5  ;;  %v3209_v56 = vcombine.high %v3057_v7, %v3057_v7 }
 0x471   : > { %3427 = vperm.xlu1 %5146, %v3301_v33   ;;  %v4381_v52 = vpop.f32.mrb[28].mxu0  ;;  %v3205_v33 = vcombine.high %v3183_v46, %v3183_v46 }
 0x472   : > { %v4382_v16 = vpop.f32.mrb[29].mxu0 }
 0x473   : > { %3439 = vperm.xlu0 %5145, %v3313_v59   ;;  %v4383_v49 = vadd.f32 %v4382_v16, %v4381_v52  ;;  %v3204_v59 = vrot.slane %v3176_v58, %v8413_v5  ;;  %v3333_v60 = vrot.slane %v3205_v33, %v8420_v42 }
 0x475   : > { %3435 = vperm.xlu1 %5146, %v3309_v19   ;;  %v4836_v48 = vpack.c.bf16 %v4383_v49, %v4380_v27  ;;  %v4384_v23 = vpop.f32.mrb[30].mxu0  ;;  %v3345_v55 = vrot.slane %v3204_v59, %v8420_v42  ;;  %v3208_v52 = vcombine.high %v3204_v59, %v3204_v59  ;;  %v3341_v49 = vrot.slane %v3190_v31, %v8420_v42 }
 0x476   : > { %v4385_v39 = vpop.f32.mrb[31].mxu0 }
 0x477   : > { %3447 = vperm.xlu0 %5145, %v3321_v32   ;;  %v4386_v4 = vadd.f32 %v4385_v39, %v4384_v23  ;;  %4837 = vmatprep.subr.bf16.mxu1 %v4836_v48  ;;  %v3224_v32 = vcombine.high %v3216_v24, %v3216_v24  ;;  %v3353_v13 = vrot.slane %v3208_v52, %v8420_v42 }
 0x478   : > { %4839 = vmatpush3.bf16.msra.mxu1 %v4836_v48  ;;  %v3223_v23 = vrot.slane %v3209_v56, %v8413_v5  ;;  %v3232_v39 = vrot.slane %v3216_v24, %v8413_v5 }
 0x479   : > { %3443 = vperm.xlu1 %5146, %v3317_v30   ;;  %v4387_v54 = vpop.f32.mrb[32].mxu0  ;;  %v3206_v30 = vcombine.high %v3190_v31, %v3190_v31  ;;  %v3246_v48 = vrot.slane %v3224_v32, %v8413_v5  ;;  %v8424_v31 = vmov 0.0|0.0  }
 0x47a   : > { %v4388_v62 = vpop.f32.mrb[33].mxu0  ;;  %v3239_v32 = vrot.slane %v3223_v23, %v8413_v5 }
 0x47b   : > { %3455 = vperm.xlu0 %5145, %v3329_v26   ;;  %v4389_v15 = vadd.f32 %v4388_v62, %v4387_v54  ;;  %v3349_v58 = vrot.slane %v3206_v30, %v8420_v42  ;;  %v3256_v33 = vcombine.high %v3246_v48, %v3246_v48  ;;  %v3225_v54 = vcombine.high %v3223_v23, %v3223_v23 }
 0x47c   : > { %v3357_v62 = vrot.slane %v3232_v39, %v8420_v42  ;;  %v8428_v23 = vmov 0.0  }
 0x47d   : > { %3451 = vperm.xlu1 %5146, %v3325_v20   ;;  %v4840_v27 = vpack.c.bf16 %v4389_v15, %v4386_v4  ;;  %v4390_v19 = vpop.f32.mrb[34].mxu0  ;;  %v3361_v20 = vrot.slane %v3246_v48, %v8420_v42  ;;  %v3254_v15 = vcombine.high %v3232_v39, %v3232_v39  ;;  %v3369_v24 = vrot.slane %v3256_v33, %v8420_v42 }
 0x47e   : > { %v4391_v47 = vpop.f32.mrb[35].mxu0  ;;  %v3253_v56 = vrot.slane %v3225_v54, %v8413_v5 }
 0x47f   : > { %3463 = vperm.xlu0 %5145, %v3337_v21   ;;  %v4392_v16 = vadd.f32 %v4391_v47, %v4390_v19  ;;  %4841 = vmatprep.subr.bf16.mxu1 %v4840_v27  ;;  %v3365_v52 = vrot.slane %v3254_v15, %v8420_v42  ;;  %v8426_v47 = vld [vmem:[#allocation135_spill] sm:$0xff] }
 0x480   : > { %4843 = vmatpush3.bf16.msra.mxu1 %v4840_v27  ;;  %v3377_v30 = vrot.slane %v3253_v56, %v8420_v42 }
 0x481   : > { %3459 = vperm.xlu1 %5146, %v3333_v60   ;;  %v4393_v46 = vpop.f32.mrb[36].mxu0 }
 0x482   : > { %v4394_v26 = vpop.f32.mrb[37].mxu0 }
 0x483   : > { %3471 = vperm.xlu0 %5145, %v3345_v55   ;;  %v4395_v43 = vadd.f32 %v4394_v26, %v4393_v46  ;;  %v8425_v55 = vld [vmem:[#allocation134_spill] sm:$0xff]  ;;  %v3257_v46 = vcombine.high %v3253_v56, %v3253_v56  ;;  %v8427_v26 = vld [vmem:[#allocation136_spill] sm:$0xff] }
 0x485   : > { %3467 = vperm.xlu1 %5146, %v3341_v49   ;;  %v4844_v7 = vpack.c.bf16 %v4395_v43, %v4392_v16  ;;  %v4440_v4 = vpop.f32.mrb[38].mxu0  ;;  %v3373_v43 = vrot.slane %v3239_v32, %v8420_v42 }
 0x486   : > { %v4441_v21 = vpop.f32.mrb[39].mxu0 }
 0x487   : > { %3479 = vperm.xlu0 %5145, %v3353_v13   ;;  %v4442_v59 = vadd.f32 %v4441_v21, %v4440_v4  ;;  %4845 = vmatprep.subr.bf16.mxu1 %v4844_v7 }
 0x488   : > { %4847 = vmatpush3.bf16.msra.mxu1 %v4844_v7  ;;  %v3385_v7 = vrot.slane %v3257_v46, %v8420_v42  ;;  %v5156_v46 = vld [vmem:[#allocation7] sm:$0xff] }
 0x489   : > { %3475 = vperm.xlu1 %5146, %v3349_v58   ;;  %v4443_v60 = vpop.f32.mrb[40].mxu0  ;;  %4880 = vmatprep.subr.bf16.mxu1 %v8424_v31  ;;  %v3255_v58 = vcombine.high %v3239_v32, %v3239_v32 }
 0x48a   : > { %v4444_v27 = vpop.f32.mrb[41].mxu0 }
 0x48b   : > { %3487 = vperm.xlu0 %5145, %v3361_v20   ;;  %v4445_v19 = vadd.f32 %v4444_v27, %v4443_v60  ;;  %4618 = vmatmul.mubr.msk.f32.vlgmr.msra.gmra.mrb[34].mxu1 %vm738_vm1, %v8425_v55  ;;  %v3381_v33 = vrot.slane %v3255_v58, %v8420_v42  ;;  %v8434_v58 = vld [vmem:[#allocation91_spill] sm:$0xff] }
 0x48c   : > { %4620 = vmatprep.mubr.msk.f32.mxu1 %vm738_vm1, %v8426_v47 }
 0x48d   : > { %3483 = vperm.xlu1 %5146, %v3357_v62   ;;  %v4881_v16 = vpack.c.bf16 %v4445_v19, %v4442_v59  ;;  %v4446_v49 = vpop.f32.mrb[42].mxu0 }
 0x48e   : > { %v4447_v13 = vpop.f32.mrb[43].mxu0 }
 0x48f   : > { %3495 = vperm.xlu0 %5145, %v3369_v24   ;;  %v4448_v48 = vadd.f32 %v4447_v13, %v4446_v49  ;;  %4621 = vmatmul.mubr.msk.f32.gmra.mrb[36].mxu1 %vm738_vm1, %v8427_v26  ;;  %v8429_v49 = vld [vmem:[#allocation85_spill] sm:$0xff]  ;;  %v8430_v13 = vld [vmem:[#allocation87_spill] sm:$0xff]  ;;  %v8432_v26 = vld [vmem:[#allocation88_spill] sm:$0xff] }
 0x490   : > { %4882 = vmatpush3.bf16.msra.mxu1 %v4881_v16  ;;  %4639 = vmatprep.mubr.msk.f32.mxu1 %vm5524_vm0, %v8428_v23  ;;  %v8435_v23 = vld [vmem:[#allocation92_spill] sm:$0xff] }
 0x491   : > { %3491 = vperm.xlu1 %5146, %v3365_v52   ;;  %v4449_v39 = vpop.f32.mrb[44].mxu0  ;;  %4883 = vmatprep.subr.bf16.mxu1 %v8424_v31 }
 0x492   : > { %v4450_v4 = vpop.f32.mrb[45].mxu0 }
 0x493   : > { %3503 = vperm.xlu0 %5145, %v3377_v30   ;;  %v4451_v20 = vadd.f32 %v4450_v4, %v4449_v39  ;;  %v7168_v30 = vpop.permute.xlu1 %2306  ;;  %v8436_v39 = vld [vmem:[#allocation93_spill] sm:$0xff]  ;;  %v8437_v4 = vld [vmem:[#allocation95_spill] sm:$0xff] }
 0x495   : > { %3499 = vperm.xlu1 %5146, %v3373_v43   ;;  %v4884_v54 = vpack.c.bf16 %v4451_v20, %v4448_v48  ;;  %v4452_v21 = vpop.f32.mrb[46].mxu0  ;;  %v8431_v48 = vld [vmem:[#allocation58_spill] sm:$0xff]  ;;  %v8438_v20 = vld [vmem:[#allocation96_spill] sm:$0xff] }
 0x496   : > { %v4453_v59 = vpop.f32.mrb[47].mxu0  ;;  %v8433_v43 = vld [vmem:[#allocation90_spill] sm:$0xff] }
 0x497   : > { %3511 = vperm.xlu0 %5145, %v3385_v7   ;;  %v4454_v62 = vadd.f32 %v4453_v59, %v4452_v21  ;;  %4885 = vmatpush3.bf16.msra.mxu1 %v4884_v54  ;;  %v8440_v21 = vld [vmem:[#allocation99_spill] sm:$0xff]  ;;  %v8441_v59 = vld [vmem:[#allocation100_spill] sm:$0xff] }
 0x498   : > { %4886 = vmatprep.subr.bf16.mxu1 %v8424_v31 }
 0x499   : > { %3507 = vperm.xlu1 %5146, %v3381_v33   ;;  %v4455_v15 = vpop.f32.mrb[48].mxu0  ;;  %v8439_v33 = vld [vmem:[#allocation98_spill] sm:$0xff] }
 0x49a   : > { %v4456_v60 = vpop.f32.mrb[49].mxu0 }
 0x49b   : > { %v4457_v24 = vadd.f32 %v4456_v60, %v4455_v15  ;;  %v8443_v60 = vld [vmem:[#allocation103_spill] sm:$0xff] }
 0x49d   : > { %v4887_v56 = vpack.c.bf16 %v4457_v24, %v4454_v62  ;;  %v4458_v27 = vpop.f32.mrb[50].mxu0  ;;  %v8442_v62 = vld [vmem:[#allocation101_spill] sm:$0xff]  ;;  %v8444_v24 = vld [vmem:[#allocation104_spill] sm:$0xff] }
 0x49e   : > { %v4459_v19 = vpop.f32.mrb[51].mxu0 }
 0x49f   : > { %v4460_v55 = vadd.f32 %v4459_v19, %v4458_v27  ;;  %4888 = vmatpush3.bf16.msra.mxu1 %v4887_v56  ;;  %v8445_v56 = vld [vmem:[#allocation106_spill] sm:$0xff]  ;;  %v8446_v19 = vld [vmem:[#allocation51_spill] sm:$0xff] }
 0x4a0   : > { %4889 = vmatprep.subr.bf16.mxu1 %v8424_v31  ;;  %v7175_v31 = vpop.permute.xlu1 %2314 }
 0x4a1   : > { %v4461_v52 = vpop.f32.mrb[52].mxu0 }
 0x4a2   : > { %v4462_v32 = vpop.f32.mrb[53].mxu0 }
 0x4a3   : > { %v4463_v47 = vadd.f32 %v4462_v32, %v4461_v52  ;;  %v8448_v32 = vld [vmem:[#allocation52_spill] sm:$0xff] }
 0x4a4   : > { %v7180_v7 = vpop.permute.xlu1 %2322 }
 0x4a5   : > { %v4890_v16 = vpack.c.bf16 %v4463_v47, %v4460_v55  ;;  %v8447_v55 = vld [vmem:[#allocation50_spill] sm:$0xff]  ;;  %v8449_v47 = vld [vmem:[#allocation137_spill] sm:$0xff] }
 0x4a7   : > { %4891 = vmatpush3.bf16.msra.mxu1 %v4890_v16  ;;  %v8450_v16 = vld [vmem:[#allocation138_spill] sm:$0xff] }
 0x4a8   : > { %4893 = vmatprep.subr.bf16.mxu1 %v8429_v49  ;;  %v7185_v54 = vpop.permute.xlu1 %2330  ;;  %v8451_v49 = vld [vmem:[#allocation139_spill] sm:$0xff] }
 0x4aa   : > { %4640 = vmatmul.mubr.msk.f32.vlgmr.msra.gmra.mrb[38].mxu1 %vm738_vm1, %v5156_v46 }
 0x4ab   : > { %4895 = vmatpush3.bf16.msra.mxu1 %v8430_v13  ;;  %2640 = vmatprep.mubr.f32.mxu1 %v8431_v48  ;;  %v8452_v13 = vld [vmem:[#allocation140_spill] sm:$0xff]  ;;  %v8453_v48 = vld [vmem:[#allocation141_spill] sm:$0xff] }
 0x4ac   : > { %4897 = vmatprep.subr.bf16.mxu1 %v8432_v26  ;;  %v7190_v15 = vpop.permute.xlu1 %2767 }
 0x4af   : > { %4899 = vmatpush3.bf16.msra.mxu1 %v8433_v43  ;;  %v8455_v43 = vld [vmem:[#allocation142_spill] sm:$0xff] }
 0x4b0   : > { %4901 = vmatprep.subr.bf16.mxu1 %v8434_v58  ;;  %v7195_v27 = vpop.permute.xlu1 %2775  ;;  %v8456_v58 = vld [vmem:[#allocation143_spill] sm:$0xff] }
 0x4b3   : > { %4903 = vmatpush3.bf16.msra.mxu1 %v8435_v23  ;;  %v8457_v23 = vld [vmem:[#allocation144_spill] sm:$0xff] }
 0x4b4   : > { %4905 = vmatprep.subr.bf16.mxu1 %v8436_v39  ;;  %v7199_v52 = vpop.permute.xlu1 %2779  ;;  %v8458_v39 = vld [vmem:[#allocation145_spill] sm:$0xff] }
 0x4b7   : > { %4907 = vmatpush3.bf16.msra.mxu1 %v8437_v4 }
 0x4b8   : > { %4909 = vmatprep.subr.bf16.mxu1 %v8438_v20  ;;  %v7205_v46 = vpop.permute.xlu1 %2787  ;;  %v8460_v20 = vld [vmem:[#allocation146_spill] sm:$0xff] }
 0x4bb   : > { %4911 = vmatpush3.bf16.msra.mxu1 %v8439_v33  ;;  %v8461_v33 = vld [vmem:[#allocation147_spill] sm:$0xff] }
 0x4bc   : > { %4913 = vmatprep.subr.bf16.mxu1 %v8440_v21  ;;  %v7209_v26 = vpop.permute.xlu1 %2795 }
 0x4bd   : > { %8454 = vst [vmem:[#allocation80_spill] sm:$0xff] %v7209_v26 }
 0x4bf   : > { %4915 = vmatpush3.bf16.msra.mxu1 %v8441_v59  ;;  %v8463_v59 = vld [vmem:[#allocation148_spill] sm:$0xff] }
 0x4c0   : > { %4917 = vmatprep.subr.bf16.mxu1 %v8442_v62  ;;  %v7215_v4 = vpop.permute.xlu1 %2803 }
 0x4c1   : > { %8459 = vst [vmem:[#allocation81_spill] sm:$0xff] %v7215_v4 }
 0x4c3   : > { %4919 = vmatpush3.bf16.msra.mxu1 %v8443_v60  ;;  %v3611_v60 = vld [vmem:[#allocation16] sm:$0xff] }
 0x4c4   : > { %4921 = vmatprep.subr.bf16.mxu1 %v8444_v24  ;;  %v7219_v21 = vpop.permute.xlu1 %2811  ;;  %v3620_v24 = vrot.slane %v3611_v60, %v8413_v5 }
 0x4c5   : > { %8462 = vst [vmem:[#allocation82_spill] sm:$0xff] %v7219_v21 }
 0x4c7   : > { %4923 = vmatpush3.bf16.msra.mxu1 %v8445_v56  ;;  %v3628_v56 = vcombine.high %v3620_v24, %v3620_v24 }
 0x4c8   : > { %v7222_v62 = vpop.permute.xlu1 %2819 }
 0x4c9   : > { %8464 = vst [vmem:[#allocation64_spill] sm:$0xff] %v7222_v62 }
 0x4ca   : > { %2641 = vmatmul.mubr.f32.vlgmr.msra.gmra.mrb[40].mxu1 %v8446_v19 }
 0x4cb   : > { %2645 = vmatprep.mubr.f32.mxu1 %v8447_v55  ;;  %v3650_v55 = vrot.slane %v3628_v56, %v8413_v5 }
 0x4cc   : > { %v7225_v19 = vpop.permute.xlu1 %2827 }
 0x4cd   : > { %8465 = vst [vmem:[#allocation46_spill] sm:$0xff] %v7225_v19 }
 0x4ce   : > { %2646 = vmatmul.mubr.f32.gmra.mrb[42].mxu1 %v8448_v32  ;;  %v3669_v32 = vrot.slane %v3650_v55, %v8420_v42 }
 0x4cf   : > { %2650 = vmatprep.mubr.f32.mxu1 %v8449_v47 }
 0x4d0   : > { %3699 = vperm.xlu0 %5145, %v3669_v32   ;;  %v7229_v47 = vpop.permute.xlu1 %2835 }
 0x4d1   : > { %8466 = vst [vmem:[#allocation49_spill] sm:$0xff] %v7229_v47 }
 0x4d2   : > { %2651 = vmatmul.mubr.f32.gmra.mrb[44].mxu1 %v8450_v16 }
 0x4d3   : > { %2655 = vmatprep.mubr.f32.mxu1 %v8451_v49 }
 0x4d4   : > { %v7231_v16 = vpop.permute.xlu1 %2843 }
 0x4d5   : > { %8467 = vst [vmem:[#allocation66_spill] sm:$0xff] %v7231_v16 }
 0x4d6   : > { %2656 = vmatmul.mubr.f32.gmra.mrb[46].mxu1 %v8452_v13 }
 0x4d7   : > { %2660 = vmatprep.mubr.f32.mxu1 %v8453_v48 }
 0x4d8   : > { %v7233_v49 = vpop.permute.xlu1 %2851 }
 0x4d9   : > { %8468 = vst [vmem:[#allocation60_spill] sm:$0xff] %v7233_v49 }
 0x4da   : > { %2661 = vmatmul.mubr.f32.gmra.mrb[48].mxu1 %v8455_v43  ;;  %v3660_v43 = vcombine.high %v3650_v55, %v3650_v55 }
 0x4db   : > { %2665 = vmatprep.mubr.f32.mxu1 %v8456_v58 }
 0x4dc   : > { %v7235_v13 = vpop.permute.xlu1 %2859  ;;  %v3677_v58 = vrot.slane %v3660_v43, %v8420_v42 }
 0x4dd   : > { %8469 = vst [vmem:[#allocation44_spill] sm:$0xff] %v7235_v13 }
 0x4de   : > { %2666 = vmatmul.mubr.f32.gmra.mrb[50].mxu1 %v8457_v23  ;;  %3707 = vperm.xlu0 %5145, %v3677_v58   ;;  %v3613_v23 = vcombine.high %v3611_v60, %v3611_v60  ;;  %v1654_v60 = vpop.permute.xlu0 %1653 }
 0x4df   : > { %2670 = vmatprep.mubr.f32.mxu1 %v8458_v39  ;;  %v1684_v38 = vmul.f32 %v1654_v60, %v8493_v8  ;;  %v7309_v6 = vmul.f32 %v8494_v14, %v1654_v60  ;;  %v7339_v28 = vmul.f32 %v1654_v60, %v8496_v17 }
 0x4e0   : > { %v7237_v48 = vpop.permute.xlu1 %2867 }
 0x4e1   : > { %8470 = vst [vmem:[#allocation67_spill] sm:$0xff] %v7237_v48  ;;  %v8501_v48 = vld [vmem:[#allocation94_spill] sm:$0xff] }
 0x4e2   : > { %2671 = vmatmul.mubr.f32.gmra.mrb[52].mxu1 %v8460_v20  ;;  %v3627_v20 = vrot.slane %v3613_v23, %v8413_v5  ;;  %v1662_v23 = vpop.permute.xlu0 %1661 }
 0x4e3   : > { %2675 = vmatprep.mubr.f32.mxu1 %v8461_v33  ;;  %v1692_v12 = vmul.f32 %v1662_v23, %v8493_v8  ;;  %v7316_v10 = vmul.f32 %v8494_v14, %v1662_v23  ;;  %v7346_v25 = vmul.f32 %v1662_v23, %v8496_v17 }
 0x4e4   : > { %v7240_v39 = vpop.permute.xlu1 %2875  ;;  %v3629_v33 = vcombine.high %v3627_v20, %v3627_v20 }
 0x4e5   : > { %8471 = vst [vmem:[#allocation63_spill] sm:$0xff] %v7240_v39 }
 0x4e6   : > { %2676 = vmatmul.mubr.f32.gmra.mrb[54].mxu1 %v8463_v59  ;;  %v3657_v59 = vrot.slane %v3629_v33, %v8413_v5  ;;  %v1670_v33 = vpop.permute.xlu0 %1669 }
 0x4e7   : > { %v7323_v53 = vmul.f32 %v8494_v14, %v1670_v33 }
 0x4e8   : > { %v7244_v56 = vpop.permute.xlu1 %2883  ;;  %v3685_v32 = vrot.slane %v3657_v59, %v8420_v42  ;;  %v3661_v34 = vcombine.high %v3657_v59, %v3657_v59 }
 0x4e9   : > { %8472 = vst [vmem:[#allocation132_spill] sm:$0xff] %v7244_v56  ;;  %v8500_v56 = vld [vmem:[#allocation89_spill] sm:$0xff] }
 0x4ea   : > { %3715 = vperm.xlu0 %5145, %v3685_v32   ;;  %v3693_v41 = vrot.slane %v3661_v34, %v8420_v42  ;;  %v1678_v22 = vpop.permute.xlu0 %1677 }
 0x4eb   : > { %v1708_v50 = vmul.f32 %v1678_v22, %v8493_v8  ;;  %v7330_v40 = vmul.f32 %v8494_v14, %v1678_v22 }
 0x4ec   : > { %v7248_v55 = vpop.permute.xlu1 %2891 }
 0x4ed   : > { %8473 = vst [vmem:[#allocation121_spill] sm:$0xff] %v7248_v55 }
 0x4ee   : > { %3723 = vperm.xlu0 %5145, %v3693_v41   ;;  %v7258_v36 = vpop.permute.xlu0 %3387  ;;  %v3636_v41 = vrot.slane %v3620_v24, %v8413_v5 }
 0x4ef   : > { %8478 = vst [vmem:[#allocation135_spill] sm:$0xff] %v7258_v36  ;;  %v3643_v36 = vrot.slane %v3627_v20, %v8413_v5 }
 0x4f0   : > { %v7250_v43 = vpop.permute.xlu1 %2963 }
 0x4f1   : > { %8474 = vst [vmem:[#allocation83_spill] sm:$0xff] %v7250_v43  ;;  %v3665_v43 = vrot.slane %v3636_v41, %v8420_v42 }
 0x4f2   : > { %v7262_v34 = vpop.permute.xlu0 %3399 }
 0x4f3   : > { %8480 = vst [vmem:[#allocation85_spill] sm:$0xff] %v7262_v34  ;;  %3695 = vperm.xlu1 %5146, %v3665_v43   ;;  %v3659_v34 = vcombine.high %v3643_v36, %v3643_v36  ;;  %v8488_v43 = vld [vmem:[#allocation149_spill] sm:$0xff] }
 0x4f4   : > { %v7252_v58 = vpop.permute.xlu1 %2971  ;;  %v1688_v3 = vmul.f32 %v8488_v43, %v8493_v8  ;;  %v7313_v45 = vmul.f32 %v8494_v14, %v8488_v43  ;;  %v7343_v61 = vmul.f32 %v8488_v43, %v8496_v17 }
 0x4f5   : > { %8475 = vst [vmem:[#allocation47_spill] sm:$0xff] %v7252_v58  ;;  %v3658_v58 = vcombine.high %v3636_v41, %v3636_v41  ;;  %v3689_v24 = vrot.slane %v3659_v34, %v8420_v42  ;;  %v8492_v34 = vld [vmem:[#allocation152_spill] sm:$0xff] }
 0x4f6   : > { %v7268_v55 = vpop.permute.xlu0 %3407  ;;  %v7334_v9 = vmul.f32 %v8494_v14, %v8492_v34 }
 0x4f7   : > { %8482 = vst [vmem:[#allocation58_spill] sm:$0xff] %v7268_v55  ;;  %v8487_v55 = vld [vmem:[#allocation153_spill] sm:$0xff] }
 0x4f8   : > { %v7254_v29 = vpop.permute.xlu1 %2979  ;;  %v1693_v5 = vmul.f32 %v8487_v55, %v1662_v23  ;;  %v7366_v23 = vmul.f32 %v8492_v34, %v8496_v17 }
 0x4f9   : > { %8476 = vst [vmem:[#allocation133_spill] sm:$0xff] %v7254_v29 }
 0x4fa   : > { %v7275_v0 = vpop.permute.xlu0 %3415 }
 0x4fb   : > { %8484 = vst [vmem:[#allocation90_spill] sm:$0xff] %v7275_v0  ;;  %v1701_v0 = vmul.f32 %v8487_v55, %v1670_v33 }
 0x4fc   : > { %v7256_v57 = vpop.permute.xlu1 %2987 }
 0x4fd   : > { %8477 = vst [vmem:[#allocation134_spill] sm:$0xff] %v7256_v57  ;;  %v3673_v57 = vrot.slane %v3658_v58, %v8420_v42  ;;  %v1689_v58 = vmul.f32 %v8487_v55, %v8488_v43 }
 0x4fe   : > { %v7280_v41 = vpop.permute.xlu0 %3423 }
 0x4ff   : > { %3703 = vperm.xlu1 %5146, %v3673_v57   ;;  %8486 = vst [vmem:[#allocation92_spill] sm:$0xff] %v7280_v41  ;;  %v8489_v57 = vld [vmem:[#allocation150_spill] sm:$0xff]  ;;  %v1713_v41 = vmul.f32 %v8487_v55, %v8492_v34 }
 0x500   : > { %v7260_v59 = vpop.permute.xlu1 %3391  ;;  %v1697_v20 = vmul.f32 %v8487_v55, %v8489_v57  ;;  %v7320_v44 = vmul.f32 %v8494_v14, %v8489_v57  ;;  %v7350_v2 = vmul.f32 %v8489_v57, %v8496_v17 }
 0x501   : > { %8479 = vst [vmem:[#allocation136_spill] sm:$0xff] %v7260_v59  ;;  %v3681_v59 = vrot.slane %v3643_v36, %v8420_v42 }
 0x502   : > { %v7336_v18 = vpop.permute.xlu0 %3431 }
 0x503   : > { %3711 = vperm.xlu1 %5146, %v3681_v59   ;;  %v8491_v59 = vld [vmem:[#allocation151_spill] sm:$0xff]  ;;  %8495 = vst [vmem:[#allocation95_spill] sm:$0xff] %v7336_v18  ;;  %v7362_v18 = vmul.f32 %v1678_v22, %v8496_v17 }
 0x504   : > { %v7264_v32 = vpop.permute.xlu1 %3395  ;;  %v1705_v42 = vmul.f32 %v8487_v55, %v8491_v59  ;;  %v1704_v35 = vmul.f32 %v8491_v59, %v8493_v8 }
 0x505   : > { %8481 = vst [vmem:[#allocation87_spill] sm:$0xff] %v7264_v32 }
 0x506   : > { %v7384_v47 = vpop.permute.xlu0 %3439 }
 0x507   : > { %3719 = vperm.xlu1 %5146, %v3689_v24   ;;  %v1696_v24 = vmul.f32 %v8489_v57, %v8493_v8 }
 0x508   : > { %v7270_v29 = vpop.permute.xlu1 %3403 }
 0x509   : > { %8483 = vst [vmem:[#allocation88_spill] sm:$0xff] %v7270_v29  ;;  %v1685_v29 = vmul.f32 %v8487_v55, %v1654_v60  ;;  %v7359_v60 = vmul.f32 %v8491_v59, %v8496_v17 }
 0x50c   : > { %v7277_v32 = vpop.permute.xlu1 %3411 }
 0x50d   : > { %8485 = vst [vmem:[#allocation91_spill] sm:$0xff] %v7277_v32  ;;  %v1709_v32 = vmul.f32 %v8487_v55, %v1678_v22  ;;  %v1712_v55 = vmul.f32 %v8492_v34, %v8493_v8 }
 0x510   : > { %v7288_v36 = vpop.permute.xlu1 %3419 }
 0x511   : > { %8490 = vst [vmem:[#allocation93_spill] sm:$0xff] %v7288_v36  ;;  %v1700_v36 = vmul.f32 %v1670_v33, %v8493_v8  ;;  %v7327_v8 = vmul.f32 %v8494_v14, %v8491_v59  ;;  %v7355_v14 = vmul.f32 %v1670_v33, %v8496_v17  ;;  %v8499_v33 = vld [vmem:[#allocation86_spill] sm:$0xff] }
 0x514   : > { %v7352_v1 = vpop.permute.xlu1 %3427 }
 0x515   : > { %8497 = vst [vmem:[#allocation96_spill] sm:$0xff] %v7352_v1 }
 0x55e   : > { %v4619_v43 = vpop.f32.mrb[34].mxu1 }
 0x55f   : > { %v2338_v57 = vmul.f32 %v4619_v43, %v7168_v30  ;;  %v2342_v51 = vmul.f32 %v4619_v43, %v8498_v11  ;;  %v2346_v1 = vmul.f32 %v4619_v43, %v7175_v31  ;;  %v2350_v63 = vmul.f32 %v4619_v43, %v8499_v33  ;;  %v2094_v37 = vpop.f32.mrb[35].mxu1 }
 0x560   : > { %v2354_v59 = vmul.f32 %v4619_v43, %v7180_v7  ;;  %v2358_v39 = vmul.f32 %v4619_v43, %v8500_v56  ;;  %v2362_v22 = vmul.f32 %v4619_v43, %v7185_v54  ;;  %v2366_v13 = vmul.f32 %v4619_v43, %v8501_v48  ;;  %v7394_v43 = vpop.permute.xlu1 %3435 }
 0x561   : > { %v7376_v17 = vadd.f32 %v2338_v57, %v1685_v29  ;;  %v7378_v34 = vadd.f32 %v2342_v51, %v1689_v58  ;;  %v7380_v49 = vadd.f32 %v2346_v1, %v1693_v5  ;;  %v7382_v16 = vadd.f32 %v2350_v63, %v1697_v20 }
 0x562   : > { %v7386_v19 = vadd.f32 %v2354_v59, %v1701_v0  ;;  %v7388_v62 = vadd.f32 %v2358_v39, %v1705_v42  ;;  %v7390_v21 = vadd.f32 %v2362_v22, %v1709_v32  ;;  %v7392_v4 = vadd.f32 %v2366_v13, %v1713_v41  ;;  %v4622_v26 = vpop.f32.mrb[36].mxu1 }
 0x563   : > { %8502 = vst [vmem:[#allocation98_spill] sm:$0xff] %v7376_v17  ;;  %8503 = vst [vmem:[#allocation99_spill] sm:$0xff] %v7378_v34  ;;  %v2337_v51 = vmul.f32 %v7168_v30, %v2094_v37  ;;  %v2341_v1 = vmul.f32 %v8498_v11, %v2094_v37  ;;  %v2345_v63 = vmul.f32 %v7175_v31, %v2094_v37  ;;  %v2104_v58 = vpop.f32.mrb[37].mxu1  ;;  %v8572_v34 = vld [vmem:[#allocation117_spill] sm:$0xff] }
 0x564   : > { %8504 = vst [vmem:[#allocation100_spill] sm:$0xff] %v7380_v49  ;;  %8505 = vst [vmem:[#allocation101_spill] sm:$0xff] %v7382_v16  ;;  %v2349_v29 = vmul.f32 %v8499_v33, %v2094_v37  ;;  %v2353_v0 = vmul.f32 %v7180_v7, %v2094_v37  ;;  %v2357_v39 = vmul.f32 %v8500_v56, %v2094_v37  ;;  %v8573_v17 = vld [vmem:[#allocation125_spill] sm:$0xff] }
 0x565   : > { %8506 = vst [vmem:[#allocation103_spill] sm:$0xff] %v7386_v19  ;;  %8507 = vst [vmem:[#allocation104_spill] sm:$0xff] %v7388_v62  ;;  %v2361_v32 = vmul.f32 %v7185_v54, %v2094_v37  ;;  %v2365_v13 = vmul.f32 %v8501_v48, %v2094_v37  ;;  %v7404_v41 = vadd.f32 %v2337_v51, %v1684_v38  ;;  %v8570_v19 = vld [vmem:[#allocation115_spill] sm:$0xff] }
 0x566   : > { %8508 = vst [vmem:[#allocation106_spill] sm:$0xff] %v7390_v21  ;;  %8509 = vst [vmem:[#allocation51_spill] sm:$0xff] %v7392_v4  ;;  %v7406_v5 = vadd.f32 %v2341_v1, %v1688_v3  ;;  %v7408_v20 = vadd.f32 %v2345_v63, %v1692_v12  ;;  %v7410_v42 = vadd.f32 %v2349_v29, %v1696_v24 }
 0x567   : > { %8510 = vst [vmem:[#allocation50_spill] sm:$0xff] %v7404_v41  ;;  %v7412_v57 = vadd.f32 %v2353_v0, %v1700_v36  ;;  %v7414_v59 = vadd.f32 %v2357_v39, %v1704_v35  ;;  %v7416_v22 = vadd.f32 %v2361_v32, %v1708_v50  ;;  %v7418_v4 = vadd.f32 %v2365_v13, %v1712_v55  ;;  %v7428_v50 = vpop.permute.xlu0 %3447  ;;  %v7430_v55 = vpop.permute.xlu1 %3443 }
 0x568   : > { %8511 = vst [vmem:[#allocation52_spill] sm:$0xff] %v7406_v5  ;;  %8512 = vst [vmem:[#allocation137_spill] sm:$0xff] %v7408_v20  ;;  %v2340_v21 = vmul.f32 %v4622_v26, %v7168_v30  ;;  %v2344_v37 = vmul.f32 %v4622_v26, %v8498_v11  ;;  %v2348_v38 = vmul.f32 %v4622_v26, %v7175_v31  ;;  %v8568_v20 = vld [vmem:[#allocation111_spill] sm:$0xff] }
 0x569   : > { %8513 = vst [vmem:[#allocation138_spill] sm:$0xff] %v7410_v42  ;;  %8514 = vst [vmem:[#allocation139_spill] sm:$0xff] %v7412_v57  ;;  %v2352_v3 = vmul.f32 %v4622_v26, %v8499_v33  ;;  %v2356_v12 = vmul.f32 %v4622_v26, %v7180_v7  ;;  %v2360_v24 = vmul.f32 %v4622_v26, %v8500_v56  ;;  %v8567_v42 = vld [vmem:[#allocation122_spill] sm:$0xff] }
 0x56a   : > { %8515 = vst [vmem:[#allocation140_spill] sm:$0xff] %v7414_v59  ;;  %8516 = vst [vmem:[#allocation141_spill] sm:$0xff] %v7416_v22  ;;  %v2364_v36 = vmul.f32 %v4622_v26, %v7185_v54  ;;  %v2368_v35 = vmul.f32 %v4622_v26, %v8501_v48  ;;  %v7433_v51 = vadd.f32 %v2340_v21, %v7309_v6  ;;  %v8565_v22 = vld [vmem:[#allocation120_spill] sm:$0xff] }
 0x56b   : > { %8517 = vst [vmem:[#allocation142_spill] sm:$0xff] %v7418_v4  ;;  %v7436_v1 = vadd.f32 %v2344_v37, %v7313_v45  ;;  %v7439_v63 = vadd.f32 %v2348_v38, %v7316_v10  ;;  %v7442_v29 = vadd.f32 %v2352_v3, %v7320_v44  ;;  %v7445_v0 = vadd.f32 %v2356_v12, %v7323_v53  ;;  %v8537_v3 = vld [vmem:[#allocation102_spill] sm:$0xff]  ;;  %v8564_v4 = vld [vmem:[#allocation113_spill] sm:$0xff] }
 0x56c   : > { %8518 = vst [vmem:[#allocation143_spill] sm:$0xff] %v7433_v51  ;;  %v7448_v26 = vadd.f32 %v2360_v24, %v7327_v8  ;;  %v7451_v39 = vadd.f32 %v2364_v36, %v7330_v40  ;;  %v7454_v6 = vadd.f32 %v2368_v35, %v7334_v9  ;;  %v2339_v45 = vmul.f32 %v7168_v30, %v2104_v58  ;;  %v8538_v36 = vld [vmem:[#allocation105_spill] sm:$0xff] }
 0x56d   : > { %8519 = vst [vmem:[#allocation144_spill] sm:$0xff] %v7436_v1  ;;  %8520 = vst [vmem:[#allocation145_spill] sm:$0xff] %v7439_v63  ;;  %v2343_v10 = vmul.f32 %v8498_v11, %v2104_v58  ;;  %v2347_v21 = vmul.f32 %v7175_v31, %v2104_v58  ;;  %v2351_v44 = vmul.f32 %v8499_v33, %v2104_v58 }
 0x56e   : > { %8521 = vst [vmem:[#allocation146_spill] sm:$0xff] %v7442_v29  ;;  %8522 = vst [vmem:[#allocation147_spill] sm:$0xff] %v7445_v0  ;;  %v2355_v53 = vmul.f32 %v7180_v7, %v2104_v58  ;;  %v2359_v32 = vmul.f32 %v8500_v56, %v2104_v58  ;;  %v2363_v8 = vmul.f32 %v7185_v54, %v2104_v58 }
 0x56f   : > { %8523 = vst [vmem:[#allocation148_spill] sm:$0xff] %v7448_v26  ;;  %8524 = vst [vmem:[#allocation153_spill] sm:$0xff] %v7451_v39  ;;  %v2367_v40 = vmul.f32 %v8501_v48, %v2104_v58  ;;  %v7465_v13 = vadd.f32 %v2339_v45, %v7339_v28  ;;  %v7468_v9 = vadd.f32 %v2343_v10, %v7343_v61  ;;  %v7488_v61 = vpop.permute.xlu0 %3455  ;;  %v7490_v48 = vpop.permute.xlu1 %3451  ;;  %v8540_v10 = vld [vmem:[#allocation107_spill] sm:$0xff] }
 0x570   : > { %8525 = vst [vmem:[#allocation149_spill] sm:$0xff] %v7454_v6  ;;  %v7471_v11 = vadd.f32 %v2347_v21, %v7346_v25  ;;  %v7474_v30 = vadd.f32 %v2351_v44, %v7350_v2  ;;  %v7477_v31 = vadd.f32 %v2355_v53, %v7355_v14  ;;  %v7480_v7 = vadd.f32 %v2359_v32, %v7359_v60  ;;  %v8543_v32 = vld [vmem:[#allocation82_spill] sm:$0xff] }
 0x571   : > { %8526 = vst [vmem:[#allocation150_spill] sm:$0xff] %v7465_v13  ;;  %8527 = vst [vmem:[#allocation151_spill] sm:$0xff] %v7468_v9  ;;  %v7483_v54 = vadd.f32 %v2363_v8, %v7362_v18  ;;  %v7486_v28 = vadd.f32 %v2367_v40, %v7366_v23  ;;  %v8536_v23 = vld [vmem:[#allocation97_spill] sm:$0xff] }
 0x572   : > { %8528 = vst [vmem:[#allocation152_spill] sm:$0xff] %v7471_v11  ;;  %8529 = vst [vmem:[#allocation154_spill] sm:$0xff] %v7474_v30 }
 0x573   : > { %8530 = vst [vmem:[#allocation155_spill] sm:$0xff] %v7477_v31  ;;  %8531 = vst [vmem:[#allocation156_spill] sm:$0xff] %v7480_v7  ;;  %v7492_v25 = vpop.permute.xlu0 %3463  ;;  %v7494_v2 = vpop.permute.xlu1 %3459  ;;  %v8552_v31 = vld [vmem:[#allocation54_spill] sm:$0xff] }
 0x574   : > { %8532 = vst [vmem:[#allocation84_spill] sm:$0xff] %v7483_v54  ;;  %8533 = vst [vmem:[#allocation86_spill] sm:$0xff] %v7486_v28 }
 0x577   : > { %v7496_v56 = vpop.permute.xlu0 %3471  ;;  %v7498_v14 = vpop.permute.xlu1 %3467 }
 0x578   : > { %8534 = vst [vmem:[#allocation89_spill] sm:$0xff] %v7496_v56  ;;  %v8604_v56 = vld [vmem:[#allocation96_spill] sm:$0xff] }
 0x57b   : > { %v7526_v40 = vpop.permute.xlu0 %3479 }
 0x57c   : > { %8544 = vst [vmem:[#allocation97_spill] sm:$0xff] %v7526_v40  ;;  %v8580_v40 = vld [vmem:[#allocation119_spill] sm:$0xff] }
 0x57d   : > { %v7500_v60 = vpop.f32.mrb[38].mxu1 }
 0x57e   : > { %8535 = vst [vmem:[#allocation94_spill] sm:$0xff] %v7500_v60  ;;  %v2894_v18 = vmul.f32 %v7190_v15, %v7500_v60  ;;  %v2895_v33 = vmul.f32 %v8536_v23, %v7500_v60  ;;  %v2896_v58 = vmul.f32 %v7195_v27, %v7500_v60  ;;  %v2897_v37 = vmul.f32 %v7199_v52, %v7500_v60  ;;  %v4641_v38 = vpop.f32.mrb[39].mxu1  ;;  %v8539_v15 = vld [vmem:[#allocation80_spill] sm:$0xff]  ;;  %v8541_v27 = vld [vmem:[#allocation81_spill] sm:$0xff] }
 0x57f   : > { %v2898_v12 = vmul.f32 %v8537_v3, %v7500_v60  ;;  %v2899_v24 = vmul.f32 %v7205_v46, %v7500_v60  ;;  %v2900_v35 = vmul.f32 %v8538_v36, %v7500_v60  ;;  %v2901_v45 = vmul.f32 %v8539_v15, %v7500_v60  ;;  %v8542_v52 = vld [vmem:[#allocation108_spill] sm:$0xff]  ;;  %v7528_v46 = vpop.permute.xlu1 %3475  ;;  %v8546_v23 = vld [vmem:[#allocation109_spill] sm:$0xff]  ;;  %v3488_v62 = vpop.permute.xlu0 %3487 }
 0x580   : > { %v2902_v21 = vmul.f32 %v8540_v10, %v7500_v60  ;;  %v2903_v44 = vmul.f32 %v8541_v27, %v7500_v60  ;;  %v2904_v53 = vmul.f32 %v8542_v52, %v7500_v60  ;;  %v2905_v8 = vmul.f32 %v8543_v32, %v7500_v60  ;;  %8545 = vst [vmem:[#allocation102_spill] sm:$0xff] %v7528_v46  ;;  %v8547_v3 = vld [vmem:[#allocation64_spill] sm:$0xff]  ;;  %v8548_v15 = vld [vmem:[#allocation53_spill] sm:$0xff]  ;;  %v8549_v27 = vld [vmem:[#allocation46_spill] sm:$0xff] }
 0x581   : > { %v2906_v38 = vmul.f32 %v8546_v23, %v7500_v60  ;;  %v2907_v36 = vmul.f32 %v8547_v3, %v7500_v60  ;;  %v2908_v10 = vmul.f32 %v8548_v15, %v7500_v60  ;;  %v2909_v28 = vmul.f32 %v8549_v27, %v7500_v60  ;;  %v8550_v52 = vld [vmem:[#allocation43_spill] sm:$0xff]  ;;  %v8551_v32 = vld [vmem:[#allocation49_spill] sm:$0xff]  ;;  %v8553_v23 = vld [vmem:[#allocation66_spill] sm:$0xff] }
 0x582   : > { %v2910_v54 = vmul.f32 %v8550_v52, %v7500_v60  ;;  %v2911_v7 = vmul.f32 %v8551_v32, %v7500_v60  ;;  %v2912_v30 = vmul.f32 %v8552_v31, %v7500_v60  ;;  %v2913_v11 = vmul.f32 %v8553_v23, %v7500_v60  ;;  %v8554_v3 = vld [vmem:[#allocation45_spill] sm:$0xff]  ;;  %v8555_v15 = vld [vmem:[#allocation60_spill] sm:$0xff]  ;;  %v8556_v27 = vld [vmem:[#allocation55_spill] sm:$0xff] }
 0x583   : > { %v2914_v9 = vmul.f32 %v8554_v3, %v7500_v60  ;;  %v2915_v13 = vmul.f32 %v8555_v15, %v7500_v60  ;;  %v2916_v6 = vmul.f32 %v8556_v27, %v7500_v60  ;;  %v8557_v52 = vld [vmem:[#allocation44_spill] sm:$0xff]  ;;  %v8559_v31 = vld [vmem:[#allocation67_spill] sm:$0xff]  ;;  %v8560_v23 = vld [vmem:[#allocation57_spill] sm:$0xff]  ;;  %v2927_v59 = vadd.f32 %v2895_v33, %v8565_v22 }
 0x584   : > { %v2917_v39 = vmul.f32 %v8557_v52, %v7500_v60  ;;  %v8558_v32 = vld [vmem:[#allocation56_spill] sm:$0xff]  ;;  %v2919_v0 = vmul.f32 %v8559_v31, %v7500_v60  ;;  %v2920_v29 = vmul.f32 %v8560_v23, %v7500_v60  ;;  %v8561_v3 = vld [vmem:[#allocation63_spill] sm:$0xff]  ;;  %v2926_v52 = vadd.f32 %v2894_v18, %v8564_v4  ;;  %v8574_v18 = vld [vmem:[#allocation62_spill] sm:$0xff] }
 0x585   : > { %v2918_v26 = vmul.f32 %v8558_v32, %v7500_v60  ;;  %v2921_v63 = vmul.f32 %v8561_v3, %v7500_v60  ;;  %v8562_v15 = vld [vmem:[#allocation59_spill] sm:$0xff]  ;;  %v8563_v27 = vld [vmem:[#allocation132_spill] sm:$0xff]  ;;  %v2929_v31 = vadd.f32 %v2897_v37, %v8567_v42  ;;  %v2930_v5 = vadd.f32 %v2898_v12, %v8568_v20  ;;  %v3484_v3 = vpop.permute.xlu1 %3483  ;;  %v8575_v33 = vld [vmem:[#allocation126_spill] sm:$0xff] }
 0x586   : > { %v2922_v1 = vmul.f32 %v8562_v15, %v7500_v60  ;;  %v2923_v51 = vmul.f32 %v8563_v27, %v7500_v60  ;;  %v8566_v32 = vld [vmem:[#allocation48_spill] sm:$0xff]  ;;  %v8569_v23 = vld [vmem:[#allocation123_spill] sm:$0xff]  ;;  %v2932_v16 = vadd.f32 %v2900_v35, %v8570_v19  ;;  %v2934_v27 = vadd.f32 %v2902_v21, %v8572_v34  ;;  %v8578_v12 = vld [vmem:[#allocation65_spill] sm:$0xff] }
 0x587   : > { %v2928_v57 = vadd.f32 %v2896_v58, %v8566_v32  ;;  %v2931_v41 = vadd.f32 %v2899_v24, %v8569_v23  ;;  %v8571_v15 = vld [vmem:[#allocation124_spill] sm:$0xff]  ;;  %v2935_v4 = vadd.f32 %v2903_v44, %v8573_v17  ;;  %v2936_v22 = vadd.f32 %v2904_v53, %v8574_v18  ;;  %v8576_v32 = vld [vmem:[#allocation118_spill] sm:$0xff]  ;;  %v8577_v37 = vld [vmem:[#allocation127_spill] sm:$0xff] }
 0x588   : > { %v2933_v49 = vadd.f32 %v2901_v45, %v8571_v15  ;;  %v2937_v58 = vadd.f32 %v2905_v8, %v8575_v33  ;;  %v2938_v42 = vadd.f32 %v2906_v38, %v8576_v32  ;;  %v2939_v20 = vadd.f32 %v2907_v36, %v8577_v37  ;;  %v8579_v23 = vld [vmem:[#allocation128_spill] sm:$0xff]  ;;  %v8581_v35 = vld [vmem:[#allocation129_spill] sm:$0xff]  ;;  %v8582_v15 = vld [vmem:[#allocation130_spill] sm:$0xff] }
 0x589   : > { %v2940_v24 = vadd.f32 %v2908_v10, %v8578_v12  ;;  %v2941_v60 = vadd.f32 %v2909_v28, %v8579_v23  ;;  %v2942_v19 = vadd.f32 %v2910_v54, %v8580_v40  ;;  %v2943_v45 = vadd.f32 %v2911_v7, %v8581_v35  ;;  %v8583_v21 = vld [vmem:[#allocation131_spill] sm:$0xff]  ;;  %v8584_v44 = vld [vmem:[#allocation68_spill] sm:$0xff]  ;;  %v8585_v18 = vld [vmem:[#allocation69_spill] sm:$0xff] }
 0x58a   : > { %v2944_v34 = vadd.f32 %v2912_v30, %v8582_v15  ;;  %v2945_v17 = vadd.f32 %v2913_v11, %v8583_v21  ;;  %v2946_v53 = vadd.f32 %v2914_v9, %v8584_v44  ;;  %v2947_v8 = vadd.f32 %v2915_v13, %v8585_v18  ;;  %v8586_v33 = vld [vmem:[#allocation70_spill] sm:$0xff]  ;;  %v8587_v32 = vld [vmem:[#allocation71_spill] sm:$0xff]  ;;  %v8588_v37 = vld [vmem:[#allocation72_spill] sm:$0xff]  ;;  %v3496_v15 = vpop.permute.xlu0 %3495  ;;  %v3492_v13 = vpop.permute.xlu1 %3491 }
 0x58b   : > { %v2948_v38 = vadd.f32 %v2916_v6, %v8586_v33  ;;  %v2949_v36 = vadd.f32 %v2917_v39, %v8587_v32  ;;  %v2950_v10 = vadd.f32 %v2918_v26, %v8588_v37  ;;  %v8589_v12 = vld [vmem:[#allocation73_spill] sm:$0xff]  ;;  %v8590_v54 = vld [vmem:[#allocation74_spill] sm:$0xff]  ;;  %v8591_v7 = vld [vmem:[#allocation75_spill] sm:$0xff] }
 0x58c   : > { %v2951_v28 = vadd.f32 %v2919_v0, %v8589_v12  ;;  %v2952_v40 = vadd.f32 %v2920_v29, %v8590_v54  ;;  %v2953_v23 = vadd.f32 %v2921_v63, %v8591_v7  ;;  %v8592_v30 = vld [vmem:[#allocation76_spill] sm:$0xff]  ;;  %v8593_v11 = vld [vmem:[#allocation77_spill] sm:$0xff]  ;;  %v8594_v21 = vld [vmem:[#allocation135_spill] sm:$0xff] }
 0x58d   : > { %v2954_v35 = vadd.f32 %v2922_v1, %v8592_v30  ;;  %v2955_v9 = vadd.f32 %v2923_v51, %v8593_v11  ;;  %v3514_v6 = vadd.f32 %v8594_v21, %v2926_v52  ;;  %v8595_v44 = vld [vmem:[#allocation136_spill] sm:$0xff]  ;;  %v8596_v18 = vld [vmem:[#allocation87_spill] sm:$0xff]  ;;  %v8597_v33 = vld [vmem:[#allocation85_spill] sm:$0xff]  ;;  %v3524_v52 = vadd.f32 %v8604_v56, %v2936_v22 }
 0x58e   : > { %v3515_v39 = vadd.f32 %v8595_v44, %v2927_v59  ;;  %v3516_v26 = vadd.f32 %v8596_v18, %v2928_v57  ;;  %v3517_v0 = vadd.f32 %v8597_v33, %v2929_v31  ;;  %v8598_v32 = vld [vmem:[#allocation88_spill] sm:$0xff]  ;;  %v8599_v29 = vld [vmem:[#allocation58_spill] sm:$0xff]  ;;  %v8600_v63 = vld [vmem:[#allocation91_spill] sm:$0xff]  ;;  %v3526_v57 = vadd.f32 %v7394_v43, %v2938_v42 }
 0x58f   : > { %v3518_v37 = vadd.f32 %v8598_v32, %v2930_v5  ;;  %v3519_v12 = vadd.f32 %v8599_v29, %v2931_v41  ;;  %v3520_v54 = vadd.f32 %v8600_v63, %v2932_v16  ;;  %v8601_v1 = vld [vmem:[#allocation90_spill] sm:$0xff]  ;;  %v8602_v30 = vld [vmem:[#allocation93_spill] sm:$0xff]  ;;  %v8603_v11 = vld [vmem:[#allocation92_spill] sm:$0xff]  ;;  %v3527_v31 = vadd.f32 %v7384_v47, %v2939_v20 }
 0x590   : > { %v3521_v7 = vadd.f32 %v8601_v1, %v2933_v49  ;;  %v3522_v51 = vadd.f32 %v8602_v30, %v2934_v27  ;;  %v3523_v46 = vadd.f32 %v8603_v11, %v2935_v4  ;;  %v8605_v21 = vld [vmem:[#allocation95_spill] sm:$0xff]  ;;  %v3528_v5 = vadd.f32 %v7430_v55, %v2940_v24  ;;  %v8606_v43 = vld [vmem:[#allocation89_spill] sm:$0xff]  ;;  %v8607_v47 = vld [vmem:[#allocation102_spill] sm:$0xff] }
 0x591   : > { %v3525_v59 = vadd.f32 %v8605_v21, %v2937_v58  ;;  %v3529_v41 = vadd.f32 %v7428_v50, %v2941_v60  ;;  %v3530_v16 = vadd.f32 %v7490_v48, %v2942_v19  ;;  %v3531_v49 = vadd.f32 %v7488_v61, %v2943_v45  ;;  %v8608_v50 = vld [vmem:[#allocation97_spill] sm:$0xff]  ;;  %v3504_v48 = vpop.permute.xlu0 %3503  ;;  %v3500_v61 = vpop.permute.xlu1 %3499  ;;  %v8609_v63 = vld [vmem:[#allocation94_spill] sm:$0xff] }
 0x592   : > { %v7616_v27 = vadd.f32 %v7494_v2, %v2944_v34  ;;  %v7619_v56 = vadd.f32 %v7492_v25, %v2945_v17  ;;  %v7622_v4 = vadd.f32 %v7498_v14, %v2946_v53  ;;  %v7625_v22 = vadd.f32 %v8606_v43, %v2947_v8 }
 0x593   : > { %v7628_v55 = vadd.f32 %v8607_v47, %v2948_v38  ;;  %v7631_v60 = vadd.f32 %v8608_v50, %v2949_v36  ;;  %v3538_v58 = vadd.f32 %v3484_v3, %v2950_v10  ;;  %v3539_v2 = vadd.f32 %v3488_v62, %v2951_v28 }
 0x594   : > { %v7633_v42 = vadd.f32 %v3492_v13, %v2952_v40  ;;  %v7635_v25 = vadd.f32 %v3496_v15, %v2953_v23  ;;  %v7637_v14 = vadd.f32 %v3500_v61, %v2954_v35  ;;  %v7639_v20 = vadd.f32 %v3504_v48, %v2955_v9 }
 0x595   : > { %v3546_v24 = vmax.f32 %v3514_v6, 0.0  ;;  %v3547_v19 = vmax.f32 %v3515_v39, 0.0  ;;  %v3548_v45 = vmax.f32 %v3516_v26, 0.0  ;;  %v3549_v34 = vmax.f32 %v3517_v0, 0.0 }
 0x596   : > { %v3550_v17 = vmax.f32 %v3518_v37, 0.0  ;;  %v3551_v53 = vmax.f32 %v3519_v12, 0.0  ;;  %v3552_v8 = vmax.f32 %v3520_v54, 0.0  ;;  %v3553_v38 = vmax.f32 %v3521_v7, 0.0  ;;  %v3512_v12 = vpop.permute.xlu0 %3511  ;;  %v8610_v54 = vld [vmem:[#allocation121_spill] sm:$0xff]  ;;  %v8611_v7 = vld [vmem:[#allocation110_spill] sm:$0xff] }
 0x597   : > { %v3554_v36 = vmax.f32 %v3522_v51, 0.0  ;;  %v3555_v3 = vmax.f32 %v3523_v46, 0.0  ;;  %3579 = vst.msk [vmem:[%s7643_s16] sm:$0xff] %vm3578_vm2, %v3546_v24  ;;  %3580 = vst.msk [vmem:[%s7643_s16 + $0x8] sm:$0xff] %vm3578_vm2, %v3547_v19  ;;  %v3556_v62 = vmax.f32 %v3524_v52, 0.0  ;;  %v3557_v10 = vmax.f32 %v3525_v59, 0.0  ;;  %v3508_v51 = vpop.permute.xlu1 %3507 }
 0x598   : > { %v3558_v46 = vmax.f32 %v3526_v57, 0.0  ;;  %v3559_v28 = vmax.f32 %v3527_v31, 0.0  ;;  %3581 = vst.msk [vmem:[%s7643_s16 + $0x10] sm:$0xff] %vm3578_vm2, %v3548_v45  ;;  %3582 = vst.msk [vmem:[%s7643_s16 + $0x18] sm:$0xff] %vm3578_vm2, %v3549_v34  ;;  %v3560_v40 = vmax.f32 %v3528_v5, 0.0  ;;  %v3561_v23 = vmax.f32 %v3529_v41, 0.0 }
 0x599   : > { %3583 = vst.msk [vmem:[%s7643_s16 + $0x20] sm:$0xff] %vm3578_vm2, %v3550_v17  ;;  %3584 = vst.msk [vmem:[%s7643_s16 + $0x28] sm:$0xff] %vm3578_vm2, %v3551_v53  ;;  %v3562_v35 = vmax.f32 %v3530_v16, 0.0  ;;  %v3563_v9 = vmax.f32 %v3531_v49, 0.0  ;;  %v3564_v15 = vmax.f32 %v7616_v27, 0.0  ;;  %v3565_v13 = vmax.f32 %v7619_v56, 0.0 }
 0x59a   : > { %3585 = vst.msk [vmem:[%s7643_s16 + $0x30] sm:$0xff] %vm3578_vm2, %v3552_v8  ;;  %3586 = vst.msk [vmem:[%s7643_s16 + $0x38] sm:$0xff] %vm3578_vm2, %v3553_v38  ;;  %v3566_v6 = vmax.f32 %v7622_v4, 0.0  ;;  %v3567_v44 = vmax.f32 %v7625_v22, 0.0  ;;  %v3568_v39 = vmax.f32 %v7628_v55, 0.0  ;;  %v3569_v18 = vmax.f32 %v7631_v60, 0.0 }
 0x59b   : > { %3587 = vst.msk [vmem:[%s7643_s16 + $0x40] sm:$0xff] %vm3578_vm2, %v3554_v36  ;;  %3588 = vst.msk [vmem:[%s7643_s16 + $0x48] sm:$0xff] %vm3578_vm2, %v3555_v3  ;;  %v3570_v26 = vmax.f32 %v3538_v58, 0.0  ;;  %v3571_v33 = vmax.f32 %v3539_v2, 0.0  ;;  %v3572_v0 = vmax.f32 %v7633_v42, 0.0  ;;  %v3573_v32 = vmax.f32 %v7635_v25, 0.0 }
 0x59c   : > { %3589 = vst.msk [vmem:[%s7643_s16 + $0x50] sm:$0xff] %vm3578_vm2, %v3556_v62  ;;  %3590 = vst.msk [vmem:[%s7643_s16 + $0x58] sm:$0xff] %vm3578_vm2, %v3557_v10  ;;  %v3574_v37 = vmax.f32 %v7637_v14, 0.0  ;;  %v3575_v29 = vmax.f32 %v7639_v20, 0.0  ;;  %v2925_v1 = vmul.f32 %v8610_v54, %v8609_v63  ;;  %v2924_v30 = vmul.f32 %v8611_v7, %v8609_v63  ;;  %v8612_v52 = vld [vmem:[#allocation78_spill] sm:$0xff]  ;;  %v8613_v59 = vld [vmem:[#allocation79_spill] sm:$0xff] }
 0x59d   : > { %3591 = vst.msk [vmem:[%s7643_s16 + $0x60] sm:$0xff] %vm3578_vm2, %v3558_v46  ;;  %3592 = vst.msk [vmem:[%s7643_s16 + $0x68] sm:$0xff] %vm3578_vm2, %v3559_v28  ;;  %v4505_v11 = vpop.f32.mrb[40].mxu1  ;;  %v5157_v3 = vld [vmem:[#allocation10 + $0x8] sm:$0xff]  ;;  %v5158_v62 = vld [vmem:[#allocation10 + $0x10] sm:$0xff] }
 0x59e   : > { %3593 = vst.msk [vmem:[%s7643_s16 + $0x70] sm:$0xff] %vm3578_vm2, %v3560_v40  ;;  %3594 = vst.msk [vmem:[%s7643_s16 + $0x78] sm:$0xff] %vm3578_vm2, %v3561_v23  ;;  %v2957_v21 = vadd.f32 %v2925_v1, %v8612_v52  ;;  %v2956_v57 = vadd.f32 %v2924_v30, %v8613_v59  ;;  %v4506_v31 = vpop.f32.mrb[41].mxu1  ;;  %v5159_v10 = vld [vmem:[#allocation10 + $0x18] sm:$0xff] }
 0x59f   : > { %3595 = vst.msk [vmem:[%s7643_s16 + $0x80] sm:$0xff] %vm3578_vm2, %v3562_v35  ;;  %3596 = vst.msk [vmem:[%s7643_s16 + $0x88] sm:$0xff] %vm3578_vm2, %v3563_v9  ;;  %v4507_v5 = vadd.f32 %v4506_v31, %v4505_v11 }
 0x5a0   : > { %3597 = vst.msk [vmem:[%s7643_s16 + $0x90] sm:$0xff] %vm3578_vm2, %v3564_v15  ;;  %3598 = vst.msk [vmem:[%s7643_s16 + $0x98] sm:$0xff] %vm3578_vm2, %v3565_v13  ;;  %v3545_v41 = vadd.f32 %v3512_v12, %v2957_v21  ;;  %v3544_v16 = vadd.f32 %v3508_v51, %v2956_v57 }
 0x5a1   : > { %3599 = vst.msk [vmem:[%s7643_s16 + $0xa0] sm:$0xff] %vm3578_vm2, %v3566_v6  ;;  %3600 = vst.msk [vmem:[%s7643_s16 + $0xa8] sm:$0xff] %vm3578_vm2, %v3567_v44  ;;  %v4508_v49 = vpop.f32.mrb[42].mxu1 }
 0x5a2   : > { %3601 = vst.msk [vmem:[%s7643_s16 + $0xb0] sm:$0xff] %vm3578_vm2, %v3568_v39  ;;  %3602 = vst.msk [vmem:[%s7643_s16 + $0xb8] sm:$0xff] %vm3578_vm2, %v3569_v18  ;;  %v3577_v27 = vmax.f32 %v3545_v41, 0.0  ;;  %v3576_v56 = vmax.f32 %v3544_v16, 0.0  ;;  %v4509_v4 = vpop.f32.mrb[43].mxu1 }
 0x5a3   : > { %3603 = vst.msk [vmem:[%s7643_s16 + $0xc0] sm:$0xff] %vm3578_vm2, %v3570_v26  ;;  %3604 = vst.msk [vmem:[%s7643_s16 + $0xc8] sm:$0xff] %vm3578_vm2, %v3571_v33  ;;  %v4510_v43 = vadd.f32 %v4509_v4, %v4508_v49 }
 0x5a4   : > { %3605 = vst.msk [vmem:[%s7643_s16 + $0xd0] sm:$0xff] %vm3578_vm2, %v3572_v0  ;;  %3606 = vst.msk [vmem:[%s7643_s16 + $0xd8] sm:$0xff] %vm3578_vm2, %v3573_v32 }
 0x5a5   : > { %3607 = vst.msk [vmem:[%s7643_s16 + $0xe0] sm:$0xff] %vm3578_vm2, %v3574_v37  ;;  %3608 = vst.msk [vmem:[%s7643_s16 + $0xe8] sm:$0xff] %vm3578_vm2, %v3575_v29  ;;  %v4924_v22 = vpack.c.bf16 %v4510_v43, %v4507_v5  ;;  %v4511_v47 = vpop.f32.mrb[44].mxu1 }
 0x5a6   : > { %3610 = vst.msk [vmem:[%s7643_s16 + $0xf8] sm:$0xff] %vm3578_vm2, %v3577_v27  ;;  %3609 = vst.msk [vmem:[%s7643_s16 + $0xf0] sm:$0xff] %vm3578_vm2, %v3576_v56  ;;  %v4512_v55 = vpop.f32.mrb[45].mxu1  ;;  %s5390_s16 = scalar_lea.vmem %s5389_s27, 8192 }
 0x5a7   : > { %v4513_v50 = vadd.f32 %v4512_v55, %v4511_v47  ;;  %4925 = vmatprep.subr.bf16.mxu0 %v4924_v22  ;;  %p5392_p5 = scmp.lt.s32.totalorder %s5390_s16, %s5384_s25 }
 0x5a8   : > { %4927 = vmatpush3.bf16.msra.mxu0 %v4924_v22 }
 0x5a9   : > { %v4514_v60 = vpop.f32.mrb[46].mxu1  ;;  %p5393_p10 = por %p5392_p5, %p5391_p1 }
 0x5aa   : > { %v4515_v48 = vpop.f32.mrb[47].mxu1 }
 0x5ab   : > { %v4516_v61 = vadd.f32 %v4515_v48, %v4514_v60  ;;  %p5394_p6 = pnand %p5393_p10, %p5387_p0 }
 0x5ad   : > { %v4928_v58 = vpack.c.bf16 %v4516_v61, %v4513_v50  ;;  %v4517_v2 = vpop.f32.mrb[48].mxu1 }
 0x5ae   : > { %v4518_v42 = vpop.f32.mrb[49].mxu1 }
 0x5af   : > { %v4519_v25 = vadd.f32 %v4518_v42, %v4517_v2  ;;  %4929 = vmatprep.subr.bf16.mxu0 %v4928_v58 }
 0x5b0   : > { %4931 = vmatpush3.bf16.msra.mxu0 %v4928_v58 }
 0x5b1   : > { %v4520_v14 = vpop.f32.mrb[50].mxu1 }
 0x5b2   : > { %v4521_v20 = vpop.f32.mrb[51].mxu1 }
 0x5b3   : > { %v4522_v24 = vadd.f32 %v4521_v20, %v4520_v14 }
 0x5b5   : > { %v4932_v19 = vpack.c.bf16 %v4522_v24, %v4519_v25  ;;  %v4523_v45 = vpop.f32.mrb[52].mxu1 }
 0x5b6   : > { %v4524_v34 = vpop.f32.mrb[53].mxu1 }
 0x5b7   : > { %v4525_v17 = vadd.f32 %v4524_v34, %v4523_v45  ;;  %4933 = vmatprep.subr.bf16.mxu0 %v4932_v19 }
 0x5b8   : > { %4935 = vmatpush3.bf16.msra.mxu0 %v4932_v19 }
 0x5b9   : > { %v4526_v53 = vpop.f32.mrb[54].mxu1 }
 0x5ba   : > { %v4527_v8 = vpop.f32.mrb[55].mxu1 }
 0x5bb   : > { %v4528_v38 = vadd.f32 %v4527_v8, %v4526_v53 }
 0x5bd   : > { %v4936_v36 = vpack.c.bf16 %v4528_v38, %v4525_v17 }
 0x5bf   : > { %4937 = vmatprep.subr.bf16.mxu0 %v4936_v36 }
 0x5c0   : > { %4939 = vmatpush3.bf16.msra.mxu0 %v4936_v36 }
 0x5c3   : > { %4659 = vmatmul.mubr.msk.f32.vlgmr.msra.gmra.mrb[54].mxu0 %vm738_vm1, %v5157_v3 }
 0x5c4   : > { %4661 = vmatprep.mubr.msk.f32.mxu0 %vm738_vm1, %v5158_v62 }
 0x5c7   : > { %4662 = vmatmul.mubr.msk.f32.gmra.mrb[56].mxu0 %vm738_vm1, %v5159_v10 }
 0x5c8   : > { %5397 = shalt.err (!%p5394_p6)
}
 0x5c9   : > { %s5398_s28 = scalar_lea.hbm %s7738_s10, 4096  ;;  %s5402_s21 = scalar_lea.hbm %s8618_s12, 16384 }
 0x5ca   : > { %p5399_p8 = scmp.ne.s32.totalorder %s7738_s10, %s5398_s28  ;;  %p5403_p4 = scmp.lt.u32.totalorder %s7738_s10, %s8618_s12 }
 0x5cb   : > { %p5404_p2 = scmp.lt.u32.totalorder %s5402_s21, %s5398_s28  ;;  %p5406_p13 = scmp.lt.u32.totalorder %s5398_s28, %s7738_s10 }
 0x5cc   : > { %p5400_p3 = pnand %p5399_p8, %p8619_p11 }
 0x5cd   : > { %p5405_p9 = por %p5404_p2, %p5403_p4 }
 0x5ce   : > { %p5401_p7 = pneg %p5400_p3 }
 0x5cf   : > { %p5407_p12 = por %p5406_p13, %p5405_p9 }
 0x5d1   : > { %p5408_p0 = pnand %p5407_p12, %p5401_p7 }
 0x5d3   : > { %5411 = shalt.err (!%p5408_p0)
}
 0x5d4   : > { %s5528_s25 = smov 128   ;;  %s5529_s27 = smov 256   ;;  %v7764_v46 = vpop.permute.xlu0 %3699  ;;  %v7766_v28 = vpop.permute.xlu1 %3695  ;;  %v8620_v13 = vld [vmem:[#allocation112_spill] sm:$0xff]  ;;  %v8621_v44 = vld [vmem:[#allocation83_spill] sm:$0xff]  ;;  %v8622_v18 = vld [vmem:[#allocation114_spill] sm:$0xff] }
 0x5d5   : > { %s5530_s16 = smov 8   ;;  %v8623_v33 = vld [vmem:[#allocation47_spill] sm:$0xff]  ;;  %v8624_v37 = vld [vmem:[#allocation116_spill] sm:$0xff]  ;;  %v8625_v12 = vld [vmem:[#allocation133_spill] sm:$0xff] }
 0x5d6   : > { %4984 = dma.vmem_to_hbm [thread:$0]  (%p8619_p11), %s7733_s29, 4096, %s7738_s10, %s3823_s23, %s5528_s25, %s5529_s27, %s5530_s16   ;;  %v8626_v54 = vld [vmem:[#allocation61_spill] sm:$0xff]  ;;  %v8627_v7 = vld [vmem:[#allocation134_spill] sm:$0xff]  ;;  %v8629_v52 = vld [vmem:[#allocation99_spill] sm:$0xff] }
 0x5d7   : > { %v8628_v51 = vld [vmem:[#allocation98_spill] sm:$0xff]  ;;  %v8630_v59 = vld [vmem:[#allocation100_spill] sm:$0xff]  ;;  %v8631_v31 = vld [vmem:[#allocation101_spill] sm:$0xff]  ;;  %s7810_s29 = scalar_lea.vmem [#allocation18], %s4115_s13  ;;  %s3828_s13 = scalar_lea.sflag [#allocation19], %s5899_s26 }
 0x5d8   : > { %v7768_v40 = vpop.permute.xlu0 %3707  ;;  %v7770_v23 = vpop.permute.xlu1 %3703  ;;  %v8632_v16 = vld [vmem:[#allocation103_spill] sm:$0xff]  ;;  %v8633_v27 = vld [vmem:[#allocation104_spill] sm:$0xff]  ;;  %v8634_v4 = vld [vmem:[#allocation106_spill] sm:$0xff] }
 0x5d9   : > { %v8635_v22 = vld [vmem:[#allocation51_spill] sm:$0xff] }
 0x5dc   : > { %v7772_v35 = vpop.permute.xlu0 %3715  ;;  %v7774_v9 = vpop.permute.xlu1 %3711 }
 0x5e0   : > { %v7788_v41 = vpop.permute.xlu0 %3723  ;;  %v7796_v50 = vpop.permute.xlu1 %3719 }
 0x696   : > { %v4660_v15 = vpop.f32.mrb[54].mxu0 }
 0x697   : > { %v2991_v6 = vmul.f32 %v4660_v15, %v8620_v13  ;;  %v2995_v39 = vmul.f32 %v4660_v15, %v8621_v44  ;;  %v2999_v26 = vmul.f32 %v4660_v15, %v8622_v18  ;;  %v3003_v0 = vmul.f32 %v4660_v15, %v8623_v33  ;;  %v2747_v32 = vpop.f32.mrb[55].mxu0 }
 0x698   : > { %v3007_v29 = vmul.f32 %v4660_v15, %v8624_v37  ;;  %v3011_v63 = vmul.f32 %v4660_v15, %v8625_v12  ;;  %v3015_v1 = vmul.f32 %v4660_v15, %v8626_v54  ;;  %v3019_v30 = vmul.f32 %v4660_v15, %v8627_v7 }
 0x699   : > { %v3023_v11 = vadd.f32 %v2991_v6, %v8628_v51  ;;  %v3027_v21 = vadd.f32 %v2995_v39, %v8629_v52  ;;  %v3031_v57 = vadd.f32 %v2999_v26, %v8630_v59  ;;  %v3035_v5 = vadd.f32 %v3003_v0, %v8631_v31  ;;  %v8636_v0 = vld [vmem:[#allocation50_spill] sm:$0xff] }
 0x69a   : > { %v3039_v49 = vadd.f32 %v3007_v29, %v8632_v16  ;;  %v3043_v56 = vadd.f32 %v3011_v63, %v8633_v27  ;;  %v3047_v43 = vadd.f32 %v3015_v1, %v8634_v4  ;;  %v3051_v47 = vadd.f32 %v3019_v30, %v8635_v22  ;;  %v7794_v55 = vpop.f32.mrb[56].mxu0  ;;  %v8637_v63 = vld [vmem:[#allocation52_spill] sm:$0xff]  ;;  %v8638_v30 = vld [vmem:[#allocation137_spill] sm:$0xff] }
 0x69b   : > { %v3727_v60 = vadd.f32 %v7766_v28, %v3023_v11  ;;  %v3731_v48 = vadd.f32 %v7764_v46, %v3027_v21  ;;  %v3735_v61 = vadd.f32 %v7770_v23, %v3031_v57  ;;  %v3739_v58 = vadd.f32 %v7768_v40, %v3035_v5  ;;  %v7802_v2 = vpop.f32.mrb[57].mxu0  ;;  %v8639_v11 = vld [vmem:[#allocation138_spill] sm:$0xff]  ;;  %v8640_v21 = vld [vmem:[#allocation139_spill] sm:$0xff]  ;;  %v8641_v57 = vld [vmem:[#allocation140_spill] sm:$0xff] }
 0x69c   : > { %v3743_v42 = vadd.f32 %v7774_v9, %v3039_v49  ;;  %v3747_v25 = vadd.f32 %v7772_v35, %v3043_v56  ;;  %v3751_v14 = vadd.f32 %v7796_v50, %v3047_v43  ;;  %v3755_v20 = vadd.f32 %v7788_v41, %v3051_v47  ;;  %v8642_v5 = vld [vmem:[#allocation141_spill] sm:$0xff]  ;;  %v8643_v49 = vld [vmem:[#allocation142_spill] sm:$0xff] }
 0x69d   : > { %v3759_v24 = vmax.f32 %v3727_v60, 0.0  ;;  %v3763_v19 = vmax.f32 %v3731_v48, 0.0  ;;  %v3767_v45 = vmax.f32 %v3735_v61, 0.0  ;;  %v3771_v34 = vmax.f32 %v3739_v58, 0.0 }
 0x69e   : > { %v3775_v17 = vmax.f32 %v3743_v42, 0.0  ;;  %v3779_v53 = vmax.f32 %v3747_v25, 0.0  ;;  %v3783_v8 = vmax.f32 %v3751_v14, 0.0  ;;  %v3787_v38 = vmax.f32 %v3755_v20, 0.0 }
 0x69f   : > { %3791 = vst [vmem:[%s7810_s29 + $0x8] sm:$0xff] %v3759_v24  ;;  %3795 = vst [vmem:[%s7810_s29 + $0x28] sm:$0xff] %v3763_v19  ;;  %v2990_v36 = vmul.f32 %v8620_v13, %v2747_v32  ;;  %v2994_v3 = vmul.f32 %v8621_v44, %v2747_v32  ;;  %v2998_v62 = vmul.f32 %v8622_v18, %v2747_v32 }
 0x6a0   : > { %3799 = vst [vmem:[%s7810_s29 + $0x48] sm:$0xff] %v3767_v45  ;;  %3803 = vst [vmem:[%s7810_s29 + $0x68] sm:$0xff] %v3771_v34  ;;  %v3002_v10 = vmul.f32 %v8623_v33, %v2747_v32  ;;  %v3006_v15 = vmul.f32 %v8624_v37, %v2747_v32  ;;  %v3010_v6 = vmul.f32 %v8625_v12, %v2747_v32 }
 0x6a1   : > { %3807 = vst [vmem:[%s7810_s29 + $0x88] sm:$0xff] %v3775_v17  ;;  %3811 = vst [vmem:[%s7810_s29 + $0xa8] sm:$0xff] %v3779_v53  ;;  %v3014_v39 = vmul.f32 %v8626_v54, %v2747_v32  ;;  %v3018_v26 = vmul.f32 %v8627_v7, %v2747_v32  ;;  %v3022_v29 = vadd.f32 %v2990_v36, %v8636_v0  ;;  %v8647_v0 = vld [vmem:[#allocation146_spill] sm:$0xff] }
 0x6a2   : > { %3815 = vst [vmem:[%s7810_s29 + $0xc8] sm:$0xff] %v3783_v8  ;;  %3819 = vst [vmem:[%s7810_s29 + $0xe8] sm:$0xff] %v3787_v38  ;;  %v3026_v1 = vadd.f32 %v2994_v3, %v8637_v63  ;;  %v3030_v51 = vadd.f32 %v2998_v62, %v8638_v30  ;;  %v3034_v52 = vadd.f32 %v3002_v10, %v8639_v11  ;;  %v8644_v62 = vld [vmem:[#allocation143_spill] sm:$0xff]  ;;  %v8649_v30 = vld [vmem:[#allocation148_spill] sm:$0xff] }
 0x6a3   : > { %v3038_v59 = vadd.f32 %v3006_v15, %v8640_v21  ;;  %v3042_v31 = vadd.f32 %v3010_v6, %v8641_v57  ;;  %v3046_v16 = vadd.f32 %v3014_v39, %v8642_v5  ;;  %v3050_v27 = vadd.f32 %v3018_v26, %v8643_v49  ;;  %v8645_v15 = vld [vmem:[#allocation144_spill] sm:$0xff]  ;;  %v8646_v39 = vld [vmem:[#allocation145_spill] sm:$0xff]  ;;  %v8648_v63 = vld [vmem:[#allocation147_spill] sm:$0xff] }
 0x6a4   : > { %v3726_v56 = vadd.f32 %v7766_v28, %v3022_v29  ;;  %v3730_v32 = vadd.f32 %v7764_v46, %v3026_v1  ;;  %v3734_v4 = vadd.f32 %v7770_v23, %v3030_v51  ;;  %v3738_v43 = vadd.f32 %v7768_v40, %v3034_v52  ;;  %v8650_v11 = vld [vmem:[#allocation153_spill] sm:$0xff] }
 0x6a5   : > { %v3742_v22 = vadd.f32 %v7774_v9, %v3038_v59  ;;  %v3746_v47 = vadd.f32 %v7772_v35, %v3042_v31  ;;  %v3750_v60 = vadd.f32 %v7796_v50, %v3046_v16  ;;  %v3754_v48 = vadd.f32 %v7788_v41, %v3050_v27  ;;  %v8651_v21 = vld [vmem:[#allocation149_spill] sm:$0xff] }
 0x6a6   : > { %v3758_v61 = vmax.f32 %v3726_v56, 0.0  ;;  %v3762_v58 = vmax.f32 %v3730_v32, 0.0  ;;  %v3766_v42 = vmax.f32 %v3734_v4, 0.0  ;;  %v3770_v25 = vmax.f32 %v3738_v43, 0.0 }
 0x6a7   : > { %v3774_v14 = vmax.f32 %v3742_v22, 0.0  ;;  %v3778_v20 = vmax.f32 %v3746_v47, 0.0  ;;  %v3782_v24 = vmax.f32 %v3750_v60, 0.0  ;;  %v3786_v19 = vmax.f32 %v3754_v48, 0.0 }
 0x6a8   : > { %3790 = vst [vmem:[%s7810_s29] sm:$0xff] %v3758_v61  ;;  %3794 = vst [vmem:[%s7810_s29 + $0x20] sm:$0xff] %v3762_v58  ;;  %v2993_v45 = vmul.f32 %v7794_v55, %v8620_v13  ;;  %v2997_v34 = vmul.f32 %v7794_v55, %v8621_v44  ;;  %v3001_v17 = vmul.f32 %v7794_v55, %v8622_v18 }
 0x6a9   : > { %3798 = vst [vmem:[%s7810_s29 + $0x40] sm:$0xff] %v3766_v42  ;;  %3802 = vst [vmem:[%s7810_s29 + $0x60] sm:$0xff] %v3770_v25  ;;  %v3005_v53 = vmul.f32 %v7794_v55, %v8623_v33  ;;  %v3009_v8 = vmul.f32 %v7794_v55, %v8624_v37  ;;  %v3013_v38 = vmul.f32 %v7794_v55, %v8625_v12 }
 0x6aa   : > { %3806 = vst [vmem:[%s7810_s29 + $0x80] sm:$0xff] %v3774_v14  ;;  %3810 = vst [vmem:[%s7810_s29 + $0xa0] sm:$0xff] %v3778_v20  ;;  %v3017_v36 = vmul.f32 %v7794_v55, %v8626_v54  ;;  %v3021_v3 = vmul.f32 %v7794_v55, %v8627_v7  ;;  %v3025_v10 = vadd.f32 %v2993_v45, %v8644_v62  ;;  %v8653_v45 = vld [vmem:[#allocation151_spill] sm:$0xff]  ;;  %v8658_v62 = vld [vmem:[#allocation84_spill] sm:$0xff] }
 0x6ab   : > { %3814 = vst [vmem:[%s7810_s29 + $0xc0] sm:$0xff] %v3782_v24  ;;  %3818 = vst [vmem:[%s7810_s29 + $0xe0] sm:$0xff] %v3786_v19  ;;  %v3029_v6 = vadd.f32 %v2997_v34, %v8645_v15  ;;  %v3033_v26 = vadd.f32 %v3001_v17, %v8646_v39  ;;  %v3037_v29 = vadd.f32 %v3005_v53, %v8647_v0  ;;  %v8654_v34 = vld [vmem:[#allocation152_spill] sm:$0xff]  ;;  %v8655_v53 = vld [vmem:[#allocation154_spill] sm:$0xff] }
 0x6ac   : > { %v3041_v1 = vadd.f32 %v3009_v8, %v8648_v63  ;;  %v3045_v51 = vadd.f32 %v3013_v38, %v8649_v30  ;;  %v3049_v52 = vadd.f32 %v3017_v36, %v8650_v11  ;;  %v3053_v59 = vadd.f32 %v3021_v3, %v8651_v21  ;;  %v8656_v38 = vld [vmem:[#allocation155_spill] sm:$0xff] }
 0x6ad   : > { %v3729_v57 = vadd.f32 %v7766_v28, %v3025_v10  ;;  %v3733_v55 = vadd.f32 %v7764_v46, %v3029_v6  ;;  %v3737_v31 = vadd.f32 %v7770_v23, %v3033_v26  ;;  %v3741_v5 = vadd.f32 %v7768_v40, %v3037_v29  ;;  %v8659_v10 = vld [vmem:[#allocation86_spill] sm:$0xff] }
 0x6ae   : > { %v3745_v16 = vadd.f32 %v7774_v9, %v3041_v1  ;;  %v3749_v49 = vadd.f32 %v7772_v35, %v3045_v51  ;;  %v3753_v27 = vadd.f32 %v7796_v50, %v3049_v52  ;;  %v3757_v56 = vadd.f32 %v7788_v41, %v3053_v59 }
 0x6af   : > { %v3761_v32 = vmax.f32 %v3729_v57, 0.0  ;;  %v3765_v4 = vmax.f32 %v3733_v55, 0.0  ;;  %v3769_v43 = vmax.f32 %v3737_v31, 0.0  ;;  %v3773_v22 = vmax.f32 %v3741_v5, 0.0 }
 0x6b0   : > { %v3777_v47 = vmax.f32 %v3745_v16, 0.0  ;;  %v3781_v60 = vmax.f32 %v3749_v49, 0.0  ;;  %v3785_v48 = vmax.f32 %v3753_v27, 0.0  ;;  %v3789_v61 = vmax.f32 %v3757_v56, 0.0 }
 0x6b1   : > { %3793 = vst [vmem:[%s7810_s29 + $0x18] sm:$0xff] %v3761_v32  ;;  %3797 = vst [vmem:[%s7810_s29 + $0x38] sm:$0xff] %v3765_v4  ;;  %v2992_v58 = vmul.f32 %v8620_v13, %v7802_v2  ;;  %v2996_v42 = vmul.f32 %v8621_v44, %v7802_v2  ;;  %v3000_v25 = vmul.f32 %v8622_v18, %v7802_v2  ;;  %v8652_v18 = vld [vmem:[#allocation150_spill] sm:$0xff] }
 0x6b2   : > { %3801 = vst [vmem:[%s7810_s29 + $0x58] sm:$0xff] %v3769_v43  ;;  %3805 = vst [vmem:[%s7810_s29 + $0x78] sm:$0xff] %v3773_v22  ;;  %v3004_v14 = vmul.f32 %v8623_v33, %v7802_v2  ;;  %v3008_v20 = vmul.f32 %v8624_v37, %v7802_v2  ;;  %v3012_v24 = vmul.f32 %v8625_v12, %v7802_v2  ;;  %v8657_v37 = vld [vmem:[#allocation156_spill] sm:$0xff] }
 0x6b3   : > { %3809 = vst [vmem:[%s7810_s29 + $0x98] sm:$0xff] %v3777_v47  ;;  %3813 = vst [vmem:[%s7810_s29 + $0xb8] sm:$0xff] %v3781_v60  ;;  %v3016_v13 = vmul.f32 %v8626_v54, %v7802_v2  ;;  %v3020_v44 = vmul.f32 %v8627_v7, %v7802_v2  ;;  %v3024_v19 = vadd.f32 %v2992_v58, %v8652_v18 }
 0x6b4   : > { %3817 = vst [vmem:[%s7810_s29 + $0xd8] sm:$0xff] %v3785_v48  ;;  %3821 = vst [vmem:[%s7810_s29 + $0xf8] sm:$0xff] %v3789_v61  ;;  %v3028_v33 = vadd.f32 %v2996_v42, %v8653_v45  ;;  %v3032_v17 = vadd.f32 %v3000_v25, %v8654_v34  ;;  %v3036_v8 = vadd.f32 %v3004_v14, %v8655_v53 }
 0x6b5   : > { %v3040_v36 = vadd.f32 %v3008_v20, %v8656_v38  ;;  %v3044_v3 = vadd.f32 %v3012_v24, %v8657_v37  ;;  %v3048_v12 = vadd.f32 %v3016_v13, %v8658_v62  ;;  %v3052_v15 = vadd.f32 %v3020_v44, %v8659_v10 }
 0x6b6   : > { %v3728_v54 = vadd.f32 %v7766_v28, %v3024_v19  ;;  %v3732_v7 = vadd.f32 %v7764_v46, %v3028_v33  ;;  %v3736_v2 = vadd.f32 %v7770_v23, %v3032_v17  ;;  %v3740_v6 = vadd.f32 %v7768_v40, %v3036_v8 }
 0x6b7   : > { %v3744_v39 = vadd.f32 %v7774_v9, %v3040_v36  ;;  %v3748_v26 = vadd.f32 %v7772_v35, %v3044_v3  ;;  %v3752_v0 = vadd.f32 %v7796_v50, %v3048_v12  ;;  %v3756_v28 = vadd.f32 %v7788_v41, %v3052_v15 }
 0x6b8   : > { %v3760_v46 = vmax.f32 %v3728_v54, 0.0  ;;  %v3764_v29 = vmax.f32 %v3732_v7, 0.0  ;;  %v3768_v23 = vmax.f32 %v3736_v2, 0.0  ;;  %v3772_v63 = vmax.f32 %v3740_v6, 0.0 }
 0x6b9   : > { %v3776_v1 = vmax.f32 %v3744_v39, 0.0  ;;  %v3780_v40 = vmax.f32 %v3748_v26, 0.0  ;;  %v3784_v30 = vmax.f32 %v3752_v0, 0.0  ;;  %v3788_v51 = vmax.f32 %v3756_v28, 0.0 }
 0x6ba   : > { %3792 = vst [vmem:[%s7810_s29 + $0x10] sm:$0xff] %v3760_v46  ;;  %3796 = vst [vmem:[%s7810_s29 + $0x30] sm:$0xff] %v3764_v29 }
 0x6bb   : > { %3800 = vst [vmem:[%s7810_s29 + $0x50] sm:$0xff] %v3768_v23  ;;  %3804 = vst [vmem:[%s7810_s29 + $0x70] sm:$0xff] %v3772_v63 }
 0x6bc   : > { %3808 = vst [vmem:[%s7810_s29 + $0x90] sm:$0xff] %v3776_v1  ;;  %3812 = vst [vmem:[%s7810_s29 + $0xb0] sm:$0xff] %v3780_v40 }
 0x6bd   : > { %3816 = vst [vmem:[%s7810_s29 + $0xd0] sm:$0xff] %v3784_v30  ;;  %3820 = vst [vmem:[%s7810_s29 + $0xf0] sm:$0xff] %v3788_v51 }
 0x6be   : > { %s4136_s10 = sshll.u32 %s8615_s11, 2  ;;  %s3876_s23 = sshll.u32 %s7810_s29, 4  ;;  %s3877_s23 = int_to_ptr.vmem [resolvable:$true] %s3876_s23 }
 0x6bf   : > { %s3857_s28 = sadd.s32 %s4136_s10, %s4134_s30  ;;  %s8660_s14 = sld [smem:[#allocation159_spill]] }
 0x6c0   : > { %s4138_s17 = sshll.u32 %s3857_s28, 7  ;;  %s5531_s24 = smov 512  }
 0x6c1   : > { %4985 = sst [smem:[#allocation23]] (%p8619_p11), %s5531_s24  ;;  %s5532_s25 = smov 1024  }
 0x6c2   : > { %4986 = sst [smem:[#allocation23 + $0x1]] (%p8619_p11), %s5532_s25  ;;  %s5533_s27 = smov 4  }
 0x6c3   : > { %4987 = sst [smem:[#allocation23 + $0x2]] (%p8619_p11), %s5533_s27  ;;  %s5534_s11 = smov 128  }
 0x6c4   : > { %4988 = sst [smem:[#allocation23 + $0x3]] (%p8619_p11), %s5534_s11  ;;  %s5535_s1 = smov 8  }
 0x6c5   : > { %s3859_s26 = scalar_lea.hbm %s8660_s14, %s4138_s17  ;;  %4989 = sst [smem:[#allocation23 + $0x4]] (%p8619_p11), %s5534_s11 }
 0x6c6   : > { %4990 = sst [smem:[#allocation23 + $0x5]] (%p8619_p11), %s5535_s1  ;;  %s5536_s30 = smov [#allocation22]  }
 0x6c7   : > { %s5537_s16 = smov 0  }
 0x6c8   : > { %4991 = dma.general (%p8619_p11), %s3877_s23, 4096, %s3859_s26, %s3828_s13, %s5536_s30, [#allocation23], %s5537_s16, 0  }
 0x6c9 PF: > { %s8661_s29 = sld [smem:[#allocation32_spill]]  ;;  %s8662_s10 = sld [smem:[#allocation41_spill]] }
 0x6ca   : > { %p5042_p1 = scmp.ge.s32.totalorder %s5502_s20, 2 }
 0x6cf   : > { %s3904_s28 = sand.u32 1, %s8661_s29   ;;  %p8663_p5 = scmp.ne.s32.totalorder %s8662_s10, 0 }
 0x6d0   : > { %s3905_s17 = scalar_lea.sflag [#allocation4], %s3904_s28 }
 0x6d1   : > { %p5020_p10 = pnand %p5042_p1, %p8663_p5 }
 0x6d3   : > { %5465 = dma.done.wait (!%p5020_p10), %s3905_s17, 4096  }
 0x6d4   : > { %5467 = vsyncadd (!%p5020_p10), %s3905_s17, 4294963200  ;;  %s3914_s22 = scalar_lea.sflag [#allocation19], %s3904_s28 }
 0x6d5   : > { %5469 = dma.done.wait (!%p5020_p10), %s3914_s22, 4096  }
 0x6d6   : > { %5471 = vsyncadd (!%p5020_p10), %s3914_s22, 4294963200  ;;  %s34_s20 = sadd.s32 1, %s5502_s20   ;;  %s8664_s13 = sld [smem:[#allocation33_spill]] }
 0x6d7   : > { %p31_p6 = scmp.ge.s32.totalorder %s34_s20, 6   ;;  %s8665_s9 = sld [smem:[#allocation42_spill]] }
 0x6d8   : > { %s8666_s23 = sld [smem:[#allocation36_spill]]  ;;  %s8667_s21 = sld [smem:[#allocation38_spill]] }
 0x6d9   : > { %s8668_s14 = smov %s5482_s15  ;;  %s8670_s16 = smov %s5494_s18 }
 0x6da   : > { %s8671_s17 = smov %s5498_s19  ;;  %33 = sbr.rel (!%p31_p6) target bundleno = 17 (0x11), region = 160 }
 0x6dd   : > { %s8669_s15 = smov %s8665_s9 }
 0x6de   : > { %s8672_s18 = smov %s8666_s23  ;;  %s8673_s19 = smov %s8667_s21 }
 0x6e1   :  { %3919 = vsyncpa [#allocation3], 1 }
 0x6e2   :  { %3921 = vsyncpa [#allocation3 + $0x1], 1 }
 0x6e3   :  { %3922 = vsyncpa [#allocation6], 1 }
 0x6e4   :  { %3923 = vsyncpa [#allocation9], 1 }
 0x6e5   :  { %3924 = vsyncpa [#allocation12], 1 }
 0x6e6   :  { %3925 = vsyncpa [#allocation15], 1 }
 0x6e7   :  { %3926 = vsyncpa [#allocation4], 1 }
 0x6e8   :  { %3928 = vsyncpa [#allocation4 + $0x1], 1 }
 0x6e9   :  { %3929 = vsyncpa [#allocation19], 1 }
 0x6ea   :  { %3931 = vsyncpa [#allocation19 + $0x1], 1 }

</bundles_post_ra>
